<compile_context>
chip_gen: v6e
topology: v6e:2x2x1
jax: 0.10.0
libtpu: 0.0.40
codegen_flags: <defaults>
</compile_context>

<pallas_src>
import functools

import jax
import jax.numpy as jnp
from jax import lax
from jax.experimental import pallas as pl
from jax.experimental.pallas import tpu as pltpu

LEAKY_SLOPE = 0.2   # NLayerLeakyMLP uses nn.LeakyReLU(0.2)
EPSILON = 1e-6


def _round_up(n, m):
    return ((n + m - 1) // m) * m


def _block_diag(w):
    """(D, A, B) -> (D*A, D*B) block-diagonal (block i = w[i])."""
    d, a, b = w.shape
    eye = jnp.eye(d, dtype=w.dtype)
    full = w[:, None, :, :] * eye[:, :, None, None]       # (D, D, A, B)
    return jnp.transpose(full, (0, 2, 1, 3)).reshape(d * a, d * b)


def _transition_kernel(in_ref, w1f_ref, wmid_ref, w1t_ref, w4r_ref,
                       bw4_ref, b4_ref, out_ref):
    """One grid step = one lane-dense row-tile (all D latents packed).

    Per tile (rows N live on the LANE axis):
      forward : 3 LeakyReLU layers (block-diag DHxDH matmuls) + linear head
      backward: reverse-mode Jacobian of each latent's scalar output w.r.t.
                its masked inputs via pre-transposed block-diag weights
      output  : one (D*RJ, TN) block; per-latent 8-row group =
                [tjac (FM1 rows), residual, log|d_xx+eps|, zero padding]
    """
    f32 = jnp.float32
    bf16 = jnp.bfloat16

    d_lat = b4_ref.shape[0]                 # D
    dh = w1f_ref.shape[0]                   # D * H
    k_in, tn = in_ref.shape                 # FM1 + D, tile_n
    fm1 = k_in - d_lat                      # L * D
    rj = out_ref.shape[0] // d_lat          # rows per latent in the output (8)

    x_in = in_ref[...]                      # (FM1+D, TN) f32  [yy rows; xx rows]
    w1f = w1f_ref[...]                      # (DH, FM1+D) f32  masked fwd layer-1
    w2 = wmid_ref[0]                        # (DH, DH) bf16 block-diag
    w3 = wmid_ref[1]
    w2t = wmid_ref[2]                       # pre-transposed block-diag
    w3t = wmid_ref[3]
    w1t = w1t_ref[...]                      # (D*RJ, DH) bf16, UNmasked, padded
    w4r = w4r_ref[...]                      # (D, DH) bf16 block-structured head
    bw4 = bw4_ref[...]                      # (DH, 4) f32: b1, b2, b3, w4 column
    b4 = b4_ref[...]                        # (D, 1) f32
    b1 = bw4[:, 0:1]
    b2 = bw4[:, 1:2]
    b3 = bw4[:, 2:3]
    w4col = bw4[:, 3:4]

    def mm(a, b):                           # a @ b on the MXU, f32 accumulate
        return lax.dot_general(a, b, (((1,), (0,)), ((), ())),
                               preferred_element_type=f32)

    # ---- layer 1: K = FM1+D is tiny -> f32 VPU FMAs (inputs never quantized)
    z1 = jnp.broadcast_to(b1, (dh, tn))
    for k in range(k_in):
        z1 = z1 + w1f[:, k:k + 1] * x_in[k:k + 1, :]
    h1 = jnp.where(z1 > 0, z1, LEAKY_SLOPE * z1)
    d1 = jnp.where(z1 > 0, 1.0, LEAKY_SLOPE).astype(bf16)

    # ---- layers 2 & 3: block-diagonal (DH x DH) MXU matmuls -----------------
    z2 = mm(w2, h1.astype(bf16)) + b2
    h2 = jnp.where(z2 > 0, z2, LEAKY_SLOPE * z2)
    d2 = jnp.where(z2 > 0, 1.0, LEAKY_SLOPE).astype(bf16)

    z3 = mm(w3, h2.astype(bf16)) + b3
    h3 = jnp.where(z3 > 0, z3, LEAKY_SLOPE * z3)
    d3 = jnp.where(z3 > 0, 1.0, LEAKY_SLOPE).astype(bf16)
    h3b = h3.astype(bf16)

    # ---- head: per-latent scalar residual -----------------------------------
    y_all = mm(w4r, h3b) + b4                               # (D, TN) f32

    # ---- reverse-mode Jacobian chain (pre-transposed block-diag weights) ----
    v3 = (w4col * d3).astype(bf16)                          # (DH, TN)
    v2 = mm(w3t, v3) * d2                                   # (DH, TN) f32
    v1 = mm(w2t, v2.astype(bf16)) * d1
    jac = mm(w1t, v1.astype(bf16))                          # (D*RJ, TN) f32
    # per-latent block of RJ rows: [d_yy (FM1 rows), d_xx, zero padding]

    # ---- assemble one lane-dense, 8-sublane-aligned output block ------------
    jac3 = jac.reshape(d_lat, rj, tn)
    den = jac3[:, fm1:fm1 + 1, :] + EPSILON                 # d_xx + eps
    den_b = jnp.broadcast_to(den, (d_lat, rj, tn))
    tjac_full = -(jac3 / den_b)                             # exact division
    y_b = jnp.broadcast_to(y_all[:, None, :], (d_lat, rj, tn))
    logdet_b = jnp.broadcast_to(jnp.log(jnp.abs(den)), (d_lat, rj, tn))
    row = lax.broadcasted_iota(jnp.int32, (d_lat, rj, tn), 1)
    out = jnp.where(row < fm1, tjac_full,
                    jnp.where(row == fm1, y_b,
                              jnp.where(row == fm1 + 1, logdet_b, 0.0)))
    out_ref[...] = out.reshape(d_lat * rj, tn)


def run_transition_kernel(in_t, packed, tile_n):
    """in_t: (FM1+D, N_pad) f32 — yy rows then xx rows, rows N on the lane axis.
    Returns a fused (D*RJ, N_pad) f32 output block."""
    fpd, n_pad = in_t.shape
    dh = packed["w1_fwd"].shape[0]
    d_lat = packed["b4"].shape[0]
    drj = packed["w1t_pad"].shape[0]
    assert n_pad % tile_n == 0
    n_tiles = n_pad // tile_n

    in_specs = [
        pl.BlockSpec((fpd, tile_n), lambda j: (0, j)),      # inputs (streamed)
        pl.BlockSpec((dh, fpd), lambda j: (0, 0)),          # masked fwd layer-1
        pl.BlockSpec((4, dh, dh), lambda j: (0, 0, 0)),     # W2, W3, W2^T, W3^T
        pl.BlockSpec((drj, dh), lambda j: (0, 0)),          # padded W1^T blocks
        pl.BlockSpec((d_lat, dh), lambda j: (0, 0)),        # head rows
        pl.BlockSpec((dh, 4), lambda j: (0, 0)),            # b1, b2, b3, w4 col
        pl.BlockSpec((d_lat, 1), lambda j: (0, 0)),         # b4
    ]
    out_specs = pl.BlockSpec((drj, tile_n), lambda j: (0, j))
    out_shape = jax.ShapeDtypeStruct((drj, n_pad), jnp.float32)

    return pl.pallas_call(
        _transition_kernel,
        out_shape=out_shape,
        grid=(n_tiles,),
        in_specs=in_specs,
        out_specs=out_specs,
        compiler_params=pltpu.CompilerParams(
            dimension_semantics=("parallel",),
            vmem_limit_bytes=32 * 1024 * 1024,
        ),
    )(in_t, packed["w1_fwd"], packed["wmid"], packed["w1t_pad"],
      packed["w4row"], packed["bw4"], packed["b4"])


def pack_params(params, mask):
    """Repack stacked nn.Linear params into block-diagonal kernel layout."""
    f32 = jnp.float32
    bf16 = jnp.bfloat16
    w1 = params["w1"].astype(f32)                      # (D, H, F), F = L*D + 1
    d_lat, h, f = w1.shape
    fm1 = f - 1
    rj = _round_up(fm1 + 2, 8)                         # rows/latent in outputs
    dh = d_lat * h

    w1yy = w1[:, :, :fm1]                              # (D, H, FM1)
    w1xx = w1[:, :, fm1]                               # (D, H)

    # Forward layer-1: mask folded into the yy columns, block-diag xx columns.
    w1yy_fwd = (w1yy * mask[:, None, :]).reshape(dh, fm1)
    w1xx_bd = _block_diag(w1xx[:, :, None])            # (DH, D)
    w1_fwd = jnp.concatenate([w1yy_fwd, w1xx_bd], axis=1).astype(f32)

    w2 = params["w2"].astype(f32)
    w3 = params["w3"].astype(f32)
    wmid = jnp.stack([
        _block_diag(w2), _block_diag(w3),
        _block_diag(jnp.swapaxes(w2, 1, 2)),
        _block_diag(jnp.swapaxes(w3, 1, 2))], axis=0).astype(bf16)  # (4,DH,DH)

    # Jacobian projection: per-latent RJ rows = [W1yy^T; w1xx; 0], UNmasked
    # (Jacobian is taken w.r.t. the already-masked inputs, as in the reference).
    w1t_blocks = jnp.concatenate([
        jnp.swapaxes(w1yy, 1, 2),                      # (D, FM1, H)
        w1xx[:, None, :],                              # (D, 1, H)
        jnp.zeros((d_lat, rj - fm1 - 1, h), f32)], axis=1)
    w1t_pad = _block_diag(w1t_blocks).astype(bf16)     # (D*RJ, DH)

    w4 = params["w4"].astype(f32)                      # (D, 1, H)
    w4row = _block_diag(w4).astype(bf16)               # (D, DH)

    bw4 = jnp.concatenate([
        params["b1"].reshape(dh, 1), params["b2"].reshape(dh, 1),
        params["b3"].reshape(dh, 1), w4.reshape(dh, 1)], axis=1).astype(f32)
    b4 = params["b4"].reshape(d_lat, 1).astype(f32)

    return {"w1_fwd": w1_fwd, "wmid": wmid, "w1t_pad": w1t_pad,
            "w4row": w4row, "bw4": bw4, "b4": b4}


@functools.partial(jax.jit, static_argnums=(2, 3))
def _forward_impl(x, packed, lags, latent_size):
    B, T, D = x.shape
    L = lags
    TL = T - L
    N = B * TL
    FM1 = L * D
    RJ = packed["w1t_pad"].shape[0] // D

    # --- vectorized window build (unfold + swapaxes equivalent) ---
    t_idx = jnp.arange(TL)[:, None] + jnp.arange(L + 1)[None, :]    # (TL, L+1)
    windows = x[:, t_idx, :]                                        # (B,TL,L+1,D)
    xx = windows[:, :, -1, :].reshape(N, D)                         # (N, D)
    yy = windows[:, :, :L, :].reshape(N, FM1)                       # (N, L*D)

    # --- lane-dense, de-duplicated input block: [yy rows; xx rows], f32 ---
    tile_n = min(512, _round_up(N, 128))
    N_pad = _round_up(N, tile_n)
    in_t = jnp.concatenate([yy.T, xx.T], axis=0).astype(jnp.float32)
    in_t = jnp.pad(in_t, ((0, 0), (0, N_pad - N)))

    out = run_transition_kernel(in_t, packed, tile_n)               # (D*RJ,N_pad)
    out3 = out[:, :N].reshape(D, RJ, N)
    tjac_d = out3[:, :FM1, :]                                       # (D, L*D, N)
    res_dn = out3[:, FM1, :]                                        # (D, N)
    logdet_dn = out3[:, FM1 + 1, :]                                 # (D, N)

    # residuals: mirror torch.cat(list of (N,), -1).reshape(B, -1, D)
    residuals = res_dn.reshape(-1).reshape(B, TL, D)

    # sum over latent dims, then per-sequence sum over time
    sum_log_abs_det_jacobian = jnp.sum(
        jnp.sum(logdet_dn, axis=0).reshape(B, TL), axis=1)

    # torch.stack(list of (N, L*D), dim=1).reshape(B, TL, D, D) (lags == 1)
    transition_jacobian = jnp.transpose(tjac_d, (2, 0, 1)).reshape(B, TL, D, D)

    # L0-"norm" sparsity statistics, vectorized over time
    nz = (transition_jacobian != 0).astype(jnp.float32)             # (B,TL,D,D)
    xx_spa = nz.sum(axis=-2).mean(axis=(0, -1))                     # (TL,)
    yy_spa = nz.sum(axis=-1).mean(axis=(0, -1))[1:]                 # (TL-1,)

    return residuals, sum_log_abs_det_jacobian, transition_jacobian, xx_spa, yy_spa


def np_sparse_transition_prior_forward(x, params, lags, latent_size, masks=None):
    """Mirrors NPSparseTransitionPrior.forward.

    Note: xx_spa / yy_spa are returned as jnp arrays of shape (T-L,) and
    (T-L-1,) (same values as the reference's Python lists of scalars)."""
    B, T, D = x.shape
    assert D == latent_size
    # The reference module's transition-jacobian reshape is only consistent
    # for lags == 1; guard it explicitly.
    assert lags == 1, "NPSparseTransitionPrior reshape requires lags == 1"

    FM1 = lags * D
    if masks is None:
        mask = jnp.ones((D, FM1), jnp.float32)
    else:
        mask = jnp.broadcast_to(jnp.asarray(masks, jnp.float32), (D, FM1))

    packed = pack_params(params, mask)
    return _forward_impl(x.astype(jnp.float32), packed, lags, latent_size)


def init_params(key, lags, latent_size, hidden_dim):
    """Deterministic per-latent MLP params stacked along a leading D axis,
    mimicking nn.Linear's U(-1/sqrt(fan_in), 1/sqrt(fan_in)) init."""
    D = latent_size
    F = lags * latent_size + 1
    H = hidden_dim

    def uni(k, shape, fan_in):
        bound = 1.0 / jnp.sqrt(jnp.float32(fan_in))
        return jax.random.uniform(k, shape, jnp.float32, -bound, bound)

    ks = jax.random.split(key, 8)
    return {
        "w1": uni(ks[0], (D, H, F), F),
        "b1": uni(ks[1], (D, 1, H), F),
        "w2": uni(ks[2], (D, H, H), H),
        "b2": uni(ks[3], (D, 1, H), H),
        "w3": uni(ks[4], (D, H, H), H),
        "b3": uni(ks[5], (D, 1, H), H),
        "w4": uni(ks[6], (D, 1, H), H),
        "b4": uni(ks[7], (D, 1, 1), H),
    }


if __name__ == "__main__":
    LAGS = 1
    LATENT = 4
    HIDDEN = 64
    B, T = 2, 9

    key = jax.random.PRNGKey(0)
    k_x, k_p = jax.random.split(key)
    x = jax.random.normal(k_x, (B, T, LATENT), dtype=jnp.float32)
    params = init_params(k_p, LAGS, LATENT, HIDDEN)

    residuals, sum_logdet, trans_jac, xx_spa, yy_spa = \
        np_sparse_transition_prior_forward(x, params, LAGS, LATENT)

    jax.block_until_ready(residuals)
    jax.block_until_ready(sum_logdet)
    jax.block_until_ready(trans_jac)
    jax.block_until_ready(xx_spa)
    jax.block_until_ready(yy_spa)

    assert residuals.shape == (B, T - LAGS, LATENT)
    assert sum_logdet.shape == (B,)
    assert trans_jac.shape == (B, T - LAGS, LATENT, LATENT)
    assert xx_spa.shape == (T - LAGS,)
    assert yy_spa.shape == (T - LAGS - 1,)
    assert bool(jnp.all(jnp.isfinite(residuals)))
    assert bool(jnp.all(jnp.isfinite(sum_logdet)))
    assert bool(jnp.all(jnp.isfinite(trans_jac)))

    print("KERNEL_OK")
</pallas_src>

<mosaic_0001>
module attributes {stable_mosaic.version = 11 : i64} {
  func.func @_transition_kernel(%arg0: i32, %arg1: memref<8x128xf32, #tpu.memory_space<vmem>>, %arg2: memref<256x8xf32, #tpu.memory_space<vmem>>, %arg3: memref<4x256x256xbf16, #tpu.memory_space<vmem>>, %arg4: memref<32x256xbf16, #tpu.memory_space<vmem>>, %arg5: memref<4x256xbf16, #tpu.memory_space<vmem>>, %arg6: memref<256x4xf32, #tpu.memory_space<vmem>>, %arg7: memref<4x1xf32, #tpu.memory_space<vmem>>, %arg8: memref<32x128xf32, #tpu.memory_space<vmem>>) attributes {dimension_semantics = [#tpu.dimension_semantics<parallel>], iteration_bounds = array<i64: 1>, scalar_prefetch = 0 : i64, scratch_operands = 0 : i64, tpu.core_type = #tpu.core_type<tc>, window_params = [{transform_indices = @transform_0, window_bounds = array<i64: 8, 128>}, {pipeline_mode = #tpu.pipeline_mode<synchronous>, transform_indices = @transform_1, window_bounds = array<i64: 256, 8>}, {pipeline_mode = #tpu.pipeline_mode<synchronous>, transform_indices = @transform_2, window_bounds = array<i64: 4, 256, 256>}, {pipeline_mode = #tpu.pipeline_mode<synchronous>, transform_indices = @transform_3, window_bounds = array<i64: 32, 256>}, {pipeline_mode = #tpu.pipeline_mode<synchronous>, transform_indices = @transform_4, window_bounds = array<i64: 4, 256>}, {pipeline_mode = #tpu.pipeline_mode<synchronous>, transform_indices = @transform_5, window_bounds = array<i64: 256, 4>}, {pipeline_mode = #tpu.pipeline_mode<synchronous>, transform_indices = @transform_6, window_bounds = array<i64: 4, 1>}, {transform_indices = @transform_7, window_bounds = array<i64: 32, 128>}]} {
    %c0 = arith.constant 0 : index
    %c0_0 = arith.constant 0 : index
    %0 = vector.load %arg1[%c0, %c0_0] : memref<8x128xf32, #tpu.memory_space<vmem>>, vector<8x128xf32>
    %c0_1 = arith.constant 0 : index
    %c0_2 = arith.constant 0 : index
    %1 = vector.load %arg2[%c0_1, %c0_2] : memref<256x8xf32, #tpu.memory_space<vmem>>, vector<256x8xf32>
    %c0_3 = arith.constant 0 : index
    %c0_4 = arith.constant 0 : index
    %c0_5 = arith.constant 0 : index
    %2 = vector.load %arg3[%c0_3, %c0_4, %c0_5] : memref<4x256x256xbf16, #tpu.memory_space<vmem>>, vector<1x256x256xbf16>
    %3 = vector.shape_cast %2 : vector<1x256x256xbf16> to vector<256x256xbf16>
    %c1 = arith.constant 1 : index
    %c0_6 = arith.constant 0 : index
    %c0_7 = arith.constant 0 : index
    %4 = vector.load %arg3[%c1, %c0_6, %c0_7] : memref<4x256x256xbf16, #tpu.memory_space<vmem>>, vector<1x256x256xbf16>
    %5 = vector.shape_cast %4 : vector<1x256x256xbf16> to vector<256x256xbf16>
    %c2 = arith.constant 2 : index
    %c0_8 = arith.constant 0 : index
    %c0_9 = arith.constant 0 : index
    %6 = vector.load %arg3[%c2, %c0_8, %c0_9] : memref<4x256x256xbf16, #tpu.memory_space<vmem>>, vector<1x256x256xbf16>
    %7 = vector.shape_cast %6 : vector<1x256x256xbf16> to vector<256x256xbf16>
    %c3 = arith.constant 3 : index
    %c0_10 = arith.constant 0 : index
    %c0_11 = arith.constant 0 : index
    %8 = vector.load %arg3[%c3, %c0_10, %c0_11] : memref<4x256x256xbf16, #tpu.memory_space<vmem>>, vector<1x256x256xbf16>
    %9 = vector.shape_cast %8 : vector<1x256x256xbf16> to vector<256x256xbf16>
    %c0_12 = arith.constant 0 : index
    %c0_13 = arith.constant 0 : index
    %10 = vector.load %arg4[%c0_12, %c0_13] : memref<32x256xbf16, #tpu.memory_space<vmem>>, vector<32x256xbf16>
    %c0_14 = arith.constant 0 : index
    %c0_15 = arith.constant 0 : index
    %11 = vector.load %arg5[%c0_14, %c0_15] : memref<4x256xbf16, #tpu.memory_space<vmem>>, vector<4x256xbf16>
    %c0_16 = arith.constant 0 : index
    %c0_17 = arith.constant 0 : index
    %12 = vector.load %arg6[%c0_16, %c0_17] : memref<256x4xf32, #tpu.memory_space<vmem>>, vector<256x4xf32>
    %c0_18 = arith.constant 0 : index
    %c0_19 = arith.constant 0 : index
    %13 = vector.load %arg7[%c0_18, %c0_19] : memref<4x1xf32, #tpu.memory_space<vmem>>, vector<4x1xf32>
    %14 = vector.extract_strided_slice %12 {offsets = [0, 0], sizes = [256, 1], strides = [1, 1]} : vector<256x4xf32> to vector<256x1xf32>
    %15 = vector.extract_strided_slice %12 {offsets = [0, 1], sizes = [256, 1], strides = [1, 1]} : vector<256x4xf32> to vector<256x1xf32>
    %16 = vector.extract_strided_slice %12 {offsets = [0, 2], sizes = [256, 1], strides = [1, 1]} : vector<256x4xf32> to vector<256x1xf32>
    %17 = vector.extract_strided_slice %12 {offsets = [0, 3], sizes = [256, 1], strides = [1, 1]} : vector<256x4xf32> to vector<256x1xf32>
    %18 = vector.shape_cast %14 : vector<256x1xf32> to vector<256x1xf32>
    %19 = vector.broadcast %18 : vector<256x1xf32> to vector<256x128xf32>
    %20 = vector.extract_strided_slice %1 {offsets = [0, 0], sizes = [256, 1], strides = [1, 1]} : vector<256x8xf32> to vector<256x1xf32>
    %21 = vector.extract_strided_slice %0 {offsets = [0, 0], sizes = [1, 128], strides = [1, 1]} : vector<8x128xf32> to vector<1x128xf32>
    %22 = vector.broadcast %20 : vector<256x1xf32> to vector<256x128xf32>
    %23 = vector.broadcast %21 : vector<1x128xf32> to vector<256x128xf32>
    %24 = arith.mulf %22, %23 : vector<256x128xf32>
    %25 = arith.addf %19, %24 : vector<256x128xf32>
    %26 = vector.extract_strided_slice %1 {offsets = [0, 1], sizes = [256, 1], strides = [1, 1]} : vector<256x8xf32> to vector<256x1xf32>
    %27 = vector.extract_strided_slice %0 {offsets = [1, 0], sizes = [1, 128], strides = [1, 1]} : vector<8x128xf32> to vector<1x128xf32>
    %28 = vector.broadcast %26 : vector<256x1xf32> to vector<256x128xf32>
    %29 = vector.broadcast %27 : vector<1x128xf32> to vector<256x128xf32>
    %30 = arith.mulf %28, %29 : vector<256x128xf32>
    %31 = arith.addf %25, %30 : vector<256x128xf32>
    %32 = vector.extract_strided_slice %1 {offsets = [0, 2], sizes = [256, 1], strides = [1, 1]} : vector<256x8xf32> to vector<256x1xf32>
    %33 = vector.extract_strided_slice %0 {offsets = [2, 0], sizes = [1, 128], strides = [1, 1]} : vector<8x128xf32> to vector<1x128xf32>
    %34 = vector.broadcast %32 : vector<256x1xf32> to vector<256x128xf32>
    %35 = vector.broadcast %33 : vector<1x128xf32> to vector<256x128xf32>
    %36 = arith.mulf %34, %35 : vector<256x128xf32>
    %37 = arith.addf %31, %36 : vector<256x128xf32>
    %38 = vector.extract_strided_slice %1 {offsets = [0, 3], sizes = [256, 1], strides = [1, 1]} : vector<256x8xf32> to vector<256x1xf32>
    %39 = vector.extract_strided_slice %0 {offsets = [3, 0], sizes = [1, 128], strides = [1, 1]} : vector<8x128xf32> to vector<1x128xf32>
    %40 = vector.broadcast %38 : vector<256x1xf32> to vector<256x128xf32>
    %41 = vector.broadcast %39 : vector<1x128xf32> to vector<256x128xf32>
    %42 = arith.mulf %40, %41 : vector<256x128xf32>
    %43 = arith.addf %37, %42 : vector<256x128xf32>
    %44 = vector.extract_strided_slice %1 {offsets = [0, 4], sizes = [256, 1], strides = [1, 1]} : vector<256x8xf32> to vector<256x1xf32>
    %45 = vector.extract_strided_slice %0 {offsets = [4, 0], sizes = [1, 128], strides = [1, 1]} : vector<8x128xf32> to vector<1x128xf32>
    %46 = vector.broadcast %44 : vector<256x1xf32> to vector<256x128xf32>
    %47 = vector.broadcast %45 : vector<1x128xf32> to vector<256x128xf32>
    %48 = arith.mulf %46, %47 : vector<256x128xf32>
    %49 = arith.addf %43, %48 : vector<256x128xf32>
    %50 = vector.extract_strided_slice %1 {offsets = [0, 5], sizes = [256, 1], strides = [1, 1]} : vector<256x8xf32> to vector<256x1xf32>
    %51 = vector.extract_strided_slice %0 {offsets = [5, 0], sizes = [1, 128], strides = [1, 1]} : vector<8x128xf32> to vector<1x128xf32>
    %52 = vector.broadcast %50 : vector<256x1xf32> to vector<256x128xf32>
    %53 = vector.broadcast %51 : vector<1x128xf32> to vector<256x128xf32>
    %54 = arith.mulf %52, %53 : vector<256x128xf32>
    %55 = arith.addf %49, %54 : vector<256x128xf32>
    %56 = vector.extract_strided_slice %1 {offsets = [0, 6], sizes = [256, 1], strides = [1, 1]} : vector<256x8xf32> to vector<256x1xf32>
    %57 = vector.extract_strided_slice %0 {offsets = [6, 0], sizes = [1, 128], strides = [1, 1]} : vector<8x128xf32> to vector<1x128xf32>
    %58 = vector.broadcast %56 : vector<256x1xf32> to vector<256x128xf32>
    %59 = vector.broadcast %57 : vector<1x128xf32> to vector<256x128xf32>
    %60 = arith.mulf %58, %59 : vector<256x128xf32>
    %61 = arith.addf %55, %60 : vector<256x128xf32>
    %62 = vector.extract_strided_slice %1 {offsets = [0, 7], sizes = [256, 1], strides = [1, 1]} : vector<256x8xf32> to vector<256x1xf32>
    %63 = vector.extract_strided_slice %0 {offsets = [7, 0], sizes = [1, 128], strides = [1, 1]} : vector<8x128xf32> to vector<1x128xf32>
    %64 = vector.broadcast %62 : vector<256x1xf32> to vector<256x128xf32>
    %65 = vector.broadcast %63 : vector<1x128xf32> to vector<256x128xf32>
    %66 = arith.mulf %64, %65 : vector<256x128xf32>
    %67 = arith.addf %61, %66 : vector<256x128xf32>
    %cst = arith.constant 0.000000e+00 : f32
    %68 = vector.broadcast %cst : f32 to vector<256x128xf32>
    %69 = arith.cmpf ogt, %67, %68 : vector<256x128xf32>
    %cst_20 = arith.constant 2.000000e-01 : f32
    %70 = vector.broadcast %cst_20 : f32 to vector<256x128xf32>
    %71 = arith.mulf %70, %67 : vector<256x128xf32>
    %72 = arith.select %69, %67, %71 : vector<256x128xi1>, vector<256x128xf32>
    %cst_21 = arith.constant 0.000000e+00 : f32
    %73 = vector.broadcast %cst_21 : f32 to vector<256x128xf32>
    %74 = arith.cmpf ogt, %67, %73 : vector<256x128xf32>
    %cst_22 = arith.constant 1.000000e+00 : f32
    %cst_23 = arith.constant 2.000000e-01 : f32
    %75 = vector.broadcast %cst_22 : f32 to vector<256x128xf32>
    %76 = vector.broadcast %cst_23 : f32 to vector<256x128xf32>
    %77 = arith.select %74, %75, %76 : vector<256x128xi1>, vector<256x128xf32>
    %78 = arith.truncf %77 : vector<256x128xf32> to vector<256x128xbf16>
    %79 = arith.truncf %72 : vector<256x128xf32> to vector<256x128xbf16>
    %cst_24 = arith.constant dense<0.000000e+00> : vector<256x128xf32>
    %80 = tpu.matmul %3, %79, %cst_24 {dimension_numbers = #tpu.dot_dimension_numbers<[1], [0], [0], [1], [0, 0, 1, 1], [], []>} : vector<256x256xbf16>, vector<256x128xbf16>, vector<256x128xf32> -> vector<256x128xf32>
    %81 = vector.broadcast %15 : vector<256x1xf32> to vector<256x128xf32>
    %82 = arith.addf %80, %81 : vector<256x128xf32>
    %cst_25 = arith.constant 0.000000e+00 : f32
    %83 = vector.broadcast %cst_25 : f32 to vector<256x128xf32>
    %84 = arith.cmpf ogt, %82, %83 : vector<256x128xf32>
    %cst_26 = arith.constant 2.000000e-01 : f32
    %85 = vector.broadcast %cst_26 : f32 to vector<256x128xf32>
    %86 = arith.mulf %85, %82 : vector<256x128xf32>
    %87 = arith.select %84, %82, %86 : vector<256x128xi1>, vector<256x128xf32>
    %cst_27 = arith.constant 0.000000e+00 : f32
    %88 = vector.broadcast %cst_27 : f32 to vector<256x128xf32>
    %89 = arith.cmpf ogt, %82, %88 : vector<256x128xf32>
    %cst_28 = arith.constant 1.000000e+00 : f32
    %cst_29 = arith.constant 2.000000e-01 : f32
    %90 = vector.broadcast %cst_28 : f32 to vector<256x128xf32>
    %91 = vector.broadcast %cst_29 : f32 to vector<256x128xf32>
    %92 = arith.select %89, %90, %91 : vector<256x128xi1>, vector<256x128xf32>
    %93 = arith.truncf %92 : vector<256x128xf32> to vector<256x128xbf16>
    %94 = arith.truncf %87 : vector<256x128xf32> to vector<256x128xbf16>
    %cst_30 = arith.constant dense<0.000000e+00> : vector<256x128xf32>
    %95 = tpu.matmul %5, %94, %cst_30 {dimension_numbers = #tpu.dot_dimension_numbers<[1], [0], [0], [1], [0, 0, 1, 1], [], []>} : vector<256x256xbf16>, vector<256x128xbf16>, vector<256x128xf32> -> vector<256x128xf32>
    %96 = vector.broadcast %16 : vector<256x1xf32> to vector<256x128xf32>
    %97 = arith.addf %95, %96 : vector<256x128xf32>
    %cst_31 = arith.constant 0.000000e+00 : f32
    %98 = vector.broadcast %cst_31 : f32 to vector<256x128xf32>
    %99 = arith.cmpf ogt, %97, %98 : vector<256x128xf32>
    %cst_32 = arith.constant 2.000000e-01 : f32
    %100 = vector.broadcast %cst_32 : f32 to vector<256x128xf32>
    %101 = arith.mulf %100, %97 : vector<256x128xf32>
    %102 = arith.select %99, %97, %101 : vector<256x128xi1>, vector<256x128xf32>
    %cst_33 = arith.constant 0.000000e+00 : f32
    %103 = vector.broadcast %cst_33 : f32 to vector<256x128xf32>
    %104 = arith.cmpf ogt, %97, %103 : vector<256x128xf32>
    %cst_34 = arith.constant 1.000000e+00 : f32
    %cst_35 = arith.constant 2.000000e-01 : f32
    %105 = vector.broadcast %cst_34 : f32 to vector<256x128xf32>
    %106 = vector.broadcast %cst_35 : f32 to vector<256x128xf32>
    %107 = arith.select %104, %105, %106 : vector<256x128xi1>, vector<256x128xf32>
    %108 = arith.truncf %107 : vector<256x128xf32> to vector<256x128xbf16>
    %109 = arith.truncf %102 : vector<256x128xf32> to vector<256x128xbf16>
    %cst_36 = arith.constant dense<0.000000e+00> : vector<4x128xf32>
    %110 = tpu.matmul %11, %109, %cst_36 {dimension_numbers = #tpu.dot_dimension_numbers<[1], [0], [0], [1], [0, 0, 1, 1], [], []>} : vector<4x256xbf16>, vector<256x128xbf16>, vector<4x128xf32> -> vector<4x128xf32>
    %111 = vector.broadcast %13 : vector<4x1xf32> to vector<4x128xf32>
    %112 = arith.addf %110, %111 : vector<4x128xf32>
    %113 = arith.extf %108 : vector<256x128xbf16> to vector<256x128xf32>
    %114 = vector.broadcast %17 : vector<256x1xf32> to vector<256x128xf32>
    %115 = arith.mulf %114, %113 : vector<256x128xf32>
    %116 = arith.truncf %115 : vector<256x128xf32> to vector<256x128xbf16>
    %cst_37 = arith.constant dense<0.000000e+00> : vector<256x128xf32>
    %117 = tpu.matmul %9, %116, %cst_37 {dimension_numbers = #tpu.dot_dimension_numbers<[1], [0], [0], [1], [0, 0, 1, 1], [], []>} : vector<256x256xbf16>, vector<256x128xbf16>, vector<256x128xf32> -> vector<256x128xf32>
    %118 = arith.extf %93 : vector<256x128xbf16> to vector<256x128xf32>
    %119 = arith.mulf %117, %118 : vector<256x128xf32>
    %120 = arith.truncf %119 : vector<256x128xf32> to vector<256x128xbf16>
    %cst_38 = arith.constant dense<0.000000e+00> : vector<256x128xf32>
    %121 = tpu.matmul %7, %120, %cst_38 {dimension_numbers = #tpu.dot_dimension_numbers<[1], [0], [0], [1], [0, 0, 1, 1], [], []>} : vector<256x256xbf16>, vector<256x128xbf16>, vector<256x128xf32> -> vector<256x128xf32>
    %122 = arith.extf %78 : vector<256x128xbf16> to vector<256x128xf32>
    %123 = arith.mulf %121, %122 : vector<256x128xf32>
    %124 = arith.truncf %123 : vector<256x128xf32> to vector<256x128xbf16>
    %cst_39 = arith.constant dense<0.000000e+00> : vector<32x128xf32>
    %125 = tpu.matmul %10, %124, %cst_39 {dimension_numbers = #tpu.dot_dimension_numbers<[1], [0], [0], [1], [0, 0, 1, 1], [], []>} : vector<32x256xbf16>, vector<256x128xbf16>, vector<32x128xf32> -> vector<32x128xf32>
    %126 = vector.shape_cast %125 : vector<32x128xf32> to vector<4x8x128xf32>
    %127 = vector.extract_strided_slice %126 {offsets = [0, 4, 0], sizes = [4, 1, 128], strides = [1, 1, 1]} : vector<4x8x128xf32> to vector<4x1x128xf32>
    %cst_40 = arith.constant 9.99999997E-7 : f32
    %128 = vector.broadcast %cst_40 : f32 to vector<4x1x128xf32>
    %129 = arith.addf %127, %128 : vector<4x1x128xf32>
    %130 = vector.shape_cast %129 : vector<4x1x128xf32> to vector<4x1x128xf32>
    %131 = vector.broadcast %130 : vector<4x1x128xf32> to vector<4x8x128xf32>
    %132 = arith.divf %126, %131 : vector<4x8x128xf32>
    %cst_41 = arith.constant 0.000000e+00 : f32
    %133 = vector.broadcast %cst_41 : f32 to vector<4x8x128xf32>
    %134 = arith.subf %133, %132 : vector<4x8x128xf32>
    %135 = vector.shape_cast %112 : vector<4x128xf32> to vector<4x1x128xf32>
    %136 = vector.shape_cast %135 : vector<4x1x128xf32> to vector<4x1x128xf32>
    %137 = vector.broadcast %136 : vector<4x1x128xf32> to vector<4x8x128xf32>
    %138 = math.absf %129 : vector<4x1x128xf32>
    %139 = math.log %138 : vector<4x1x128xf32>
    %140 = vector.shape_cast %139 : vector<4x1x128xf32> to vector<4x1x128xf32>
    %141 = vector.broadcast %140 : vector<4x1x128xf32> to vector<4x8x128xf32>
    %142 = tpu.iota {dimensions = array<i32: 1>} : vector<4x8x128xi32>
    %c4_i32 = arith.constant 4 : i32
    %143 = vector.broadcast %c4_i32 : i32 to vector<4x8x128xi32>
    %144 = arith.cmpi slt, %142, %143 : vector<4x8x128xi32>
    %c4_i32_42 = arith.constant 4 : i32
    %145 = vector.broadcast %c4_i32_42 : i32 to vector<4x8x128xi32>
    %146 = arith.cmpi eq, %142, %145 : vector<4x8x128xi32>
    %c5_i32 = arith.constant 5 : i32
    %147 = vector.broadcast %c5_i32 : i32 to vector<4x8x128xi32>
    %148 = arith.cmpi eq, %142, %147 : vector<4x8x128xi32>
    %cst_43 = arith.constant 0.000000e+00 : f32
    %149 = vector.broadcast %cst_43 : f32 to vector<4x8x128xf32>
    %150 = arith.select %148, %141, %149 : vector<4x8x128xi1>, vector<4x8x128xf32>
    %151 = arith.select %146, %137, %150 : vector<4x8x128xi1>, vector<4x8x128xf32>
    %152 = arith.select %144, %134, %151 : vector<4x8x128xi1>, vector<4x8x128xf32>
    %153 = vector.shape_cast %152 : vector<4x8x128xf32> to vector<32x128xf32>
    %c0_44 = arith.constant 0 : index
    %c0_45 = arith.constant 0 : index
    %154 = vector.load %arg8[%c0_44, %c0_45] : memref<32x128xf32, #tpu.memory_space<vmem>>, vector<32x128xf32>
    tpu.vector_store %arg8[%c0_44, %c0_45], %153 {strides = array<i32>} : memref<32x128xf32, #tpu.memory_space<vmem>>, vector<32x128xf32>,
    return
  }
  func.func @transform_0(%arg0: i32) -> (i32, i32) {
    %c0_i32 = arith.constant 0 : i32
    %c0_i32_0 = arith.constant 0 : i32
    return %c0_i32, %arg0 : i32, i32
  }
  func.func @transform_1(%arg0: i32) -> (i32, i32) {
    %c0_i32 = arith.constant 0 : i32
    %c0_i32_0 = arith.constant 0 : i32
    %c0_i32_1 = arith.constant 0 : i32
    return %c0_i32, %c0_i32_0 : i32, i32
  }
  func.func @transform_2(%arg0: i32) -> (i32, i32, i32) {
    %c0_i32 = arith.constant 0 : i32
    %c0_i32_0 = arith.constant 0 : i32
    %c0_i32_1 = arith.constant 0 : i32
    %c0_i32_2 = arith.constant 0 : i32
    return %c0_i32, %c0_i32_0, %c0_i32_1 : i32, i32, i32
  }
  func.func @transform_3(%arg0: i32) -> (i32, i32) {
    %c0_i32 = arith.constant 0 : i32
    %c0_i32_0 = arith.constant 0 : i32
    %c0_i32_1 = arith.constant 0 : i32
    return %c0_i32, %c0_i32_0 : i32, i32
  }
  func.func @transform_4(%arg0: i32) -> (i32, i32) {
    %c0_i32 = arith.constant 0 : i32
    %c0_i32_0 = arith.constant 0 : i32
    %c0_i32_1 = arith.constant 0 : i32
    return %c0_i32, %c0_i32_0 : i32, i32
  }
  func.func @transform_5(%arg0: i32) -> (i32, i32) {
    %c0_i32 = arith.constant 0 : i32
    %c0_i32_0 = arith.constant 0 : i32
    %c0_i32_1 = arith.constant 0 : i32
    return %c0_i32, %c0_i32_0 : i32, i32
  }
  func.func @transform_6(%arg0: i32) -> (i32, i32) {
    %c0_i32 = arith.constant 0 : i32
    %c0_i32_0 = arith.constant 0 : i32
    %c0_i32_1 = arith.constant 0 : i32
    return %c0_i32, %c0_i32_0 : i32, i32
  }
  func.func @transform_7(%arg0: i32) -> (i32, i32) {
    %c0_i32 = arith.constant 0 : i32
    %c0_i32_0 = arith.constant 0 : i32
    return %c0_i32, %arg0 : i32, i32
  }
}

</mosaic_0001>

<bundles_post_ra>
// kernel: squeeze.5
= control target key start
LH: loop header
LB: loop body
LE: loop exit
PB: predicated region body
PF: predicated region fallthrough
CT: control target
= control target key end

     0   :  { %s35_s8 = smov 116   ;;  %vm8_vm0 = vcmask 31744   ;;  %s36_s11 = smov 120   ;;  %s62_s0 = inlined_call_operand.vmem [shape: f32[4,16], index: 0, kind: input, shape index: {}]   ;;  %s63_s1 = inlined_call_operand.vmem [shape: f32[2,8,4], index: 1, kind: output, shape index: {}]  }
   0x1   :  { %v5_v0 = vld [vmem:[%s62_s0] sm:$0xf]  ;;  %s34_s0 = smov 124  }
   0x2   :  { %6 = vst [vmem:[#allocation0] sm:$0xf] %v5_v0 }
   0x9   :  { %v10_v1 = vld [vmem:[#allocation0] sm:$0xf]  }
   0xa   :  { %v22_v2 = vld [vmem:[#allocation0] sm:$0xf]   ;;  %11 = vrot.lane.b32.xlu0 %v10_v1, %s34_s0 }
   0xb   :  { %23 = vrot.lane.b32.xlu1 %v22_v2, %s35_s8  ;;  %v7_v3 = vld [vmem:[#allocation0] sm:$0xf]  }
   0xc   :  { %v16_v4 = vld [vmem:[#allocation0] sm:$0xf]   ;;  %9 = vst.msk [vmem:[%s63_s1] ss:$4 sm:$0xf] %vm8_vm0, %v7_v3  }
   0xe   :  { %17 = vrot.lane.b32.xlu0 %v16_v4, %s36_s11 }
  0x7c   :  { %v12_v5 = vpop.permute.xlu0 %11  }
  0x7d   :  { %v24_v6 = vpop.permute.xlu1 %23   ;;  %28 = vst.msk [vmem:[%s63_s1 + $0x1] ss:$4 sm:$0xf] %vm8_vm0, %v12_v5  }
  0x7e   :  { %30 = vst.msk [vmem:[%s63_s1 + $0x3] ss:$4 sm:$0xf] %vm8_vm0, %v24_v6  }
  0x80   :  { %v18_v7 = vpop.permute.xlu0 %17  }
  0x81   :  { %29 = vst.msk [vmem:[%s63_s1 + $0x2] ss:$4 sm:$0xf] %vm8_vm0, %v18_v7  }

// kernel: _forward_impl.1
= control target key start
LH: loop header
LB: loop body
LE: loop exit
PB: predicated region body
PF: predicated region fallthrough
CT: control target
= control target key end

     0   :  { %12 = vsyncpa [#allocation3], 0  ;;  %s5775_s24 = smov [#allocation2]   ;;  %s9047_s0 = inlined_call_operand.vmem [shape: f32[8,128], index: 0, kind: input, shape index: {}]   ;;  %s9048_s1 = inlined_call_operand.vmem [shape: f32[256,8], index: 1, kind: input, shape index: {}]   ;;  %s9049_s2 = inlined_call_operand.hbm [shape: bf16[4,256,256], index: 2, kind: input, shape index: {}]   ;;  %s9050_s3 = inlined_call_operand.vmem [shape: bf16[32,256], index: 3, kind: input, shape index: {}]   ;;  %s9051_s4 = inlined_call_operand.vmem [shape: bf16[4,256], index: 4, kind: input, shape index: {}]   ;;  %s9052_s5 = inlined_call_operand.vmem [shape: f32[256,4], index: 5, kind: input, shape index: {}]   ;;  %s9053_s6 = inlined_call_operand.vmem [shape: f32[4,1], index: 6, kind: input, shape index: {}]   ;;  %s9054_s7 = inlined_call_operand.vmem [shape: f32[32,128], index: 7, kind: output, shape index: {}]  }
   0x1   :  { %s22_s25 = sshll.u32 %s5775_s24, 4  ;;  %s23_s25 = int_to_ptr.vmem [resolvable:$true] %s22_s25 }
   0x2   :  { %s5761_s26 = scalar_lea.vmem %s23_s25, 16384  ;;  %p5766_p1 = scmp.lt.s32.totalorder %s23_s25, %s23_s25 }
   0x3   :  { %p5762_p0 = scmp.ne.s32.totalorder %s23_s25, %s5761_s26  ;;  %p5767_p2 = scmp.lt.s32.totalorder %s5761_s26, %s5761_s26 }
   0x5   :  { %p5768_p3 = por %p5767_p2, %p5766_p1 }
   0x7   :  { %p5769_p4 = pnand %p5768_p3, %p5762_p0 }
   0x9   :  { %5772 = shalt.err (!%p5769_p4)
}
   0xa   :  { %s5776_s27 = smov 128   ;;  %s5777_s28 = smov 8  }
   0xb   :  { %28 = dma.hbm_to_vmem [thread:$0]  %s9049_s2, 16384, %s23_s25, [#allocation3], %s5776_s27, %s5776_s27, %s5777_s28  }
   0xc   :  { %5773 = dma.done.wait [#allocation3], 16384  }
   0xd   :  { %5774 = vsyncadd [#allocation3], 4294950912  ;;  %v9065_v0 = vmov 0   ;;  %v5836_v1 = vld [vmem:[%s9048_s1 + $0xf0] sm:$0xff]  ;;  %v5848_v3 = vld [vmem:[%s9048_s1 + $0xf8] sm:$0xff]  ;;  %v9059_v9 = vmov 1  }
   0xe   :  { %5292 = vset.pattern.permute.xlu1 %v9065_v0  ;;  %5291 = vset.pattern.permute.xlu0 %v9065_v0  ;;  %v5841_v2 = vld [vmem:[%s9048_s1 + $0x70] sm:$0xff]  ;;  %v5853_v4 = vld [vmem:[%s9048_s1 + $0x78] sm:$0xff]  ;;  %v5869_v8 = vld [vmem:[%s9048_s1 + $0xe0] sm:$0xff]  ;;  %v9061_v18 = vmov 2   ;;  %v9057_v27 = vmov 3   ;;  %v9063_v36 = vmov 4  }
   0xf   :  { %555 = vperm.xlu0 %5291, %v5836_v1   ;;  %475 = vperm.xlu1 %5292, %v5841_v2   ;;  %v240_v5 = vld [vmem:[%s9052_s5 + $0xf0] sm:$0xff]  ;;  %v241_v6 = vld [vmem:[%s9052_s5 + $0xf8] sm:$0xff]  ;;  %v5879_v11 = vld [vmem:[%s9048_s1 + $0x68] sm:$0xff]  ;;  %v9055_v55 = vmov 5  }
  0x10   :  { %v225_v7 = vld [vmem:[%s9052_s5 + $0x78] sm:$0xff]  ;;  %v224_v10 = vld [vmem:[%s9052_s5 + $0x70] sm:$0xff]  ;;  %v238_v12 = vld [vmem:[%s9052_s5 + $0xe0] sm:$0xff] }
  0x11   :  { %v220_v13 = vld [vmem:[%s9052_s5 + $0x50] sm:$0xff]  ;;  %v5896_v14 = vld [vmem:[%s9048_s1 + $0xe8] sm:$0xff]  ;;  %v234_v16 = vld [vmem:[%s9052_s5 + $0xc0] sm:$0xff] }
  0x12   :  { %v5901_v15 = vld [vmem:[%s9048_s1 + $0xc8] sm:$0xff]  ;;  %v5912_v17 = vld [vmem:[%s9048_s1 + $0xb8] sm:$0xff]  ;;  %v5919_v19 = vld [vmem:[%s9048_s1 + $0x60] sm:$0xff] }
  0x13   :  { %560 = vperm.xlu0 %5291, %v5848_v3   ;;  %480 = vperm.xlu1 %5292, %v5853_v4   ;;  %v232_v20 = vld [vmem:[%s9052_s5 + $0xb0] sm:$0xff]  ;;  %v63_v21 = vld [vmem:[%s9048_s1 + $0xa8] sm:$0xff]  ;;  %v230_v22 = vld [vmem:[%s9052_s5 + $0xa0] sm:$0xff] }
  0x14   :  { %v61_v23 = vld [vmem:[%s9048_s1 + $0x98] sm:$0xff]  ;;  %v239_v24 = vld [vmem:[%s9052_s5 + $0xe8] sm:$0xff]  ;;  %v228_v25 = vld [vmem:[%s9052_s5 + $0x90] sm:$0xff] }
  0x15   :  { %v5951_v26 = vld [vmem:[%s9048_s1 + $0x88] sm:$0xff]  ;;  %v226_v28 = vld [vmem:[%s9052_s5 + $0x80] sm:$0xff]  ;;  %v5975_v31 = vld [vmem:[%s9048_s1 + $0xd0] sm:$0xff] }
  0x16   :  { %v222_v29 = vld [vmem:[%s9052_s5 + $0x60] sm:$0xff]  ;;  %v223_v30 = vld [vmem:[%s9052_s5 + $0x68] sm:$0xff]  ;;  %v5983_v32 = vld [vmem:[%s9048_s1 + $0x58] sm:$0xff] }
  0x17   :  { %395 = vperm.xlu0 %5291, %v240_v5   ;;  %400 = vperm.xlu1 %5292, %v241_v6   ;;  %v5991_v33 = vld [vmem:[%s9048_s1 + $0xd8] sm:$0xff]  ;;  %v5998_v34 = vld [vmem:[%s9048_s1 + $0x40] sm:$0xff]  ;;  %v6007_v35 = vld [vmem:[%s9048_s1 + $0x30] sm:$0xff] }
  0x18   :  { %v6015_v37 = vld [vmem:[%s9048_s1 + $0x50] sm:$0xff]  ;;  %v6022_v38 = vld [vmem:[%s9048_s1 + $0x20] sm:$0xff]  ;;  %v237_v46 = vld [vmem:[%s9052_s5 + $0xd8] sm:$0xff] }
  0x19   :  { %v6031_v39 = vld [vmem:[%s9048_s1 + $0x10] sm:$0xff]  ;;  %v6047_v43 = vld [vmem:[%s9048_s1] sm:$0xff]  ;;  %v221_v59 = vld [vmem:[%s9052_s5 + $0x58] sm:$0xff] }
  0x1a   :  { %v236_v42 = vld [vmem:[%s9052_s5 + $0xd0] sm:$0xff] }
  0x1b   :  { %320 = vperm.xlu0 %5291, %v225_v7   ;;  %5293 = vset.pattern.permute.xlu1 %v9059_v9 }
  0x1c   :  { %756 = vperm.xlu1 %5293, %v5848_v3  }
  0x1f   :  { %545 = vperm.xlu0 %5291, %v5869_v8  }
  0x20   :  { %5294 = vset.pattern.permute.xlu1 %v9065_v0 }
  0x21   :  { %315 = vperm.xlu1 %5294, %v224_v10   ;;  %v6122_v10 = vld [vmem:[%s9048_s1 + $0x8] sm:$0xff] }
  0x22   :  { %9156 = vst [vmem:[#allocation12_spill] sm:$0xff] %v6122_v10 }
  0x23   :  { %470 = vperm.xlu0 %5291, %v5879_v11  }
  0x25   :  { %5295 = vset.pattern.permute.xlu1 %v9059_v9 }
  0x26   :  { %688 = vperm.xlu1 %5295, %v5841_v2  }
  0x27   :  { %385 = vperm.xlu0 %5291, %v238_v12  }
  0x2a   :  { %692 = vperm.xlu1 %5295, %v5853_v4  }
  0x2b   :  { %295 = vperm.xlu0 %5291, %v220_v13  }
  0x2e   :  { %5296 = vset.pattern.permute.xlu1 %v9065_v0 }
  0x2f   :  { %550 = vperm.xlu1 %5296, %v5896_v14   ;;  %530 = vperm.xlu0 %5291, %v5901_v15  }
  0x33   :  { %5297 = vset.pattern.permute.xlu1 %v9061_v18  ;;  %365 = vperm.xlu0 %5291, %v234_v16  }
  0x34   :  { %952 = vperm.xlu1 %5297, %v5848_v3  }
  0x37   :  { %520 = vperm.xlu0 %5291, %v5912_v17  }
  0x38   :  { %5298 = vset.pattern.permute.xlu1 %v9065_v0 }
  0x39   :  { %465 = vperm.xlu1 %5298, %v5919_v19  }
  0x3b   :  { %355 = vperm.xlu0 %5291, %v232_v20  }
  0x3d   :  { %5299 = vset.pattern.permute.xlu1 %v9061_v18 }
  0x3e   :  { %884 = vperm.xlu1 %5299, %v5841_v2  }
  0x3f   :  { %510 = vperm.xlu0 %5291, %v63_v21  }
  0x42   :  { %888 = vperm.xlu1 %5299, %v5853_v4  }
  0x43   :  { %345 = vperm.xlu0 %5291, %v230_v22  }
  0x46   :  { %5300 = vset.pattern.permute.xlu1 %v9065_v0 }
  0x47   :  { %500 = vperm.xlu0 %5291, %v61_v23   ;;  %390 = vperm.xlu1 %5300, %v239_v24  }
  0x4b   :  { %335 = vperm.xlu0 %5291, %v228_v25   ;;  %5301 = vset.pattern.permute.xlu1 %v9059_v9 }
  0x4c   :  { %748 = vperm.xlu1 %5301, %v5896_v14  }
  0x4f   :  { %490 = vperm.xlu0 %5291, %v5951_v26  }
  0x50   :  { %5302 = vset.pattern.permute.xlu1 %v9057_v27 }
  0x51   :  { %1144 = vperm.xlu1 %5302, %v5836_v1  }
  0x53   :  { %325 = vperm.xlu0 %5291, %v226_v28  }
  0x55   :  { %5303 = vset.pattern.permute.xlu1 %v9065_v0 }
  0x56   :  { %305 = vperm.xlu1 %5303, %v222_v29   ;;  %v6163_v29 = vld [vmem:[%s9048_s1 + $0x48] sm:$0xff] }
  0x57   :  { %5400 = vset.pattern.permute.xlu0 %v9059_v9  ;;  %9164 = vst [vmem:[#allocation20_spill] sm:$0xff] %v6163_v29 }
  0x58   :  { %752 = vperm.xlu0 %5400, %v5836_v1  }
  0x5a   :  { %310 = vperm.xlu1 %5303, %v223_v30  }
  0x5c   :  { %744 = vperm.xlu0 %5400, %v5869_v8  }
  0x5e   :  { %5304 = vset.pattern.permute.xlu1 %v9059_v9 }
  0x5f   :  { %684 = vperm.xlu1 %5304, %v5879_v11  }
  0x60   :  { %680 = vperm.xlu0 %5400, %v5919_v19  }
  0x63   :  { %5305 = vset.pattern.permute.xlu1 %v9057_v27 }
  0x64   :  { %736 = vperm.xlu0 %5400, %v5975_v31   ;;  %1080 = vperm.xlu1 %5305, %v5841_v2  }
  0x68   :  { %5306 = vset.pattern.permute.xlu1 %v9065_v0  ;;  %676 = vperm.xlu0 %5400, %v5983_v32  }
  0x69   :  { %535 = vperm.xlu1 %5306, %v5975_v31  }
  0x6c   :  { %732 = vperm.xlu0 %5400, %v5901_v15  }
  0x6d   :  { %540 = vperm.xlu1 %5306, %v5991_v33  }
  0x70   :  { %664 = vperm.xlu0 %5400, %v5998_v34  }
  0x71   :  { %5307 = vset.pattern.permute.xlu1 %v9061_v18 }
  0x72   :  { %944 = vperm.xlu1 %5307, %v5896_v14  }
  0x74   :  { %724 = vperm.xlu0 %5400, %v5912_v17  }
  0x76   :  { %5308 = vset.pattern.permute.xlu1 %v9063_v36 }
  0x77   :  { %1340 = vperm.xlu1 %5308, %v5836_v1  }
  0x78   :  { %656 = vperm.xlu0 %5400, %v6007_v35  }
  0x7b   :  { %5309 = vset.pattern.permute.xlu1 %v9065_v0 }
  0x7c   :  { %455 = vperm.xlu1 %5309, %v6015_v37   ;;  %716 = vperm.xlu0 %5400, %v63_v21   ;;  %v6141_v21 = vld [vmem:[%s9048_s1 + $0xc0] sm:$0xff] }
  0x80   :  { %460 = vperm.xlu1 %5309, %v5983_v32   ;;  %648 = vperm.xlu0 %5400, %v6022_v38  }
  0x84   :  { %5310 = vset.pattern.permute.xlu1 %v9061_v18  ;;  %708 = vperm.xlu0 %5400, %v61_v23  }
  0x85   :  { %880 = vperm.xlu1 %5310, %v5879_v11  }
  0x88   :  { %640 = vperm.xlu0 %5400, %v6031_v39  }
  0x89   :  { %5311 = vset.pattern.permute.xlu1 %v9063_v36 }
  0x8a   :  { %v6035_v40 = vpop.permute.xlu0 %555  ;;  %v6037_v41 = vpop.permute.xlu1 %475  ;;  %1276 = vperm.xlu1 %5311, %v5841_v2  }
  0x8c   :  { %700 = vperm.xlu0 %5400, %v5951_v26  }
  0x8e   :  { %v6049_v44 = vpop.permute.xlu0 %560  ;;  %v6051_v45 = vpop.permute.xlu1 %480  ;;  %5312 = vset.pattern.permute.xlu1 %v9065_v0 }
  0x8f   :  { %375 = vperm.xlu1 %5312, %v236_v42  }
  0x90   :  { %632 = vperm.xlu0 %5400, %v6047_v43  }
  0x92   :  { %v6058_v47 = vpop.permute.xlu0 %395  ;;  %v6060_v48 = vpop.permute.xlu1 %400 }
  0x93   :  { %380 = vperm.xlu1 %5312, %v237_v46   ;;  %v6174_v46 = vld [vmem:[%s9048_s1 + $0x38] sm:$0xff] }
  0x94   :  { %5407 = vset.pattern.permute.xlu0 %v9061_v18 }
  0x95   :  { %948 = vperm.xlu0 %5407, %v5836_v1  }
  0x96   :  { %v6064_v49 = vpop.permute.xlu0 %320 }
  0x97   :  { %v6066_v50 = vpop.permute.xlu1 %756  ;;  %5313 = vset.pattern.permute.xlu1 %v9059_v9 }
  0x98   :  { %740 = vperm.xlu1 %5313, %v5991_v33  }
  0x99   :  { %940 = vperm.xlu0 %5407, %v5869_v8  }
  0x9a   :  { %v6071_v51 = vpop.permute.xlu0 %545 }
  0x9c   :  { %v6073_v52 = vpop.permute.xlu1 %315  ;;  %5314 = vset.pattern.permute.xlu1 %v9057_v27 }
  0x9d   :  { %1136 = vperm.xlu1 %5314, %v5869_v8   ;;  %876 = vperm.xlu0 %5407, %v5919_v19  }
  0x9e   :  { %v6078_v53 = vpop.permute.xlu0 %470 }
  0x9f   :  { %9149 = vst [vmem:[#allocation5_spill] sm:$0xff] %v6078_v53  ;;  %v6288_v53 = vld [vmem:[%s9048_s1 + $0xa0] sm:$0xff] }
  0xa1   :  { %v6080_v54 = vpop.permute.xlu1 %688  ;;  %5315 = vset.pattern.permute.xlu1 %v9055_v55  ;;  %868 = vperm.xlu0 %5407, %v6015_v37  }
  0xa2   :  { %1536 = vperm.xlu1 %5315, %v5836_v1   ;;  %v6085_v56 = vpop.permute.xlu0 %385 }
  0xa5   :  { %v6087_v57 = vpop.permute.xlu1 %692  ;;  %860 = vperm.xlu0 %5407, %v5998_v34  }
  0xa6   :  { %1540 = vperm.xlu1 %5315, %v5848_v3   ;;  %v6091_v58 = vpop.permute.xlu0 %295 }
  0xa7   :  { %9150 = vst [vmem:[#allocation6_spill] sm:$0xff] %v6091_v58  ;;  %v9182_v58 = vmov 6  }
  0xa9   :  { %852 = vperm.xlu0 %5407, %v6007_v35  }
  0xaa   :  { %v6097_v60 = vpop.permute.xlu1 %550  ;;  %5316 = vset.pattern.permute.xlu1 %v9065_v0  ;;  %v6100_v61 = vpop.permute.xlu0 %530 }
  0xab   :  { %9151 = vst [vmem:[#allocation7_spill] sm:$0xff] %v6100_v61  ;;  %300 = vperm.xlu1 %5316, %v221_v59  }
  0xad   :  { %844 = vperm.xlu0 %5407, %v6022_v38  }
  0xae   :  { %v6103_v62 = vpop.permute.xlu0 %365 }
  0xaf   :  { %9152 = vst [vmem:[#allocation8_spill] sm:$0xff] %v6103_v62  ;;  %v6105_v63 = vpop.permute.xlu1 %952  ;;  %5317 = vset.pattern.permute.xlu1 %v9059_v9 }
  0xb0   :  { %672 = vperm.xlu1 %5317, %v6015_v37  }
  0xb1   :  { %836 = vperm.xlu0 %5407, %v6031_v39  }
  0xb2   :  { %v6110_v5 = vpop.permute.xlu0 %520 }
  0xb3   :  { %9153 = vst [vmem:[#allocation9_spill] sm:$0xff] %v6110_v5 }
  0xb4   :  { %v6112_v6 = vpop.permute.xlu1 %465  ;;  %5318 = vset.pattern.permute.xlu1 %v9057_v27 }
  0xb5   :  { %9154 = vst [vmem:[#allocation10_spill] sm:$0xff] %v6112_v6  ;;  %1072 = vperm.xlu1 %5318, %v5919_v19   ;;  %896 = vperm.xlu0 %5407, %v5951_v26   ;;  %v9070_v6 = vmov 7  }
  0xb6   :  { %v6117_v7 = vpop.permute.xlu0 %355 }
  0xb7   :  { %9155 = vst [vmem:[#allocation11_spill] sm:$0xff] %v6117_v7 }
  0xb9   :  { %v6124_v12 = vpop.permute.xlu1 %884  ;;  %1076 = vperm.xlu1 %5318, %v5879_v11   ;;  %832 = vperm.xlu0 %5407, %v6122_v10  }
  0xba   :  { %v6128_v13 = vpop.permute.xlu0 %510 }
  0xbb   :  { %9157 = vst [vmem:[#allocation13_spill] sm:$0xff] %v6128_v13  ;;  %v9174_v13 = vmov 2  }
  0xbd   :  { %v6130_v16 = vpop.permute.xlu1 %888  ;;  %5319 = vset.pattern.permute.xlu1 %v9055_v55  ;;  %5416 = vset.pattern.permute.xlu0 %v9057_v27  ;;  %v6186_v27 = vld [vmem:[%s9048_s1 + $0x28] sm:$0xff] }
  0xbe   :  { %1476 = vperm.xlu1 %5319, %v5853_v4   ;;  %1148 = vperm.xlu0 %5416, %v5848_v3   ;;  %v6136_v20 = vpop.permute.xlu0 %345  ;;  %9167 = vst [vmem:[#allocation23_spill] sm:$0xff] %v6186_v27 }
  0xbf   :  { %9158 = vst [vmem:[#allocation14_spill] sm:$0xff] %v6136_v20 }
  0xc2   :  { %v6143_v22 = vpop.permute.xlu1 %390  ;;  %5320 = vset.pattern.permute.xlu1 %v9065_v0  ;;  %1084 = vperm.xlu0 %5416, %v5853_v4   ;;  %v6147_v23 = vpop.permute.xlu0 %500  ;;  %v45_v0 = vld [vmem:[%s9048_s1 + $0x18] sm:$0xff] }
  0xc3   :  { %9159 = vst [vmem:[#allocation15_spill] sm:$0xff] %v6143_v22  ;;  %9160 = vst [vmem:[#allocation16_spill] sm:$0xff] %v6147_v23  ;;  %525 = vperm.xlu1 %5320, %v6141_v21   ;;  %v9211_v22 = vmov 7  }
  0xc6   :  { %1140 = vperm.xlu0 %5416, %v5896_v14   ;;  %v6151_v24 = vpop.permute.xlu0 %335 }
  0xc7   :  { %9161 = vst [vmem:[#allocation17_spill] sm:$0xff] %v6151_v24  ;;  %v6153_v25 = vpop.permute.xlu1 %748  ;;  %5321 = vset.pattern.permute.xlu1 %v9061_v18  ;;  %v9067_v18 = vmov 6  }
  0xc8   :  { %9162 = vst [vmem:[#allocation18_spill] sm:$0xff] %v6153_v25  ;;  %932 = vperm.xlu1 %5321, %v5975_v31  }
  0xca   :  { %1068 = vperm.xlu0 %5416, %v5983_v32   ;;  %v6158_v28 = vpop.permute.xlu0 %490 }
  0xcb   :  { %9163 = vst [vmem:[#allocation19_spill] sm:$0xff] %v6158_v28  ;;  %v9171_v28 = vmov 0  }
  0xcc   :  { %v6165_v30 = vpop.permute.xlu1 %1144  ;;  %936 = vperm.xlu1 %5321, %v5991_v33  }
  0xce   :  { %1060 = vperm.xlu0 %5416, %v6163_v29   ;;  %v6169_v42 = vpop.permute.xlu0 %325 }
  0xcf   :  { %9165 = vst [vmem:[#allocation21_spill] sm:$0xff] %v6169_v42 }
  0xd0   :  { %5322 = vset.pattern.permute.xlu1 %v9063_v36 }
  0xd1   :  { %v6177_v59 = vpop.permute.xlu1 %305  ;;  %1336 = vperm.xlu1 %5322, %v5896_v14  }
  0xd2   :  { %9166 = vst [vmem:[#allocation22_spill] sm:$0xff] %v6177_v59  ;;  %1052 = vperm.xlu0 %5416, %v6174_v46  }
  0xd3   :  { %v6181_v55 = vpop.permute.xlu0 %752 }
  0xd5   :  { %v6188_v9 = vpop.permute.xlu1 %310  ;;  %5323 = vset.pattern.permute.xlu1 %v9067_v18 }
  0xd6   :  { %9168 = vst [vmem:[#allocation24_spill] sm:$0xff] %v6188_v9  ;;  %1732 = vperm.xlu1 %5323, %v5836_v1   ;;  %1044 = vperm.xlu0 %5416, %v6186_v27  }
  0xd7   :  { %v6193_v36 = vpop.permute.xlu0 %744 }
  0xd8   :  { %9169 = vst [vmem:[#allocation25_spill] sm:$0xff] %v6193_v36 }
  0xda   :  { %v6198_v42 = vpop.permute.xlu1 %684  ;;  %5324 = vset.pattern.permute.xlu1 %v9171_v28  ;;  %1036 = vperm.xlu0 %5416, %v45_v0   ;;  %v9177_v0 = vmov 4  }
  0xdb   :  { %9170 = vst [vmem:[#allocation26_spill] sm:$0xff] %v6198_v42  ;;  %v6201_v24 = vpop.permute.xlu0 %680  ;;  %445 = vperm.xlu1 %5324, %v5998_v34  }
  0xdc   :  { %9172 = vst [vmem:[#allocation27_spill] sm:$0xff] %v6201_v24 }
  0xde   :  { %1092 = vperm.xlu0 %5416, %v5951_v26  }
  0xdf   :  { %v6205_v18 = vpop.permute.xlu1 %1080  ;;  %450 = vperm.xlu1 %5324, %v6163_v29   ;;  %v6208_v23 = vpop.permute.xlu0 %736 }
  0xe0   :  { %9173 = vst [vmem:[#allocation28_spill] sm:$0xff] %v6208_v23 }
  0xe2   :  { %1028 = vperm.xlu0 %5416, %v6122_v10   ;;  %v9188_v10 = vmov 1  }
  0xe3   :  { %5325 = vset.pattern.permute.xlu1 %v9174_v13  ;;  %v6212_v20 = vpop.permute.xlu0 %676 }
  0xe4   :  { %9175 = vst [vmem:[#allocation29_spill] sm:$0xff] %v6212_v20  ;;  %v6214_v7 = vpop.permute.xlu1 %535  ;;  %872 = vperm.xlu1 %5325, %v5983_v32  }
  0xe5   :  { %9176 = vst [vmem:[#allocation30_spill] sm:$0xff] %v6214_v7 }
  0xe6   :  { %5423 = vset.pattern.permute.xlu0 %v9177_v0 }
  0xe7   :  { %1344 = vperm.xlu0 %5423, %v5848_v3   ;;  %v6219_v5 = vpop.permute.xlu0 %732 }
  0xe8   :  { %9178 = vst [vmem:[#allocation31_spill] sm:$0xff] %v6219_v5  ;;  %v6221_v62 = vpop.permute.xlu1 %540  ;;  %5326 = vset.pattern.permute.xlu1 %v9177_v0 }
  0xe9   :  { %9179 = vst [vmem:[#allocation32_spill] sm:$0xff] %v6221_v62  ;;  %1268 = vperm.xlu1 %5326, %v5919_v19  }
  0xeb   :  { %1280 = vperm.xlu0 %5423, %v5853_v4   ;;  %v6226_v61 = vpop.permute.xlu0 %664 }
  0xec   :  { %9180 = vst [vmem:[#allocation33_spill] sm:$0xff] %v6226_v61  ;;  %v235_v61 = vld [vmem:[%s9052_s5 + $0xc8] sm:$0xff] }
  0xed   :  { %v6228_v20 = vpop.permute.xlu1 %944  ;;  %5327 = vset.pattern.permute.xlu1 %v9182_v58 }
  0xee   :  { %9181 = vst [vmem:[#allocation34_spill] sm:$0xff] %v6228_v20  ;;  %1668 = vperm.xlu1 %5327, %v5841_v2  }
  0xef   :  { %1332 = vperm.xlu0 %5423, %v5869_v8   ;;  %v6233_v23 = vpop.permute.xlu0 %724 }
  0xf0   :  { %9183 = vst [vmem:[#allocation35_spill] sm:$0xff] %v6233_v23 }
  0xf2   :  { %v6235_v5 = vpop.permute.xlu1 %1340  ;;  %1672 = vperm.xlu1 %5327, %v5853_v4  }
  0xf3   :  { %1272 = vperm.xlu0 %5423, %v5879_v11   ;;  %v6239_v7 = vpop.permute.xlu0 %656 }
  0xf4   :  { %9184 = vst [vmem:[#allocation36_spill] sm:$0xff] %v6239_v7 }
  0xf6   :  { %5328 = vset.pattern.permute.xlu1 %v9171_v28 }
  0xf7   :  { %v6245_v62 = vpop.permute.xlu1 %455  ;;  %370 = vperm.xlu1 %5328, %v235_v61   ;;  %1324 = vperm.xlu0 %5423, %v5975_v31   ;;  %v6248_v23 = vpop.permute.xlu0 %716  ;;  %v9192_v61 = vmov 3  }
  0xf8   :  { %9185 = vst [vmem:[#allocation37_spill] sm:$0xff] %v6245_v62  ;;  %9186 = vst [vmem:[#allocation38_spill] sm:$0xff] %v6248_v23 }
  0xfb   :  { %v6250_v9 = vpop.permute.xlu1 %460  ;;  %5329 = vset.pattern.permute.xlu1 %v9188_v10  ;;  %1264 = vperm.xlu0 %5423, %v5983_v32   ;;  %v6254_v7 = vpop.permute.xlu0 %648 }
  0xfc   :  { %9187 = vst [vmem:[#allocation39_spill] sm:$0xff] %v6250_v9  ;;  %9189 = vst [vmem:[#allocation40_spill] sm:$0xff] %v6254_v7  ;;  %728 = vperm.xlu1 %5329, %v6141_v21   ;;  %v6270_v7 = vld [vmem:[%s9048_s1 + $0xb0] sm:$0xff] }
  0xff   :  { %1316 = vperm.xlu0 %5423, %v6141_v21   ;;  %v6258_v42 = vpop.permute.xlu0 %708 }
 0x100   :  { %9190 = vst [vmem:[#allocation41_spill] sm:$0xff] %v6258_v42  ;;  %v6260_v62 = vpop.permute.xlu1 %880  ;;  %5330 = vset.pattern.permute.xlu1 %v9192_v61 }
 0x101   :  { %9191 = vst [vmem:[#allocation42_spill] sm:$0xff] %v6260_v62  ;;  %1128 = vperm.xlu1 %5330, %v5975_v31   ;;  %v9195_v62 = vmov 5  }
 0x103   :  { %1256 = vperm.xlu0 %5423, %v6163_v29   ;;  %v6265_v23 = vpop.permute.xlu0 %640 }
 0x104   :  { %9193 = vst [vmem:[#allocation43_spill] sm:$0xff] %v6265_v23 }
 0x105   :  { %v6272_v9 = vpop.permute.xlu1 %1276  ;;  %1132 = vperm.xlu1 %5330, %v5991_v33  }
 0x107   :  { %1308 = vperm.xlu0 %5423, %v6270_v7   ;;  %v6276_v42 = vpop.permute.xlu0 %700 }
 0x108   :  { %9194 = vst [vmem:[#allocation44_spill] sm:$0xff] %v6276_v42 }
 0x109   :  { %5331 = vset.pattern.permute.xlu1 %v9195_v62 }
 0x10a   :  { %v6279_v59 = vpop.permute.xlu1 %375  ;;  %1532 = vperm.xlu1 %5331, %v5896_v14  }
 0x10b   :  { %9196 = vst [vmem:[#allocation45_spill] sm:$0xff] %v6279_v59  ;;  %1248 = vperm.xlu0 %5423, %v6174_v46   ;;  %v6283_v23 = vpop.permute.xlu0 %632 }
 0x10c   :  { %9197 = vst [vmem:[#allocation46_spill] sm:$0xff] %v6283_v23  ;;  %v6300_v23 = vld [vmem:[%s9052_s5 + $0x40] sm:$0xff] }
 0x10d   :  { %9199 = vst [vmem:[#allocation48_spill] sm:$0xff] %v6300_v23 }
 0x10e   :  { %v6290_v24 = vpop.permute.xlu1 %380  ;;  %5332 = vset.pattern.permute.xlu1 %v9070_v6 }
 0x10f   :  { %9198 = vst [vmem:[#allocation47_spill] sm:$0xff] %v6290_v24  ;;  %1928 = vperm.xlu1 %5332, %v5836_v1   ;;  %1300 = vperm.xlu0 %5423, %v6288_v53   ;;  %v219_v1 = vld [vmem:[%s9052_s5 + $0x48] sm:$0xff] }
 0x110   :  { %v6295_v42 = vpop.permute.xlu0 %948 }
 0x113   :  { %v6302_v59 = vpop.permute.xlu1 %740  ;;  %5333 = vset.pattern.permute.xlu1 %v9171_v28  ;;  %1240 = vperm.xlu0 %5423, %v6186_v27  }
 0x114   :  { %9200 = vst [vmem:[#allocation49_spill] sm:$0xff] %v6302_v59  ;;  %285 = vperm.xlu1 %5333, %v6300_v23   ;;  %v6307_v6 = vpop.permute.xlu0 %940 }
 0x115   :  { %9201 = vst [vmem:[#allocation50_spill] sm:$0xff] %v6307_v6 }
 0x117   :  { %1288 = vperm.xlu0 %5423, %v5951_v26  }
 0x118   :  { %v6313_v24 = vpop.permute.xlu1 %1136  ;;  %290 = vperm.xlu1 %5333, %v219_v1   ;;  %v6315_v20 = vpop.permute.xlu0 %876 }
 0x119   :  { %9202 = vst [vmem:[#allocation51_spill] sm:$0xff] %v6313_v24  ;;  %9203 = vst [vmem:[#allocation52_spill] sm:$0xff] %v6315_v20 }
 0x11b   :  { %1220 = vperm.xlu0 %5423, %v6047_v43  }
 0x11c   :  { %5334 = vset.pattern.permute.xlu1 %v9188_v10  ;;  %v6319_v59 = vpop.permute.xlu0 %868 }
 0x11d   :  { %9204 = vst [vmem:[#allocation53_spill] sm:$0xff] %v6319_v59  ;;  %v6321_v23 = vpop.permute.xlu1 %1536  ;;  %668 = vperm.xlu1 %5334, %v6163_v29  }
 0x11f   :  { %5428 = vset.pattern.permute.xlu0 %v9195_v62 }
 0x120   :  { %1472 = vperm.xlu0 %5428, %v5841_v2   ;;  %v6326_v6 = vpop.permute.xlu0 %860 }
 0x121   :  { %9205 = vst [vmem:[#allocation54_spill] sm:$0xff] %v6326_v6  ;;  %v6328_v24 = vpop.permute.xlu1 %1540  ;;  %5335 = vset.pattern.permute.xlu1 %v9192_v61 }
 0x122   :  { %1064 = vperm.xlu1 %5335, %v6015_v37  }
 0x124   :  { %1528 = vperm.xlu0 %5428, %v5869_v8   ;;  %v6333_v1 = vpop.permute.xlu0 %852 }
 0x125   :  { %9206 = vst [vmem:[#allocation55_spill] sm:$0xff] %v6333_v1 }
 0x126   :  { %v6335_v59 = vpop.permute.xlu1 %300  ;;  %5336 = vset.pattern.permute.xlu1 %v9195_v62 }
 0x127   :  { %9207 = vst [vmem:[#allocation56_spill] sm:$0xff] %v6335_v59  ;;  %1464 = vperm.xlu1 %5336, %v5919_v19  }
 0x128   :  { %1520 = vperm.xlu0 %5428, %v5975_v31   ;;  %v6340_v2 = vpop.permute.xlu0 %844 }
 0x129   :  { %9208 = vst [vmem:[#allocation57_spill] sm:$0xff] %v6340_v2 }
 0x12b   :  { %v6342_v6 = vpop.permute.xlu1 %672  ;;  %1468 = vperm.xlu1 %5336, %v5879_v11  }
 0x12c   :  { %9209 = vst [vmem:[#allocation58_spill] sm:$0xff] %v6342_v6  ;;  %1512 = vperm.xlu0 %5428, %v6141_v21   ;;  %v6346_v20 = vpop.permute.xlu0 %836 }
 0x12d   :  { %9210 = vst [vmem:[#allocation59_spill] sm:$0xff] %v6346_v20 }
 0x12f   :  { %5337 = vset.pattern.permute.xlu1 %v9211_v22 }
 0x130   :  { %v6349_v1 = vpop.permute.xlu1 %1072  ;;  %1868 = vperm.xlu1 %5337, %v5853_v4   ;;  %1504 = vperm.xlu0 %5428, %v6270_v7   ;;  %v6353_v59 = vpop.permute.xlu0 %896 }
 0x131   :  { %9212 = vst [vmem:[#allocation60_spill] sm:$0xff] %v6349_v1  ;;  %9213 = vst [vmem:[#allocation61_spill] sm:$0xff] %v6353_v59 }
 0x134   :  { %v6355_v36 = vpop.permute.xlu1 %1076  ;;  %5338 = vset.pattern.permute.xlu1 %v9171_v28  ;;  %1496 = vperm.xlu0 %5428, %v6288_v53   ;;  %v6359_v2 = vpop.permute.xlu0 %832 }
 0x135   :  { %9214 = vst [vmem:[#allocation62_spill] sm:$0xff] %v6355_v36  ;;  %9215 = vst [vmem:[#allocation63_spill] sm:$0xff] %v6359_v2  ;;  %515 = vperm.xlu1 %5338, %v6270_v7  }
 0x138   :  { %1484 = vperm.xlu0 %5428, %v5951_v26  }
 0x139   :  { %v6363_v20 = vpop.permute.xlu1 %1476  ;;  %5339 = vset.pattern.permute.xlu1 %v9174_v13  ;;  %v6366_v4 = vpop.permute.xlu0 %1148 }
 0x13a   :  { %924 = vperm.xlu1 %5339, %v6141_v21  }
 0x13c   :  { %1416 = vperm.xlu0 %5428, %v6047_v43  }
 0x13d   :  { %v6370_v59 = vpop.permute.xlu0 %1084 }
 0x13e   :  { %v6372_v6 = vpop.permute.xlu1 %525  ;;  %928 = vperm.xlu1 %5339, %v5901_v15  }
 0x13f   :  { %9216 = vst [vmem:[#allocation64_spill] sm:$0xff] %v6372_v6 }
 0x140   :  { %5433 = vset.pattern.permute.xlu0 %v9182_v58 }
 0x141   :  { %1736 = vperm.xlu0 %5433, %v5848_v3   ;;  %v6377_v2 = vpop.permute.xlu0 %1140 }
 0x142   :  { %9217 = vst [vmem:[#allocation65_spill] sm:$0xff] %v6377_v2  ;;  %5340 = vset.pattern.permute.xlu1 %v9177_v0 }
 0x143   :  { %v6380_v36 = vpop.permute.xlu1 %932  ;;  %1328 = vperm.xlu1 %5340, %v5991_v33  }
 0x144   :  { %9218 = vst [vmem:[#allocation66_spill] sm:$0xff] %v6380_v36 }
 0x145   :  { %1728 = vperm.xlu0 %5433, %v5896_v14   ;;  %v6384_v43 = vpop.permute.xlu0 %1068 }
 0x146   :  { %9219 = vst [vmem:[#allocation67_spill] sm:$0xff] %v6384_v43 }
 0x147   :  { %v6386_v1 = vpop.permute.xlu1 %936  ;;  %5341 = vset.pattern.permute.xlu1 %v9182_v58 }
 0x148   :  { %9220 = vst [vmem:[#allocation68_spill] sm:$0xff] %v6386_v1  ;;  %1724 = vperm.xlu1 %5341, %v5869_v8  }
 0x149   :  { %1720 = vperm.xlu0 %5433, %v5991_v33   ;;  %v6391_v6 = vpop.permute.xlu0 %1060 }
 0x14a   :  { %9221 = vst [vmem:[#allocation69_spill] sm:$0xff] %v6391_v6 }
 0x14c   :  { %v6393_v2 = vpop.permute.xlu1 %1336  ;;  %5342 = vset.pattern.permute.xlu1 %v9171_v28 }
 0x14d   :  { %9222 = vst [vmem:[#allocation70_spill] sm:$0xff] %v6393_v2  ;;  %435 = vperm.xlu1 %5342, %v6007_v35   ;;  %1712 = vperm.xlu0 %5433, %v5901_v15   ;;  %v6398_v36 = vpop.permute.xlu0 %1052 }
 0x14e   :  { %9223 = vst [vmem:[#allocation71_spill] sm:$0xff] %v6398_v36 }
 0x151   :  { %v6400_v43 = vpop.permute.xlu1 %1732  ;;  %440 = vperm.xlu1 %5342, %v6174_v46   ;;  %1704 = vperm.xlu0 %5433, %v5912_v17   ;;  %v6404_v8 = vpop.permute.xlu0 %1044 }
 0x152   :  { %9224 = vst [vmem:[#allocation72_spill] sm:$0xff] %v6404_v8 }
 0x155   :  { %5343 = vset.pattern.permute.xlu1 %v9174_v13  ;;  %1692 = vperm.xlu0 %5433, %v6288_v53   ;;  %v6408_v6 = vpop.permute.xlu0 %1036 }
 0x156   :  { %9225 = vst [vmem:[#allocation73_spill] sm:$0xff] %v6408_v6  ;;  %v6410_v1 = vpop.permute.xlu1 %445  ;;  %864 = vperm.xlu1 %5343, %v6163_v29  }
 0x157   :  { %9226 = vst [vmem:[#allocation74_spill] sm:$0xff] %v6410_v1 }
 0x159   :  { %1628 = vperm.xlu0 %5433, %v6022_v38   ;;  %v6414_v36 = vpop.permute.xlu0 %1092 }
 0x15a   :  { %9227 = vst [vmem:[#allocation75_spill] sm:$0xff] %v6414_v36  ;;  %v6416_v2 = vpop.permute.xlu1 %450  ;;  %5344 = vset.pattern.permute.xlu1 %v9177_v0 }
 0x15b   :  { %9228 = vst [vmem:[#allocation76_spill] sm:$0xff] %v6416_v2  ;;  %1260 = vperm.xlu1 %5344, %v6015_v37  }
 0x15d   :  { %1620 = vperm.xlu0 %5433, %v6031_v39   ;;  %v6421_v8 = vpop.permute.xlu0 %1028 }
 0x15e   :  { %9229 = vst [vmem:[#allocation77_spill] sm:$0xff] %v6421_v8  ;;  %v233_v8 = vld [vmem:[%s9052_s5 + $0xb8] sm:$0xff] }
 0x15f   :  { %v6423_v25 = vpop.permute.xlu1 %872  ;;  %5345 = vset.pattern.permute.xlu1 %v9182_v58 }
 0x160   :  { %9230 = vst [vmem:[#allocation78_spill] sm:$0xff] %v6423_v25  ;;  %1660 = vperm.xlu1 %5345, %v5919_v19  }
 0x161   :  { %1680 = vperm.xlu0 %5433, %v5951_v26   ;;  %v5683_v26 = vld [vmem:[%s9048_s1 + $0x70] sm:$0xff] }
 0x162   :  { %v6428_v6 = vpop.permute.xlu0 %1344 }
 0x164   :  { %v6430_v36 = vpop.permute.xlu1 %1268  ;;  %1664 = vperm.xlu1 %5345, %v5879_v11  }
 0x165   :  { %9231 = vst [vmem:[#allocation79_spill] sm:$0xff] %v6430_v36  ;;  %5437 = vset.pattern.permute.xlu0 %v9211_v22 }
 0x166   :  { %1932 = vperm.xlu0 %5437, %v5848_v3   ;;  %v6435_v2 = vpop.permute.xlu0 %1280 }
 0x168   :  { %5346 = vset.pattern.permute.xlu1 %v9171_v28 }
 0x169   :  { %v6441_v1 = vpop.permute.xlu1 %1668  ;;  %360 = vperm.xlu1 %5346, %v233_v8  }
 0x16a   :  { %1864 = vperm.xlu0 %5437, %v5683_v26   ;;  %v6446_v11 = vpop.permute.xlu0 %1332 }
 0x16b   :  { %9232 = vst [vmem:[#allocation80_spill] sm:$0xff] %v6446_v11 }
 0x16d   :  { %v6448_v25 = vpop.permute.xlu1 %1672  ;;  %5347 = vset.pattern.permute.xlu1 %v9188_v10 }
 0x16e   :  { %720 = vperm.xlu1 %5347, %v6270_v7   ;;  %1924 = vperm.xlu0 %5437, %v5896_v14   ;;  %v6453_v3 = vpop.permute.xlu0 %1272 }
 0x16f   :  { %9233 = vst [vmem:[#allocation81_spill] sm:$0xff] %v6453_v3 }
 0x172   :  { %v6455_v36 = vpop.permute.xlu1 %370  ;;  %5348 = vset.pattern.permute.xlu1 %v9192_v61  ;;  %1856 = vperm.xlu0 %5437, %v5919_v19   ;;  %v6459_v8 = vpop.permute.xlu0 %1324 }
 0x173   :  { %9234 = vst [vmem:[#allocation82_spill] sm:$0xff] %v6455_v36  ;;  %9235 = vst [vmem:[#allocation83_spill] sm:$0xff] %v6459_v8  ;;  %1120 = vperm.xlu1 %5348, %v6141_v21  }
 0x176   :  { %v6462_v26 = vpop.permute.xlu0 %1264  ;;  %1916 = vperm.xlu0 %5437, %v5991_v33  }
 0x177   :  { %9236 = vst [vmem:[#allocation84_spill] sm:$0xff] %v6462_v26  ;;  %v6465_v29 = vpop.permute.xlu1 %728  ;;  %1124 = vperm.xlu1 %5348, %v5901_v15  }
 0x178   :  { %9237 = vst [vmem:[#allocation85_spill] sm:$0xff] %v6465_v29 }
 0x17a   :  { %v6468_v14 = vpop.permute.xlu0 %1316  ;;  %1848 = vperm.xlu0 %5437, %v6015_v37  }
 0x17b   :  { %9238 = vst [vmem:[#allocation86_spill] sm:$0xff] %v6468_v14  ;;  %5349 = vset.pattern.permute.xlu1 %v9195_v62  ;;  %v5684_v14 = vld [vmem:[%s9048_s1 + $0xe0] sm:$0xff] }
 0x17c   :  { %v6472_v36 = vpop.permute.xlu1 %1128  ;;  %1524 = vperm.xlu1 %5349, %v5991_v33   ;;  %v6490_v33 = vld [vmem:[%s9052_s5 + $0x30] sm:$0xff] }
 0x17d   :  { %9239 = vst [vmem:[#allocation87_spill] sm:$0xff] %v6472_v36  ;;  %9243 = vst [vmem:[#allocation91_spill] sm:$0xff] %v6490_v33 }
 0x17e   :  { %v6475_v19 = vpop.permute.xlu0 %1256  ;;  %1908 = vperm.xlu0 %5437, %v5901_v15  }
 0x17f   :  { %9240 = vst [vmem:[#allocation88_spill] sm:$0xff] %v6475_v19 }
 0x180   :  { %v6478_v21 = vpop.permute.xlu1 %1132  ;;  %5350 = vset.pattern.permute.xlu1 %v9211_v22 }
 0x181   :  { %9241 = vst [vmem:[#allocation89_spill] sm:$0xff] %v6478_v21  ;;  %1920 = vperm.xlu1 %5350, %v5684_v14   ;;  %v217_v14 = vld [vmem:[%s9052_s5 + $0x38] sm:$0xff] }
 0x182   :  { %v6484_v29 = vpop.permute.xlu0 %1308  ;;  %1840 = vperm.xlu0 %5437, %v5998_v34  }
 0x183   :  { %9242 = vst [vmem:[#allocation90_spill] sm:$0xff] %v6484_v29 }
 0x185   :  { %v6492_v19 = vpop.permute.xlu1 %1532  ;;  %5351 = vset.pattern.permute.xlu1 %v9171_v28 }
 0x186   :  { %9244 = vst [vmem:[#allocation92_spill] sm:$0xff] %v6492_v19  ;;  %275 = vperm.xlu1 %5351, %v6490_v33   ;;  %v6496_v15 = vpop.permute.xlu0 %1248  ;;  %1900 = vperm.xlu0 %5437, %v5912_v17  }
 0x187   :  { %9245 = vst [vmem:[#allocation93_spill] sm:$0xff] %v6496_v15 }
 0x18a   :  { %v6502_v29 = vpop.permute.xlu1 %1928  ;;  %280 = vperm.xlu1 %5351, %v217_v14   ;;  %v6504_v26 = vpop.permute.xlu0 %1300  ;;  %1832 = vperm.xlu0 %5437, %v6007_v35  }
 0x18b   :  { %9246 = vst [vmem:[#allocation94_spill] sm:$0xff] %v6504_v26 }
 0x18e   :  { %5352 = vset.pattern.permute.xlu1 %v9188_v10  ;;  %v6508_v8 = vpop.permute.xlu0 %1240  ;;  %1888 = vperm.xlu0 %5437, %v6288_v53  }
 0x18f   :  { %9247 = vst [vmem:[#allocation95_spill] sm:$0xff] %v6508_v8  ;;  %v6511_v15 = vpop.permute.xlu1 %285  ;;  %660 = vperm.xlu1 %5352, %v6174_v46  }
 0x190   :  { %9248 = vst [vmem:[#allocation96_spill] sm:$0xff] %v6511_v15 }
 0x192   :  { %v6514_v36 = vpop.permute.xlu0 %1288  ;;  %1824 = vperm.xlu0 %5437, %v6022_v38  }
 0x193   :  { %9249 = vst [vmem:[#allocation97_spill] sm:$0xff] %v6514_v36  ;;  %v6517_v21 = vpop.permute.xlu1 %290  ;;  %5353 = vset.pattern.permute.xlu1 %v9192_v61 }
 0x194   :  { %9250 = vst [vmem:[#allocation98_spill] sm:$0xff] %v6517_v21  ;;  %1056 = vperm.xlu1 %5353, %v5998_v34  }
 0x196   :  { %v6521_v35 = vpop.permute.xlu0 %1220  ;;  %1816 = vperm.xlu0 %5437, %v6031_v39   ;;  %v5685_v39 = vld [vmem:[%s9048_s1 + $0x68] sm:$0xff] }
 0x197   :  { %9251 = vst [vmem:[#allocation99_spill] sm:$0xff] %v6521_v35 }
 0x198   :  { %v6524_v14 = vpop.permute.xlu1 %668  ;;  %5354 = vset.pattern.permute.xlu1 %v9195_v62 }
 0x199   :  { %9252 = vst [vmem:[#allocation100_spill] sm:$0xff] %v6524_v14  ;;  %1456 = vperm.xlu1 %5354, %v6015_v37  }
 0x19b   :  { %v6528_v8 = vpop.permute.xlu0 %1472 }
 0x19d   :  { %v6530_v36 = vpop.permute.xlu1 %1064  ;;  %1460 = vperm.xlu1 %5354, %v5983_v32  }
 0x19e   :  { %9253 = vst [vmem:[#allocation101_spill] sm:$0xff] %v6530_v36 }
 0x19f   :  { %v6533_v26 = vpop.permute.xlu0 %1528 }
 0x1a0   :  { %9254 = vst [vmem:[#allocation102_spill] sm:$0xff] %v6533_v26 }
 0x1a1   :  { %5355 = vset.pattern.permute.xlu1 %v9211_v22 }
 0x1a2   :  { %v6536_v21 = vpop.permute.xlu1 %1464  ;;  %1860 = vperm.xlu1 %5355, %v5685_v39  }
 0x1a3   :  { %9255 = vst [vmem:[#allocation103_spill] sm:$0xff] %v6536_v21  ;;  %v6541_v35 = vpop.permute.xlu0 %1520 }
 0x1a4   :  { %9256 = vst [vmem:[#allocation104_spill] sm:$0xff] %v6541_v35 }
 0x1a6   :  { %v6543_v14 = vpop.permute.xlu1 %1468  ;;  %5356 = vset.pattern.permute.xlu1 %v9171_v28 }
 0x1a7   :  { %9257 = vst [vmem:[#allocation105_spill] sm:$0xff] %v6543_v14  ;;  %505 = vperm.xlu1 %5356, %v6288_v53   ;;  %v6547_v15 = vpop.permute.xlu0 %1512 }
 0x1a8   :  { %9258 = vst [vmem:[#allocation106_spill] sm:$0xff] %v6547_v15  ;;  %v6568_v15 = vld [vmem:[%s9048_s1 + $0xc8] sm:$0xff] }
 0x1ab   :  { %v6549_v36 = vpop.permute.xlu1 %1868  ;;  %5357 = vset.pattern.permute.xlu1 %v9174_v13  ;;  %v6552_v33 = vpop.permute.xlu0 %1504 }
 0x1ac   :  { %9259 = vst [vmem:[#allocation107_spill] sm:$0xff] %v6552_v33  ;;  %916 = vperm.xlu1 %5357, %v6270_v7   ;;  %v563_v33 = vlaneseq }
 0x1af   :  { %v6555_v3 = vpop.permute.xlu0 %1496 }
 0x1b0   :  { %9260 = vst [vmem:[#allocation108_spill] sm:$0xff] %v6555_v3  ;;  %v6557_v39 = vpop.permute.xlu1 %515  ;;  %920 = vperm.xlu1 %5357, %v5912_v17   ;;  %v6577_v17 = vshrl.u32 %v563_v33, 7 }
 0x1b1   :  { %9261 = vst [vmem:[#allocation109_spill] sm:$0xff] %v6557_v39 }
 0x1b2   :  { %9266 = vst [vmem:[#allocation114_spill] sm:$0xff] %v6577_v17  ;;  %v761_v33 = vsub.s32 1, %v6577_v17  ;;  %v957_v19 = vsub.s32 2, %v6577_v17 }
 0x1b3   :  { %v6560_v35 = vpop.permute.xlu0 %1484 }
 0x1b4   :  { %9262 = vst [vmem:[#allocation110_spill] sm:$0xff] %v6560_v35  ;;  %5358 = vset.pattern.permute.xlu1 %v9177_v0 }
 0x1b5   :  { %v6563_v14 = vpop.permute.xlu1 %924  ;;  %1320 = vperm.xlu1 %5358, %v6568_v15  }
 0x1b6   :  { %9263 = vst [vmem:[#allocation111_spill] sm:$0xff] %v6563_v14  ;;  %v6585_v14 = vsub.s32 0, %v6577_v17 }
 0x1b7   :  { %v6571_v21 = vpop.permute.xlu0 %1416 }
 0x1b8   :  { %9264 = vst [vmem:[#allocation112_spill] sm:$0xff] %v6571_v21  ;;  %9268 = vst [vmem:[#allocation116_spill] sm:$0xff] %v6585_v14  ;;  %v41_v21 = vld [vmem:[%s9047_s0] sm:$0xff] }
 0x1b9   :  { %v6573_v3 = vpop.permute.xlu1 %928  ;;  %5359 = vset.pattern.permute.xlu1 %v9182_v58  ;;  %v6604_v11 = vrot.slane %v41_v21, %v761_v33 }
 0x1ba   :  { %9265 = vst [vmem:[#allocation113_spill] sm:$0xff] %v6573_v3  ;;  %1716 = vperm.xlu1 %5359, %v5975_v31   ;;  %v6594_v31 = vrot.slane %v41_v21, %v6585_v14 }
 0x1bc   :  { %v6579_v35 = vpop.permute.xlu0 %1736 }
 0x1be   :  { %v6581_v39 = vpop.permute.xlu1 %1328  ;;  %5360 = vset.pattern.permute.xlu1 %v9171_v28 }
 0x1bf   :  { %9267 = vst [vmem:[#allocation115_spill] sm:$0xff] %v6581_v39  ;;  %425 = vperm.xlu1 %5360, %v6022_v38   ;;  %v597_v38 = vmul.f32 %v6594_v31, %v6035_v40  ;;  %v1153_v40 = vsub.s32 3, %v6577_v17 }
 0x1c0   :  { %v6591_v3 = vpop.permute.xlu0 %1728 }
 0x1c1   :  { %9269 = vst [vmem:[#allocation117_spill] sm:$0xff] %v6591_v3 }
 0x1c3   :  { %v6597_v26 = vpop.permute.xlu1 %1724  ;;  %430 = vperm.xlu1 %5360, %v6186_v27   ;;  %v6616_v27 = vrot.slane %v41_v21, %v957_v19  ;;  %v1545_v19 = vsub.s32 5, %v6577_v17 }
 0x1c4   :  { %9270 = vst [vmem:[#allocation118_spill] sm:$0xff] %v6597_v26  ;;  %v6600_v39 = vpop.permute.xlu0 %1720  ;;  %v629_v26 = vadd.f32 %v597_v38, %v6058_v47  ;;  %v6627_v47 = vrot.slane %v41_v21, %v1153_v40  ;;  %v598_v38 = vmul.f32 %v6594_v31, %v6049_v44  ;;  %v794_v44 = vmul.f32 %v6604_v11, %v6066_v50 }
 0x1c5   :  { %9271 = vst [vmem:[#allocation119_spill] sm:$0xff] %v6600_v39  ;;  %v793_v39 = vmul.f32 %v6604_v11, %v6181_v55  ;;  %v6630_v55 = vsub.s32 4, %v6577_v17  ;;  %v990_v50 = vmul.f32 %v6616_v27, %v6105_v63 }
 0x1c7   :  { %5361 = vset.pattern.permute.xlu1 %v9174_v13  ;;  %9275 = vst [vmem:[#allocation123_spill] sm:$0xff] %v6630_v55 }
 0x1c8   :  { %v6608_v3 = vpop.permute.xlu1 %435  ;;  %856 = vperm.xlu1 %5361, %v6174_v46   ;;  %v6611_v14 = vpop.permute.xlu0 %1712  ;;  %v989_v46 = vmul.f32 %v6616_v27, %v6295_v42 }
 0x1c9   :  { %9272 = vst [vmem:[#allocation120_spill] sm:$0xff] %v6608_v3  ;;  %v825_v3 = vadd.f32 %v793_v39, %v629_v26  ;;  %v778_v26 = vmul.f32 %v6604_v11, %v6087_v57  ;;  %v1185_v57 = vmul.f32 %v6627_v47, %v6165_v30  ;;  %v1170_v30 = vmul.f32 %v6627_v47, %v6370_v59 }
 0x1cb   :  { %v1021_v42 = vadd.f32 %v989_v46, %v825_v3  ;;  %v6654_v3 = vrot.slane %v41_v21, %v6630_v55  ;;  %v6656_v46 = vrot.slane %v41_v21, %v1545_v19 }
 0x1cc   :  { %v6619_v33 = vpop.permute.xlu1 %440  ;;  %5362 = vset.pattern.permute.xlu1 %v9177_v0  ;;  %v6622_v13 = vpop.permute.xlu0 %1704 }
 0x1cd   :  { %9273 = vst [vmem:[#allocation121_spill] sm:$0xff] %v6619_v33  ;;  %9274 = vst [vmem:[#allocation122_spill] sm:$0xff] %v6622_v13  ;;  %1252 = vperm.xlu1 %5362, %v5998_v34   ;;  %v582_v33 = vmul.f32 %v6594_v31, %v6051_v45  ;;  %v1741_v34 = vsub.s32 6, %v6577_v17  ;;  %v974_v45 = vmul.f32 %v6616_v27, %v6130_v16 }
 0x1ce   :  { %v1217_v16 = vadd.f32 %v1185_v57, %v1021_v42  ;;  %v1577_v59 = vmul.f32 %v6656_v46, %v6321_v23 }
 0x1cf   :  { %v614_v13 = vadd.f32 %v582_v33, %v6064_v49  ;;  %v630_v49 = vadd.f32 %v598_v38, %v6060_v48  ;;  %v6668_v55 = vrot.slane %v41_v21, %v1741_v34  ;;  %v1366_v38 = vmul.f32 %v6654_v3, %v6435_v2 }
 0x1d0   :  { %v6639_v39 = vpop.permute.xlu0 %1692 }
 0x1d1   :  { %9276 = vst [vmem:[#allocation124_spill] sm:$0xff] %v6639_v39  ;;  %v6642_v40 = vpop.permute.xlu1 %864  ;;  %5363 = vset.pattern.permute.xlu1 %v9182_v58  ;;  %v1937_v39 = vsub.s32 7, %v6577_v17  ;;  %v810_v33 = vadd.f32 %v778_v26, %v614_v13  ;;  %v826_v19 = vadd.f32 %v794_v44, %v630_v49  ;;  %v777_v17 = vmul.f32 %v6604_v11, %v6080_v54 }
 0x1d2   :  { %9277 = vst [vmem:[#allocation125_spill] sm:$0xff] %v6642_v40  ;;  %1652 = vperm.xlu1 %5363, %v6015_v37   ;;  %v581_v37 = vmul.f32 %v6594_v31, %v6037_v41  ;;  %v1186_v13 = vmul.f32 %v6627_v47, %v6366_v4  ;;  %v1381_v41 = vmul.f32 %v6654_v3, %v6235_v5  ;;  %v6695_v5 = vld [vmem:[%s9052_s5 + $0xa8] sm:$0xff] }
 0x1d3   :  { %v1006_v48 = vadd.f32 %v974_v45, %v810_v33  ;;  %v6683_v26 = vrot.slane %v41_v21, %v1937_v39  ;;  %v1022_v42 = vadd.f32 %v990_v50, %v826_v19  ;;  %v973_v4 = vmul.f32 %v6616_v27, %v6124_v12 }
 0x1d4   :  { %v6662_v40 = vpop.permute.xlu0 %1628  ;;  %v613_v54 = vadd.f32 %v581_v37, %v6073_v52  ;;  %v1413_v23 = vadd.f32 %v1381_v41, %v1217_v16  ;;  %v1773_v21 = vmul.f32 %v6668_v55, %v6400_v43  ;;  %v1169_v39 = vmul.f32 %v6627_v47, %v6205_v18 }
 0x1d5   :  { %9278 = vst [vmem:[#allocation126_spill] sm:$0xff] %v6662_v40  ;;  %v1202_v2 = vadd.f32 %v1170_v30, %v1006_v48  ;;  %v1218_v12 = vadd.f32 %v1186_v13, %v1022_v42  ;;  %v1969_v45 = vmul.f32 %v6683_v26, %v6502_v29  ;;  %v1365_v43 = vmul.f32 %v6654_v3, %v6272_v9 }
 0x1d6   :  { %v6674_v63 = vpop.permute.xlu1 %1260  ;;  %1656 = vperm.xlu1 %5363, %v5983_v32   ;;  %v1382_v32 = vmul.f32 %v6654_v3, %v6428_v6  ;;  %v809_v52 = vadd.f32 %v777_v17, %v613_v54  ;;  %v1609_v6 = vadd.f32 %v1577_v59, %v1413_v23  ;;  %v1562_v18 = vmul.f32 %v6656_v46, %v6363_v20 }
 0x1d7   :  { %v1398_v44 = vadd.f32 %v1366_v38, %v1202_v2  ;;  %v1758_v37 = vmul.f32 %v6668_v55, %v6448_v25  ;;  %v1578_v29 = vmul.f32 %v6656_v46, %v6328_v24  ;;  %v1561_v30 = vmul.f32 %v6656_v46, %v6528_v8 }
 0x1d8   :  { %v6690_v34 = vpop.permute.xlu0 %1620  ;;  %v1005_v49 = vadd.f32 %v973_v4, %v809_v52  ;;  %v1414_v17 = vadd.f32 %v1382_v32, %v1218_v12  ;;  %v1805_v50 = vadd.f32 %v1773_v21, %v1609_v6  ;;  %v1774_v9 = vmul.f32 %v6668_v55, %v6579_v35 }
 0x1d9   :  { %9279 = vst [vmem:[#allocation127_spill] sm:$0xff] %v6690_v34  ;;  %v1594_v19 = vadd.f32 %v1562_v18, %v1398_v44  ;;  %v1954_v13 = vmul.f32 %v6683_v26, %v6549_v36  ;;  %v1757_v4 = vmul.f32 %v6668_v55, %v6441_v1  ;;  %v595_v23 = vmul.f32 %v6594_v31, %v6071_v51 }
 0x1da   :  { %5364 = vset.pattern.permute.xlu1 %v9171_v28  ;;  %v1201_v16 = vadd.f32 %v1169_v39, %v1005_v49  ;;  %v2001_v48 = vadd.f32 %v1969_v45, %v1805_v50  ;;  %v1610_v41 = vadd.f32 %v1578_v29, %v1414_v17  ;;  %v9083_v6 = vmov 0.2   ;;  %v9284_v29 = vld [vmem:[#allocation18_spill] sm:$0xff] }
 0x1db   :  { %v6704_v57 = vpop.permute.xlu1 %1660  ;;  %350 = vperm.xlu1 %5364, %v6695_v5   ;;  %v1790_v24 = vadd.f32 %v1758_v37, %v1594_v19  ;;  %v627_v50 = vadd.f32 %v595_v23, %v6085_v56  ;;  %v596_v37 = vmul.f32 %v6594_v31, %v6097_v60  ;;  %v9287_v60 = vld [vmem:[#allocation15_spill] sm:$0xff] }
 0x1dc   :  { %v6709_v33 = vpop.permute.xlu0 %1680  ;;  %v1397_v25 = vadd.f32 %v1365_v43, %v1201_v16  ;;  %v1806_v8 = vadd.f32 %v1774_v9, %v1610_v41  ;;  %v2065_v42 = vmul.f32 0.2, %v2001_v48  ;;  %vm2033_vm0 = vcmp.gt.f32.partialorder %v2001_v48, 0.0  ;;  %v9285_v9 = vld [vmem:[#allocation25_spill] sm:$0xff] }
 0x1dd   :  { %9280 = vst [vmem:[#allocation128_spill] sm:$0xff] %v6709_v33  ;;  %v1986_v35 = vadd.f32 %v1954_v13, %v1790_v24  ;;  %v2129_v1 = vsel %vm2033_vm0, 1.0, %v9083_v6  ;;  %v791_v19 = vmul.f32 %v6604_v11, %v9285_v9  ;;  %v628_v24 = vadd.f32 %v596_v37, %v9287_v60 }
 0x1de   :  { %v1593_v38 = vadd.f32 %v1561_v30, %v1397_v25  ;;  %v2097_v12 = vsel %vm2033_vm0, %v2001_v48, %v2065_v42  ;;  %v792_v30 = vmul.f32 %v6604_v11, %v9284_v29 }
 0x1df   :  { %v6723_v20 = vpop.permute.xlu1 %1664  ;;  %5365 = vset.pattern.permute.xlu1 %v9188_v10  ;;  %vm2018_vm2 = vcmp.gt.f32.partialorder %v1986_v35, 0.0  ;;  %v2050_v51 = vmul.f32 0.2, %v1986_v35 }
 0x1e0   :  { %712 = vperm.xlu1 %5365, %v6288_v53   ;;  %v1789_v21 = vadd.f32 %v1757_v4, %v1593_v38  ;;  %v2114_v13 = vsel %vm2018_vm2, 1.0, %v9083_v6  ;;  %v824_v42 = vadd.f32 %v792_v30, %v628_v24  ;;  %v823_v4 = vadd.f32 %v791_v19, %v627_v50  ;;  %v9295_v30 = vld [vmem:[#allocation117_spill] sm:$0xff] }
 0x1e1   :  { %v1933_v59 = vpop.permute.xlu0 %1932  ;;  %v2082_v56 = vsel %vm2018_vm2, %v1986_v35, %v2050_v51  ;;  %v9290_v35 = vld [vmem:[#allocation65_spill] sm:$0xff]  ;;  %v1772_v9 = vmul.f32 %v6668_v55, %v9295_v30 }
 0x1e2   :  { %v1970_v54 = vmul.f32 %v6683_v26, %v1933_v59  ;;  %v9288_v59 = vld [vmem:[#allocation34_spill] sm:$0xff]  ;;  %v6792_v19 = vld [vmem:[%s9052_s5 + $0x20] sm:$0xff] }
 0x1e3   :  { %v988_v38 = vmul.f32 %v6616_v27, %v9288_v59 }
 0x1e4   :  { %v2002_v36 = vadd.f32 %v1970_v54, %v1806_v8  ;;  %v6730_v32 = vpop.permute.xlu1 %360  ;;  %5366 = vset.pattern.permute.xlu1 %v9192_v61 }
 0x1e5   :  { %9281 = vst [vmem:[#allocation129_spill] sm:$0xff] %v6730_v32  ;;  %1112 = vperm.xlu1 %5366, %v6270_v7   ;;  %v1865_v2 = vpop.permute.xlu0 %1864  ;;  %v6746_v7 = vld [vmem:[%s9048_s1 + $0xb8] sm:$0xff] }
 0x1e6   :  { %v1953_v52 = vmul.f32 %v6683_v26, %v1865_v2  ;;  %vm2034_vm1 = vcmp.gt.f32.partialorder %v2002_v36, 0.0  ;;  %v2066_v39 = vmul.f32 0.2, %v2002_v36  ;;  %v1184_v2 = vmul.f32 %v6627_v47, %v9290_v35 }
 0x1e7   :  { %v2130_v44 = vsel %vm2034_vm1, 1.0, %v9083_v6 }
 0x1e8   :  { %v1985_v45 = vadd.f32 %v1953_v52, %v1789_v21  ;;  %v2098_v49 = vsel %vm2034_vm1, %v2002_v36, %v2066_v39  ;;  %v6739_v43 = vpack.c.bf16 %v2130_v44, %v2129_v1  ;;  %v9289_v36 = vld [vmem:[#allocation50_spill] sm:$0xff]  ;;  %v1020_v21 = vadd.f32 %v988_v38, %v824_v42  ;;  %v9292_v44 = vld [vmem:[#allocation51_spill] sm:$0xff] }
 0x1e9   :  { %v6741_v17 = vpop.permute.xlu1 %720  ;;  %1116 = vperm.xlu1 %5366, %v6746_v7   ;;  %v2162_v18 = vpack.c.bf16 %v2098_v49, %v2097_v12  ;;  %v987_v23 = vmul.f32 %v6616_v27, %v9289_v36  ;;  %v9291_v52 = vld [vmem:[#allocation70_spill] sm:$0xff]  ;;  %v9293_v49 = vld [vmem:[#allocation92_spill] sm:$0xff]  ;;  %v1925_v50 = vpop.permute.xlu0 %1924 }
 0x1ea   :  { %9282 = vst [vmem:[#allocation130_spill] sm:$0xff] %v6739_v43  ;;  %9283 = vst [vmem:[#allocation131_spill] sm:$0xff] %v6741_v17  ;;  %vm2017_vm3 = vcmp.gt.f32.partialorder %v1985_v45, 0.0  ;;  %v2049_v16 = vmul.f32 0.2, %v1985_v45  ;;  %v1380_v39 = vmul.f32 %v6654_v3, %v9291_v52  ;;  %v1576_v51 = vmul.f32 %v6656_v46, %v9293_v49  ;;  %v9339_v17 = vld [vmem:[#allocation89_spill] sm:$0xff] }
 0x1eb   :  { %4780 = vmatprep.subr.bf16.mxu0 %v2162_v18  ;;  %v2113_v48 = vsel %vm2017_vm3, 1.0, %v9083_v6  ;;  %v1019_v1 = vadd.f32 %v987_v23, %v823_v4  ;;  %v5688_v18 = vld [vmem:[%s9048_s1 + $0xd0] sm:$0xff]  ;;  %v1968_v60 = vmul.f32 %v6683_v26, %v1925_v50  ;;  %v215_v4 = vld [vmem:[%s9052_s5 + $0x28] sm:$0xff] }
 0x1ec   :  { %v2081_v25 = vsel %vm2017_vm3, %v1985_v45, %v2049_v16  ;;  %v6760_v41 = vpack.c.bf16 %v2114_v13, %v2113_v48  ;;  %v1216_v45 = vadd.f32 %v1184_v2, %v1020_v21  ;;  %v9294_v16 = vld [vmem:[#allocation80_spill] sm:$0xff] }
 0x1ed   :  { %5367 = vset.pattern.permute.xlu1 %v9195_v62  ;;  %v2154_v8 = vpack.c.bf16 %v2082_v56, %v2081_v25  ;;  %v1379_v29 = vmul.f32 %v6654_v3, %v9294_v16  ;;  %v9296_v25 = vld [vmem:[#allocation102_spill] sm:$0xff] }
 0x1ee   :  { %9286 = vst [vmem:[#allocation18_spill] sm:$0xff] %v6760_v41  ;;  %v6766_v54 = vpop.permute.xlu1 %1120  ;;  %1516 = vperm.xlu1 %5367, %v6568_v15   ;;  %v1183_v15 = vmul.f32 %v6627_v47, %v9292_v44  ;;  %v1412_v37 = vadd.f32 %v1380_v39, %v1216_v45  ;;  %v1575_v56 = vmul.f32 %v6656_v46, %v9296_v25  ;;  %v7014_v41 = vld [vmem:[%s9048_s1 + $0x48] sm:$0xff] }
 0x1ef   :  { %4781 = vmatpush3.bf16.msra.mxu0 %v2154_v8  ;;  %v9297_v8 = vld [vmem:[#allocation118_spill] sm:$0xff] }
 0x1f0   :  { %v1215_v48 = vadd.f32 %v1183_v15, %v1019_v1  ;;  %v1608_v13 = vadd.f32 %v1576_v51, %v1412_v37  ;;  %v1771_v42 = vmul.f32 %v6668_v55, %v9297_v8  ;;  %v9299_v15 = vld [vmem:[#allocation23_spill] sm:$0xff]  ;;  %v9306_v8 = vld [vmem:[#allocation22_spill] sm:$0xff] }
 0x1f2   :  { %v6775_v12 = vpop.permute.xlu1 %1124  ;;  %5368 = vset.pattern.permute.xlu1 %v9211_v22  ;;  %v1411_v59 = vadd.f32 %v1379_v29, %v1215_v48  ;;  %v1804_v38 = vadd.f32 %v1772_v9, %v1608_v13  ;;  %v6821_v29 = vld [vmem:[%s9048_s1 + $0x30] sm:$0xff]  ;;  %v6830_v9 = vld [vmem:[%s9048_s1 + $0x80] sm:$0xff]  ;;  %v9303_v13 = vld [vmem:[#allocation10_spill] sm:$0xff] }
 0x1f3   :  { %1912 = vperm.xlu1 %5368, %v5688_v18   ;;  %v6835_v48 = vld [vmem:[%s9048_s1 + $0x40] sm:$0xff]  ;;  %1872 = vperm.xlu0 %5437, %v6830_v9   ;;  %v579_v25 = vmul.f32 %v6594_v31, %v9303_v13  ;;  %v9315_v13 = vld [vmem:[#allocation79_spill] sm:$0xff] }
 0x1f4   :  { %v1607_v36 = vadd.f32 %v1575_v56, %v1411_v59  ;;  %v2000_v23 = vadd.f32 %v1968_v60, %v1804_v38  ;;  %v9304_v56 = vld [vmem:[#allocation27_spill] sm:$0xff]  ;;  %v9305_v59 = vld [vmem:[#allocation5_spill] sm:$0xff] }
 0x1f5   :  { %v775_v60 = vmul.f32 %v6604_v11, %v9304_v56  ;;  %v580_v38 = vmul.f32 %v6594_v31, %v9305_v59  ;;  %v9316_v59 = vld [vmem:[#allocation62_spill] sm:$0xff] }
 0x1f6   :  { %v1803_v2 = vadd.f32 %v1771_v42, %v1607_v36  ;;  %v2064_v52 = vmul.f32 0.2, %v2000_v23  ;;  %vm2032_vm4 = vcmp.gt.f32.partialorder %v2000_v23, 0.0  ;;  %v611_v42 = vadd.f32 %v579_v25, %v9306_v8 }
 0x1f7   :  { %v6797_v24 = vpop.permute.xlu1 %1524  ;;  %5369 = vset.pattern.permute.xlu1 %v9171_v28  ;;  %v2128_v49 = vsel %vm2032_vm4, 1.0, %v9083_v6  ;;  %v1363_v25 = vmul.f32 %v6654_v3, %v9315_v13  ;;  %v1168_v8 = vmul.f32 %v6627_v47, %v9316_v59 }
 0x1f8   :  { %265 = vperm.xlu1 %5369, %v6792_v19   ;;  %v2096_v18 = vsel %vm2032_vm4, %v2000_v23, %v2064_v52  ;;  %v9308_v23 = vld [vmem:[#allocation26_spill] sm:$0xff]  ;;  %v9311_v52 = vld [vmem:[#allocation12_spill] sm:$0xff] }
 0x1f9   :  { %1812 = vperm.xlu0 %5437, %v9311_v52  }
 0x1fc   :  { %v1921_v35 = vpop.permute.xlu1 %1920  ;;  %270 = vperm.xlu1 %5369, %v215_v4   ;;  %v9307_v4 = vld [vmem:[#allocation52_spill] sm:$0xff] }
 0x1fd   :  { %v1967_v21 = vmul.f32 %v6683_v26, %v1921_v35  ;;  %v971_v36 = vmul.f32 %v6616_v27, %v9307_v4  ;;  %v776_v35 = vmul.f32 %v6604_v11, %v9308_v23  ;;  %5440 = vset.pattern.permute.xlu0 %v9188_v10  ;;  %v6875_v23 = vld [vmem:[%s9052_s5 + $0xf8] sm:$0xff] }
 0x1fe   :  { %2288 = vperm.xlu0 %5440, %v6875_v23  }
 0x1ff   :  { %v1999_v39 = vadd.f32 %v1967_v21, %v1803_v2  ;;  %v9310_v21 = vld [vmem:[#allocation20_spill] sm:$0xff] }
 0x200   :  { %5370 = vset.pattern.permute.xlu1 %v9188_v10 }
 0x201   :  { %v2063_v1 = vmul.f32 0.2, %v1999_v39  ;;  %v6808_v44 = vpop.permute.xlu1 %275  ;;  %652 = vperm.xlu1 %5370, %v9299_v15   ;;  %vm2031_vm5 = vcmp.gt.f32.partialorder %v1999_v39, 0.0 }
 0x202   :  { %9298 = vst [vmem:[#allocation25_spill] sm:$0xff] %v6808_v44  ;;  %v2127_v45 = vsel %vm2031_vm5, 1.0, %v9083_v6 }
 0x203   :  { %v2095_v51 = vsel %vm2031_vm5, %v1999_v39, %v2063_v1  ;;  %v6813_v50 = vpack.c.bf16 %v2128_v49, %v2127_v45  ;;  %v807_v39 = vadd.f32 %v775_v60, %v611_v42  ;;  %v9312_v1 = vld [vmem:[#allocation60_spill] sm:$0xff]  ;;  %v9317_v42 = vld [vmem:[#allocation103_spill] sm:$0xff] }
 0x204   :  { %v2161_v37 = vpack.c.bf16 %v2096_v18, %v2095_v51  ;;  %v1167_v15 = vmul.f32 %v6627_v47, %v9312_v1  ;;  %v9313_v45 = vld [vmem:[#allocation24_spill] sm:$0xff]  ;;  %v9314_v51 = vld [vmem:[#allocation42_spill] sm:$0xff]  ;;  %v1559_v4 = vmul.f32 %v6656_v46, %v9317_v42 }
 0x205   :  { %9300 = vst [vmem:[#allocation15_spill] sm:$0xff] %v6813_v50  ;;  %v6815_v16 = vpop.permute.xlu1 %280  ;;  %5371 = vset.pattern.permute.xlu1 %v9192_v61  ;;  %v612_v49 = vadd.f32 %v580_v38, %v9313_v45  ;;  %v972_v18 = vmul.f32 %v6616_v27, %v9314_v51  ;;  %v6885_v45 = vld [vmem:[%s9048_s1 + $0x90] sm:$0xff] }
 0x206   :  { %9301 = vst [vmem:[#allocation34_spill] sm:$0xff] %v6815_v16  ;;  %1048 = vperm.xlu1 %5371, %v6821_v29   ;;  %4782 = vmatprep.subr.bf16.mxu0 %v2161_v37  ;;  %v1003_v37 = vadd.f32 %v971_v36, %v807_v39  ;;  %v5691_v36 = vld [vmem:[%s9048_s1 + $0x58] sm:$0xff]  ;;  %v9318_v39 = vld [vmem:[#allocation81_spill] sm:$0xff]  ;;  %v7005_v50 = vld [vmem:[%s9052_s5 + $0x10] sm:$0xff] }
 0x207   :  { %v808_v56 = vadd.f32 %v776_v35, %v612_v49  ;;  %v1364_v1 = vmul.f32 %v6654_v3, %v9318_v39  ;;  %v9335_v16 = vld [vmem:[#allocation47_spill] sm:$0xff] }
 0x208   :  { %v1199_v60 = vadd.f32 %v1167_v15, %v1003_v37  ;;  %v1755_v15 = vmul.f32 %v6668_v55, %v6704_v57  ;;  %v9319_v37 = vld [vmem:[#allocation105_spill] sm:$0xff] }
 0x209   :  { %v1004_v35 = vadd.f32 %v972_v18, %v808_v56  ;;  %v1560_v13 = vmul.f32 %v6656_v46, %v9319_v37  ;;  %v5693_v57 = vld [vmem:[%s9052_s5 + $0xe0] sm:$0xff] }
 0x20a   :  { %v6824_v30 = vpop.permute.xlu1 %660  ;;  %5372 = vset.pattern.permute.xlu1 %v9195_v62  ;;  %v1395_v52 = vadd.f32 %v1363_v25, %v1199_v60  ;;  %2276 = vperm.xlu0 %5440, %v5693_v57  }
 0x20b   :  { %9302 = vst [vmem:[#allocation50_spill] sm:$0xff] %v6824_v30  ;;  %1448 = vperm.xlu1 %5372, %v6835_v48   ;;  %v1200_v49 = vadd.f32 %v1168_v8, %v1004_v35  ;;  %v1756_v8 = vmul.f32 %v6668_v55, %v6723_v20  ;;  %v9320_v35 = vmov 2   ;;  %v5695_v20 = vld [vmem:[%s9052_s5 + $0xd0] sm:$0xff]  ;;  %v9336_v30 = vld [vmem:[#allocation68_spill] sm:$0xff] }
 0x20c   :  { %v1591_v51 = vadd.f32 %v1559_v4, %v1395_v52  ;;  %v6902_v4 = vld [vmem:[%s9052_s5 + $0x60] sm:$0xff]  ;;  %v986_v44 = vmul.f32 %v6616_v27, %v9336_v30 }
 0x20d   :  { %v1396_v25 = vadd.f32 %v1364_v1, %v1200_v49 }
 0x20e   :  { %v1787_v59 = vadd.f32 %v1755_v15, %v1591_v51  ;;  %2212 = vperm.xlu0 %5440, %v6902_v4   ;;  %v6916_v51 = vld [vmem:[%s9048_s1 + $0xa8] sm:$0xff] }
 0x20f   :  { %v6850_v2 = vpop.permute.xlu1 %1056  ;;  %1452 = vperm.xlu1 %5372, %v9310_v21   ;;  %v1857_v21 = vpop.permute.xlu0 %1856  ;;  %v1592_v60 = vadd.f32 %v1560_v13, %v1396_v25  ;;  %v6924_v25 = vld [vmem:[%s9052_s5 + $0x50] sm:$0xff] }
 0x210   :  { %9309 = vst [vmem:[#allocation65_spill] sm:$0xff] %v6850_v2  ;;  %v1951_v18 = vmul.f32 %v6683_v26, %v1857_v21 }
 0x211   :  { %v1788_v21 = vadd.f32 %v1756_v8, %v1592_v60 }
 0x212   :  { %v1983_v42 = vadd.f32 %v1951_v18, %v1787_v59  ;;  %2268 = vperm.xlu0 %5440, %v5695_v20   ;;  %v6961_v20 = vld [vmem:[%s9048_s1 + $0x10] sm:$0xff] }
 0x213   :  { %5373 = vset.pattern.permute.xlu1 %v9211_v22 }
 0x214   :  { %v6867_v38 = vpop.permute.xlu1 %1456  ;;  %1852 = vperm.xlu1 %5373, %v5691_v36   ;;  %v2047_v39 = vmul.f32 0.2, %v1983_v42  ;;  %vm2015_vm6 = vcmp.gt.f32.partialorder %v1983_v42, 0.0 }
 0x215   :  { %v2111_v37 = vsel %vm2015_vm6, 1.0, %v9083_v6 }
 0x216   :  { %v2079_v18 = vsel %vm2015_vm6, %v1983_v42, %v2047_v39  ;;  %2204 = vperm.xlu0 %5440, %v6924_v25   ;;  %v6936_v42 = vld [vmem:[%s9052_s5 + $0xc0] sm:$0xff] }
 0x218   :  { %v6890_v56 = vpop.permute.xlu1 %1460  ;;  %5374 = vset.pattern.permute.xlu1 %v9171_v28 }
 0x219   :  { %495 = vperm.xlu1 %5374, %v6885_v45  }
 0x21a   :  { %2260 = vperm.xlu0 %5440, %v6936_v42  }
 0x21d   :  { %v1861_v36 = vpop.permute.xlu1 %1860  ;;  %5375 = vset.pattern.permute.xlu1 %v9320_v35 }
 0x21e   :  { %v1952_v52 = vmul.f32 %v6683_v26, %v1861_v36  ;;  %908 = vperm.xlu1 %5375, %v6288_v53  }
 0x220   :  { %v1984_v1 = vadd.f32 %v1952_v52, %v1788_v21  ;;  %v6945_v21 = vld [vmem:[%s9048_s1 + $0xc0] sm:$0xff]  ;;  %v9325_v52 = vld [vmem:[#allocation48_spill] sm:$0xff] }
 0x221   :  { %2196 = vperm.xlu0 %5440, %v9325_v52  }
 0x222   :  { %v2048_v15 = vmul.f32 0.2, %v1984_v1  ;;  %v6911_v49 = vpop.permute.xlu1 %505  ;;  %912 = vperm.xlu1 %5375, %v6916_v51   ;;  %vm2016_vm7 = vcmp.gt.f32.partialorder %v1984_v1, 0.0 }
 0x223   :  { %9321 = vst [vmem:[#allocation70_spill] sm:$0xff] %v6911_v49  ;;  %v2112_v13 = vsel %vm2016_vm7, 1.0, %v9083_v6  ;;  %v9334_v49 = vld [vmem:[#allocation49_spill] sm:$0xff] }
 0x224   :  { %v2080_v57 = vsel %vm2016_vm7, %v1984_v1, %v2048_v15  ;;  %v6927_v59 = vpack.c.bf16 %v2112_v13, %v2111_v37  ;;  %v6955_v1 = vld [vmem:[%s9052_s5 + $0xb0] sm:$0xff]  ;;  %v6970_v13 = vld [vmem:[%s9048_s1 + $0x18] sm:$0xff] }
 0x225   :  { %v2153_v8 = vpack.c.bf16 %v2080_v57, %v2079_v18  ;;  %2252 = vperm.xlu0 %5440, %v6955_v1   ;;  %v9326_v15 = vld [vmem:[#allocation91_spill] sm:$0xff]  ;;  %v6976_v18 = vld [vmem:[%s9052_s5 + $0xa0] sm:$0xff] }
 0x226   :  { %9322 = vst [vmem:[#allocation51_spill] sm:$0xff] %v6927_v59  ;;  %5376 = vset.pattern.permute.xlu1 %v9177_v0  ;;  %v7020_v59 = vld [vmem:[%s9052_s5 + $0x80] sm:$0xff] }
 0x227   :  { %v6930_v60 = vpop.permute.xlu1 %916  ;;  %1312 = vperm.xlu1 %5376, %v6746_v7   ;;  %4783 = vmatpush3.bf16.msra.mxu0 %v2153_v8  ;;  %v6985_v8 = vld [vmem:[%s9048_s1 + $0x28] sm:$0xff] }
 0x228   :  { %9323 = vst [vmem:[#allocation92_spill] sm:$0xff] %v6930_v60  ;;  %9328 = vst [vmem:[#allocation102_spill] sm:$0xff] %v6985_v8 }
 0x229   :  { %2188 = vperm.xlu0 %5440, %v9326_v15   ;;  %v6996_v15 = vld [vmem:[%s9052_s5 + $0x90] sm:$0xff] }
 0x22b   :  { %v6939_v36 = vpop.permute.xlu1 %920  ;;  %5377 = vset.pattern.permute.xlu1 %v9182_v58 }
 0x22c   :  { %9324 = vst [vmem:[#allocation80_spill] sm:$0xff] %v6939_v36  ;;  %1708 = vperm.xlu1 %5377, %v6945_v21  }
 0x22d   :  { %2244 = vperm.xlu0 %5440, %v6976_v18  }
 0x230   :  { %v6949_v39 = vpop.permute.xlu1 %1320  ;;  %5378 = vset.pattern.permute.xlu1 %v9171_v28 }
 0x231   :  { %415 = vperm.xlu1 %5378, %v6961_v20   ;;  %2180 = vperm.xlu0 %5440, %v6792_v19  }
 0x235   :  { %v6965_v37 = vpop.permute.xlu1 %1716  ;;  %420 = vperm.xlu1 %5378, %v6970_v13   ;;  %2236 = vperm.xlu0 %5440, %v6996_v15  }
 0x239   :  { %5379 = vset.pattern.permute.xlu1 %v9320_v35  ;;  %2172 = vperm.xlu0 %5440, %v7005_v50  }
 0x23a   :  { %v6980_v57 = vpop.permute.xlu1 %425  ;;  %848 = vperm.xlu1 %5379, %v6985_v8  }
 0x23b   :  { %9327 = vst [vmem:[#allocation117_spill] sm:$0xff] %v6980_v57 }
 0x23d   :  { %2228 = vperm.xlu0 %5440, %v7020_v59  }
 0x23e   :  { %v6989_v52 = vpop.permute.xlu1 %430  ;;  %5380 = vset.pattern.permute.xlu1 %v9177_v0 }
 0x23f   :  { %9329 = vst [vmem:[#allocation118_spill] sm:$0xff] %v6989_v52  ;;  %1244 = vperm.xlu1 %5380, %v6821_v29   ;;  %v9333_v52 = vld [vmem:[#allocation32_spill] sm:$0xff] }
 0x240   :  { %v594_v57 = vmul.f32 %v6594_v31, %v9333_v52 }
 0x243   :  { %v6999_v6 = vpop.permute.xlu1 %856  ;;  %5381 = vset.pattern.permute.xlu1 %v9182_v58 }
 0x244   :  { %9330 = vst [vmem:[#allocation23_spill] sm:$0xff] %v6999_v6  ;;  %1644 = vperm.xlu1 %5381, %v6835_v48   ;;  %v229_v48 = vld [vmem:[%s9052_s5 + $0x98] sm:$0xff]  ;;  %v790_v6 = vmul.f32 %v6604_v11, %v9334_v49 }
 0x248   :  { %v7009_v43 = vpop.permute.xlu1 %1252  ;;  %1648 = vperm.xlu1 %5381, %v7014_v41  }
 0x249   :  { %9331 = vst [vmem:[#allocation10_spill] sm:$0xff] %v7009_v43  ;;  %v9342_v43 = vld [vmem:[#allocation115_spill] sm:$0xff] }
 0x24a   :  { %v1378_v8 = vmul.f32 %v6654_v3, %v9342_v43 }
 0x24c   :  { %5382 = vset.pattern.permute.xlu1 %v9171_v28 }
 0x24d   :  { %v7027_v33 = vpop.permute.xlu1 %1652  ;;  %340 = vperm.xlu1 %5382, %v229_v48   ;;  %v626_v48 = vadd.f32 %v594_v57, %v9335_v16  ;;  %v1182_v16 = vmul.f32 %v6627_v47, %v9339_v17  ;;  %v9340_v57 = vld [vmem:[#allocation28_spill] sm:$0xff] }
 0x24e   :  { %v789_v30 = vmul.f32 %v6604_v11, %v9340_v57 }
 0x24f   :  { %v822_v49 = vadd.f32 %v790_v6, %v626_v48  ;;  %v9343_v6 = vld [vmem:[#allocation66_spill] sm:$0xff] }
 0x250   :  { %v985_v17 = vmul.f32 %v6616_v27, %v9343_v6  ;;  %v7088_v6 = vld [vmem:[%s9052_s5 + $0x78] sm:$0xff] }
 0x251   :  { %v7029_v34 = vpop.permute.xlu1 %1656  ;;  %5383 = vset.pattern.permute.xlu1 %v9188_v10  ;;  %v1018_v32 = vadd.f32 %v986_v44, %v822_v49  ;;  %v7074_v44 = vld [vmem:[%s9052_s5 + $0xf0] sm:$0xff]  ;;  %9347 = vst [vmem:[#allocation52_spill] sm:$0xff] %v7088_v6 }
 0x252   :  { %704 = vperm.xlu1 %5383, %v6885_v45   ;;  %9344 = vst [vmem:[#allocation22_spill] sm:$0xff] %v7074_v44 }
 0x253   :  { %v1214_v48 = vadd.f32 %v1182_v16, %v1018_v32  ;;  %v9346_v16 = vld [vmem:[#allocation119_spill] sm:$0xff] }
 0x256   :  { %v7033_v40 = vpop.permute.xlu1 %350  ;;  %5384 = vset.pattern.permute.xlu1 %v9192_v61 }
 0x257   :  { %9332 = vst [vmem:[#allocation27_spill] sm:$0xff] %v7033_v40  ;;  %1104 = vperm.xlu1 %5384, %v6288_v53   ;;  %v7050_v40 = vld [vmem:[%s9052_s5] sm:$0xff]  ;;  %v9338_v53 = vld [vmem:[#allocation30_spill] sm:$0xff] }
 0x258   :  { %2164 = vperm.xlu0 %5440, %v7050_v40   ;;  %v593_v52 = vmul.f32 %v6594_v31, %v9338_v53  ;;  %v1574_v53 = vmul.f32 %v6656_v46, %v6797_v24  ;;  %v1770_v24 = vmul.f32 %v6668_v55, %v9346_v16  ;;  %v213_v16 = vld [vmem:[%s9052_s5 + $0x18] sm:$0xff] }
 0x25b   :  { %v7044_v60 = vpop.permute.xlu1 %712  ;;  %1108 = vperm.xlu1 %5384, %v6916_v51  }
 0x25c   :  { %9337 = vst [vmem:[#allocation5_spill] sm:$0xff] %v7044_v60  ;;  %v9341_v60 = vld [vmem:[#allocation45_spill] sm:$0xff]  ;;  %5441 = vset.pattern.permute.xlu0 %v9320_v35 }
 0x25d   :  { %v625_v36 = vadd.f32 %v593_v52, %v9341_v60  ;;  %2893 = vperm.xlu0 %5441, %v7074_v44   ;;  %v9345_v60 = vld [vmem:[#allocation87_spill] sm:$0xff]  ;;  %v1410_v52 = vadd.f32 %v1378_v8, %v1214_v48  ;;  %v7141_v44 = vld [vmem:[%s9048_s1 + $0x20] sm:$0xff] }
 0x25e   :  { %v9348_v8 = vld [vmem:[#allocation83_spill] sm:$0xff] }
 0x25f   :  { %5385 = vset.pattern.permute.xlu1 %v9195_v62  ;;  %v821_v43 = vadd.f32 %v789_v30, %v625_v36  ;;  %v1606_v57 = vadd.f32 %v1574_v53, %v1410_v52  ;;  %v1917_v36 = vpop.permute.xlu0 %1916  ;;  %v1377_v30 = vmul.f32 %v6654_v3, %v9348_v8 }
 0x260   :  { %v7063_v2 = vpop.permute.xlu1 %1112  ;;  %1508 = vperm.xlu1 %5385, %v6746_v7   ;;  %v1181_v7 = vmul.f32 %v6627_v47, %v9345_v60  ;;  %v9349_v60 = vld [vmem:[#allocation104_spill] sm:$0xff]  ;;  %v1966_v53 = vmul.f32 %v6683_v26, %v1917_v36  ;;  %v7114_v36 = vld [vmem:[%s9052_s5 + $0x68] sm:$0xff] }
 0x261   :  { %v1017_v32 = vadd.f32 %v985_v17, %v821_v43  ;;  %2833 = vperm.xlu0 %5441, %v7088_v6   ;;  %v1573_v17 = vmul.f32 %v6656_v46, %v9349_v60  ;;  %v1802_v43 = vadd.f32 %v1770_v24, %v1606_v57  ;;  %9350 = vst [vmem:[#allocation26_spill] sm:$0xff] %v7114_v36  ;;  %v9355_v6 = vld [vmem:[#allocation37_spill] sm:$0xff] }
 0x263   :  { %v1213_v48 = vadd.f32 %v1181_v7, %v1017_v32  ;;  %v1769_v32 = vmul.f32 %v6668_v55, %v6965_v37  ;;  %v1998_v57 = vadd.f32 %v1966_v53, %v1802_v43 }
 0x264   :  { %v7079_v49 = vpop.permute.xlu1 %1116  ;;  %5386 = vset.pattern.permute.xlu1 %v9211_v22 }
 0x265   :  { %1904 = vperm.xlu1 %5386, %v6945_v21   ;;  %v7102_v21 = vld [vmem:[%s9052_s5 + $0xe8] sm:$0xff]  ;;  %v1409_v7 = vadd.f32 %v1377_v30, %v1213_v48  ;;  %v2062_v48 = vmul.f32 0.2, %v1998_v57  ;;  %vm2030_vm8 = vcmp.gt.f32.partialorder %v1998_v57, 0.0 }
 0x266   :  { %2889 = vperm.xlu0 %5441, %v7102_v21  }
 0x267   :  { %v1605_v24 = vadd.f32 %v1573_v17, %v1409_v7  ;;  %v7121_v17 = vld [vmem:[%s9052_s5 + $0xd8] sm:$0xff]  ;;  %v9352_v7 = vmov 0.2  }
 0x269   :  { %v7096_v52 = vpop.permute.xlu1 %1516  ;;  %5387 = vset.pattern.permute.xlu1 %v9171_v28  ;;  %v1801_v60 = vadd.f32 %v1769_v32, %v1605_v24 }
 0x26a   :  { %255 = vperm.xlu1 %5387, %v7005_v50   ;;  %2825 = vperm.xlu0 %5441, %v7114_v36  }
 0x26e   :  { %v1913_v8 = vpop.permute.xlu1 %1912  ;;  %260 = vperm.xlu1 %5387, %v213_v16   ;;  %2881 = vperm.xlu0 %5441, %v7121_v17   ;;  %v2126_v16 = vsel %vm2030_vm8, 1.0, %v9352_v7 }
 0x26f   :  { %v1965_v30 = vmul.f32 %v6683_v26, %v1913_v8  ;;  %v2094_v8 = vsel %vm2030_vm8, %v1998_v57, %v2062_v48  ;;  %v9357_v48 = vld [vmem:[#allocation6_spill] sm:$0xff] }
 0x271   :  { %v1997_v37 = vadd.f32 %v1965_v30, %v1801_v60 }
 0x272   :  { %5388 = vset.pattern.permute.xlu1 %v9188_v10  ;;  %2869 = vperm.xlu0 %5441, %v6936_v42   ;;  %v9356_v42 = vld [vmem:[#allocation58_spill] sm:$0xff] }
 0x273   :  { %v2061_v43 = vmul.f32 0.2, %v1997_v37  ;;  %v7125_v53 = vpop.permute.xlu1 %265  ;;  %644 = vperm.xlu1 %5388, %v6970_v13   ;;  %vm2029_vm9 = vcmp.gt.f32.partialorder %v1997_v37, 0.0  ;;  %v773_v57 = vmul.f32 %v6604_v11, %v9356_v42  ;;  %v9362_v42 = vld [vmem:[#allocation56_spill] sm:$0xff] }
 0x274   :  { %9351 = vst [vmem:[#allocation20_spill] sm:$0xff] %v7125_v53  ;;  %v2125_v32 = vsel %vm2029_vm9, 1.0, %v9352_v7  ;;  %v577_v53 = vmul.f32 %v6594_v31, %v9355_v6  ;;  %v9359_v6 = vld [vmem:[#allocation39_spill] sm:$0xff] }
 0x275   :  { %v2093_v24 = vsel %vm2029_vm9, %v1997_v37, %v2061_v43  ;;  %v7131_v60 = vpack.c.bf16 %v2126_v16, %v2125_v32  ;;  %v578_v32 = vmul.f32 %v6594_v31, %v9359_v6  ;;  %v9360_v16 = vld [vmem:[#allocation53_spill] sm:$0xff] }
 0x276   :  { %v2160_v30 = vpack.c.bf16 %v2094_v8, %v2093_v24  ;;  %2861 = vperm.xlu0 %5441, %v6955_v1   ;;  %v609_v37 = vadd.f32 %v577_v53, %v9357_v48  ;;  %v969_v24 = vmul.f32 %v6616_v27, %v9360_v16  ;;  %v9361_v8 = vld [vmem:[#allocation29_spill] sm:$0xff] }
 0x277   :  { %9353 = vst [vmem:[#allocation12_spill] sm:$0xff] %v7131_v60  ;;  %v7133_v36 = vpop.permute.xlu1 %270  ;;  %5389 = vset.pattern.permute.xlu1 %v9192_v61  ;;  %v610_v53 = vadd.f32 %v578_v32, %v9362_v42  ;;  %v9363_v48 = vld [vmem:[#allocation101_spill] sm:$0xff] }
 0x278   :  { %9354 = vst [vmem:[#allocation60_spill] sm:$0xff] %v7133_v36  ;;  %1040 = vperm.xlu1 %5389, %v7141_v44   ;;  %4784 = vmatprep.subr.bf16.mxu0 %v2160_v30  ;;  %v805_v1 = vadd.f32 %v773_v57, %v609_v37  ;;  %v774_v30 = vmul.f32 %v6604_v11, %v9361_v8  ;;  %v9364_v36 = vld [vmem:[#allocation78_spill] sm:$0xff]  ;;  %v9366_v8 = vld [vmem:[#allocation67_spill] sm:$0xff] }
 0x279   :  { %v1165_v60 = vmul.f32 %v6627_v47, %v9363_v48  ;;  %v1361_v37 = vmul.f32 %v6654_v3, %v6674_v63  ;;  %v1166_v42 = vmul.f32 %v6627_v47, %v9366_v8  ;;  %v1849_v63 = vpop.permute.xlu0 %1848 }
 0x27a   :  { %2853 = vperm.xlu0 %5441, %v6976_v18   ;;  %v7169_v18 = vld [vmem:[%s9048_s1 + $0x38] sm:$0xff]  ;;  %v1001_v57 = vadd.f32 %v969_v24, %v805_v1  ;;  %v806_v32 = vadd.f32 %v774_v30, %v610_v53  ;;  %v1753_v24 = vmul.f32 %v6668_v55, %v7027_v33 }
 0x27c   :  { %v7148_v43 = vpop.permute.xlu1 %652  ;;  %5390 = vset.pattern.permute.xlu1 %v9195_v62  ;;  %v1197_v16 = vadd.f32 %v1165_v60, %v1001_v57  ;;  %v9367_v60 = vld [vmem:[#allocation84_spill] sm:$0xff] }
 0x27d   :  { %9358 = vst [vmem:[#allocation24_spill] sm:$0xff] %v7148_v43  ;;  %1440 = vperm.xlu1 %5390, %v6821_v29   ;;  %v970_v43 = vmul.f32 %v6616_v27, %v9364_v36  ;;  %v1557_v36 = vmul.f32 %v6656_v46, %v6867_v38  ;;  %v1362_v38 = vmul.f32 %v6654_v3, %v9367_v60 }
 0x27e   :  { %2845 = vperm.xlu0 %5441, %v6996_v15  }
 0x27f   :  { %v1002_v48 = vadd.f32 %v970_v43, %v806_v32  ;;  %v1558_v43 = vmul.f32 %v6656_v46, %v6890_v56  ;;  %v7202_v56 = vld [vmem:[%s9052_s5 + $0x70] sm:$0xff] }
 0x281   :  { %v7164_v6 = vpop.permute.xlu1 %1048  ;;  %1444 = vperm.xlu1 %5390, %v7169_v18   ;;  %v1198_v53 = vadd.f32 %v1166_v42, %v1002_v48 }
 0x282   :  { %9365 = vst [vmem:[#allocation42_spill] sm:$0xff] %v7164_v6  ;;  %2837 = vperm.xlu0 %5441, %v7020_v59   ;;  %v1393_v6 = vadd.f32 %v1361_v37, %v1197_v16  ;;  %v1949_v37 = vmul.f32 %v6683_v26, %v1849_v63  ;;  %v7214_v63 = vld [vmem:[%s9048_s1 + $0x98] sm:$0xff] }
 0x283   :  { %v1394_v33 = vadd.f32 %v1362_v38, %v1198_v53 }
 0x284   :  { %v1589_v30 = vadd.f32 %v1557_v36, %v1393_v6 }
 0x285   :  { %5391 = vset.pattern.permute.xlu1 %v9211_v22  ;;  %v1590_v6 = vadd.f32 %v1558_v43, %v1394_v33 }
 0x286   :  { %v7183_v1 = vpop.permute.xlu1 %1448  ;;  %1844 = vperm.xlu1 %5391, %v7014_v41   ;;  %5462 = vset.pattern.permute.xlu0 %v9192_v61  ;;  %v1785_v57 = vadd.f32 %v1753_v24, %v1589_v30  ;;  %v1754_v41 = vmul.f32 %v6668_v55, %v7029_v34 }
 0x287   :  { %3594 = vperm.xlu0 %5462, %v6875_v23  }
 0x288   :  { %v1981_v16 = vadd.f32 %v1949_v37, %v1785_v57  ;;  %v1786_v8 = vadd.f32 %v1754_v41, %v1590_v6  ;;  %v7243_v6 = vld [vmem:[%s9052_s5 + $0xc8] sm:$0xff] }
 0x289   :  { %9370 = vst [vmem:[#allocation103_spill] sm:$0xff] %v7243_v6 }
 0x28a   :  { %v7192_v32 = vpop.permute.xlu1 %1452  ;;  %5392 = vset.pattern.permute.xlu1 %v9171_v28  ;;  %v2045_v42 = vmul.f32 0.2, %v1981_v16  ;;  %vm2013_vm10 = vcmp.gt.f32.partialorder %v1981_v16, 0.0 }
 0x28b   :  { %485 = vperm.xlu1 %5392, %v6830_v9   ;;  %3526 = vperm.xlu0 %5462, %v7202_v56   ;;  %v2109_v60 = vsel %vm2013_vm10, 1.0, %v9352_v7 }
 0x28c   :  { %v2077_v30 = vsel %vm2013_vm10, %v1981_v16, %v2045_v42  ;;  %v7249_v16 = vld [vmem:[%s9048_s1] sm:$0xff] }
 0x28f   :  { %v1853_v36 = vpop.permute.xlu1 %1852  ;;  %5393 = vset.pattern.permute.xlu1 %v9320_v35  ;;  %3586 = vperm.xlu0 %5462, %v7102_v21  }
 0x290   :  { %v1950_v23 = vmul.f32 %v6683_v26, %v1853_v36  ;;  %900 = vperm.xlu1 %5393, %v6885_v45  }
 0x292   :  { %v1982_v48 = vadd.f32 %v1950_v23, %v1786_v8  ;;  %v7260_v8 = vld [vmem:[%s9048_s1 + $0x8] sm:$0xff]  ;;  %v7266_v23 = vld [vmem:[%s9052_s5 + $0xb8] sm:$0xff] }
 0x293   :  { %3518 = vperm.xlu0 %5462, %v6902_v4   ;;  %v7233_v4 = vld [vmem:[%s9048_s1 + $0xb0] sm:$0xff]  ;;  %9371 = vst [vmem:[#allocation81_spill] sm:$0xff] %v7266_v23 }
 0x294   :  { %v2046_v34 = vmul.f32 0.2, %v1982_v48  ;;  %v7209_v24 = vpop.permute.xlu1 %495  ;;  %904 = vperm.xlu1 %5393, %v7214_v63   ;;  %vm2014_vm11 = vcmp.gt.f32.partialorder %v1982_v48, 0.0 }
 0x295   :  { %9368 = vst [vmem:[#allocation79_spill] sm:$0xff] %v7209_v24  ;;  %v2110_v38 = vsel %vm2014_vm11, 1.0, %v9352_v7 }
 0x296   :  { %v2078_v53 = vsel %vm2014_vm11, %v1982_v48, %v2046_v34  ;;  %v7220_v43 = vpack.c.bf16 %v2110_v38, %v2109_v60  ;;  %v5723_v48 = vld [vmem:[%s9052_s5 + $0x30] sm:$0xff] }
 0x297   :  { %v2152_v57 = vpack.c.bf16 %v2078_v53, %v2077_v30  ;;  %3578 = vperm.xlu0 %5462, %v7121_v17   ;;  %v7293_v30 = vld [vmem:[%s9052_s5 + $0x88] sm:$0xff] }
 0x298   :  { %9369 = vst [vmem:[#allocation62_spill] sm:$0xff] %v7220_v43  ;;  %5394 = vset.pattern.permute.xlu1 %v9177_v0  ;;  %9375 = vst [vmem:[#allocation32_spill] sm:$0xff] %v7293_v30  ;;  %v9380_v43 = vld [vmem:[#allocation64_spill] sm:$0xff] }
 0x299   :  { %v7223_v37 = vpop.permute.xlu1 %908  ;;  %1304 = vperm.xlu1 %5394, %v6916_v51   ;;  %4785 = vmatpush3.bf16.msra.mxu0 %v2152_v57 }
 0x29b   :  { %3510 = vperm.xlu0 %5462, %v6924_v25   ;;  %v5720_v25 = vld [vmem:[%s9052_s5 + $0x40] sm:$0xff] }
 0x29d   :  { %v7227_v33 = vpop.permute.xlu1 %912  ;;  %5395 = vset.pattern.permute.xlu1 %v9182_v58 }
 0x29e   :  { %1700 = vperm.xlu1 %5395, %v7233_v4  }
 0x29f   :  { %3570 = vperm.xlu0 %5462, %v7243_v6  }
 0x2a2   :  { %v7237_v41 = vpop.permute.xlu1 %1312  ;;  %5396 = vset.pattern.permute.xlu1 %v9171_v28 }
 0x2a3   :  { %405 = vperm.xlu1 %5396, %v7249_v16   ;;  %3502 = vperm.xlu0 %5462, %v5720_v25   ;;  %v9379_v25 = vld [vmem:[#allocation82_spill] sm:$0xff] }
 0x2a7   :  { %v7255_v36 = vpop.permute.xlu1 %1708  ;;  %410 = vperm.xlu1 %5396, %v7260_v8   ;;  %3562 = vperm.xlu0 %5462, %v7266_v23  }
 0x2ab   :  { %5397 = vset.pattern.permute.xlu1 %v9320_v35  ;;  %3494 = vperm.xlu0 %5462, %v5723_v48  }
 0x2ac   :  { %v7270_v42 = vpop.permute.xlu1 %415  ;;  %840 = vperm.xlu1 %5397, %v6970_v13  }
 0x2ad   :  { %9372 = vst [vmem:[#allocation105_spill] sm:$0xff] %v7270_v42  ;;  %v9381_v42 = vld [vmem:[#allocation113_spill] sm:$0xff] }
 0x2ae   :  { %v984_v24 = vmul.f32 %v6616_v27, %v9381_v42  ;;  %v1376_v42 = vmul.f32 %v6654_v3, %v6949_v39  ;;  %v9386_v39 = vld [vmem:[#allocation86_spill] sm:$0xff] }
 0x2af   :  { %3554 = vperm.xlu0 %5462, %v6695_v5  }
 0x2b0   :  { %v7276_v34 = vpop.permute.xlu1 %420  ;;  %5398 = vset.pattern.permute.xlu1 %v9177_v0 }
 0x2b1   :  { %9373 = vst [vmem:[#allocation48_spill] sm:$0xff] %v7276_v34  ;;  %1236 = vperm.xlu1 %5398, %v7141_v44   ;;  %v591_v34 = vmul.f32 %v6594_v31, %v9380_v43 }
 0x2b3   :  { %3486 = vperm.xlu0 %5462, %v6792_v19  }
 0x2b5   :  { %v7281_v60 = vpop.permute.xlu1 %848  ;;  %5399 = vset.pattern.permute.xlu1 %v9182_v58 }
 0x2b6   :  { %9374 = vst [vmem:[#allocation91_spill] sm:$0xff] %v7281_v60  ;;  %1636 = vperm.xlu1 %5399, %v6821_v29   ;;  %v1909_v29 = vpop.permute.xlu0 %1908  ;;  %v1180_v60 = vmul.f32 %v6627_v47, %v6775_v12 }
 0x2b7   :  { %3542 = vperm.xlu0 %5462, %v6996_v15   ;;  %v9376_v15 = vld [vmem:[#allocation7_spill] sm:$0xff] }
 0x2b8   :  { %v592_v53 = vmul.f32 %v6594_v31, %v9376_v15 }
 0x2ba   :  { %v7286_v38 = vpop.permute.xlu1 %1244  ;;  %1640 = vperm.xlu1 %5399, %v7169_v18   ;;  %v624_v48 = vadd.f32 %v592_v53, %v9379_v25  ;;  %v9385_v53 = vld [vmem:[#allocation111_spill] sm:$0xff] }
 0x2bb   :  { %3478 = vperm.xlu0 %5462, %v7005_v50   ;;  %v9378_v50 = vld [vmem:[#allocation31_spill] sm:$0xff]  ;;  %v983_v25 = vmul.f32 %v6616_v27, %v9385_v53  ;;  %v1768_v53 = vmul.f32 %v6668_v55, %v6611_v14  ;;  %v1767_v14 = vmul.f32 %v6668_v55, %v7255_v36 }
 0x2be   :  { %5401 = vset.pattern.permute.xlu1 %v9171_v28 }
 0x2bf   :  { %v7297_v5 = vpop.permute.xlu1 %1644  ;;  %330 = vperm.xlu1 %5401, %v7293_v30   ;;  %3534 = vperm.xlu0 %5462, %v7020_v59   ;;  %v788_v59 = vmul.f32 %v6604_v11, %v9378_v50  ;;  %v9383_v30 = vld [vmem:[#allocation85_spill] sm:$0xff]  ;;  %v9384_v50 = vld [vmem:[#allocation8_spill] sm:$0xff] }
 0x2c0   :  { %v787_v23 = vmul.f32 %v6604_v11, %v9383_v30  ;;  %v623_v6 = vadd.f32 %v591_v34, %v9384_v50  ;;  %v1179_v30 = vmul.f32 %v6627_v47, %v6766_v54  ;;  %v1572_v34 = vmul.f32 %v6656_v46, %v7096_v52  ;;  %v9387_v54 = vld [vmem:[#allocation106_spill] sm:$0xff] }
 0x2c3   :  { %v7301_v19 = vpop.permute.xlu1 %1648  ;;  %5402 = vset.pattern.permute.xlu1 %v9188_v10  ;;  %3470 = vperm.xlu0 %5462, %v7050_v40  }
 0x2c4   :  { %696 = vperm.xlu1 %5402, %v6830_v9  }
 0x2c7   :  { %5467 = vset.pattern.permute.xlu0 %v9171_v28 }
 0x2c8   :  { %v7308_v57 = vpop.permute.xlu1 %340  ;;  %5403 = vset.pattern.permute.xlu1 %v9192_v61 }
 0x2c9   :  { %9377 = vst [vmem:[#allocation49_spill] sm:$0xff] %v7308_v57  ;;  %1096 = vperm.xlu1 %5403, %v6885_v45   ;;  %v820_v57 = vadd.f32 %v788_v59, %v624_v48  ;;  %v819_v59 = vadd.f32 %v787_v23, %v623_v6 }
 0x2cb   :  { %v1016_v43 = vadd.f32 %v984_v24, %v820_v57  ;;  %v1015_v48 = vadd.f32 %v983_v25, %v819_v59  ;;  %v1375_v57 = vmul.f32 %v6654_v3, %v9386_v39 }
 0x2cd   :  { %v7320_v15 = vpop.permute.xlu1 %704  ;;  %1100 = vperm.xlu1 %5403, %v7214_v63   ;;  %v1212_v12 = vadd.f32 %v1180_v60, %v1016_v43  ;;  %v1211_v6 = vadd.f32 %v1179_v30, %v1015_v48  ;;  %v1571_v60 = vmul.f32 %v6656_v46, %v9387_v54  ;;  %v1964_v43 = vmul.f32 %v6683_v26, %v1909_v29 }
 0x2ce   :  { %9382 = vst [vmem:[#allocation47_spill] sm:$0xff] %v7320_v15 }
 0x2cf   :  { %v1408_v50 = vadd.f32 %v1376_v42, %v1212_v12  ;;  %v1407_v52 = vadd.f32 %v1375_v57, %v1211_v6 }
 0x2d1   :  { %5404 = vset.pattern.permute.xlu1 %v9195_v62  ;;  %v1604_v23 = vadd.f32 %v1572_v34, %v1408_v50  ;;  %v1603_v30 = vadd.f32 %v1571_v60, %v1407_v52  ;;  %v9390_v60 = vld [vmem:[#allocation74_spill] sm:$0xff] }
 0x2d2   :  { %v7333_v15 = vpop.permute.xlu1 %1104  ;;  %1500 = vperm.xlu1 %5404, %v6916_v51   ;;  %v575_v52 = vmul.f32 %v6594_v31, %v9390_v60  ;;  %v9398_v60 = vld [vmem:[#allocation65_spill] sm:$0xff] }
 0x2d3   :  { %v1800_v25 = vadd.f32 %v1768_v53, %v1604_v23  ;;  %v1799_v29 = vadd.f32 %v1767_v14, %v1603_v30  ;;  %v9392_v14 = vld [vmem:[#allocation96_spill] sm:$0xff] }
 0x2d4   :  { %v607_v30 = vadd.f32 %v575_v52, %v9392_v14  ;;  %v1163_v52 = vmul.f32 %v6627_v47, %v9398_v60  ;;  %v1751_v60 = vmul.f32 %v6668_v55, %v7297_v5 }
 0x2d5   :  { %v1996_v59 = vadd.f32 %v1964_v43, %v1800_v25  ;;  %v9391_v25 = vld [vmem:[#allocation33_spill] sm:$0xff] }
 0x2d6   :  { %v7340_v24 = vpop.permute.xlu1 %1108  ;;  %5405 = vset.pattern.permute.xlu1 %v9211_v22  ;;  %v771_v43 = vmul.f32 %v6604_v11, %v9391_v25 }
 0x2d7   :  { %1896 = vperm.xlu1 %5405, %v7233_v4   ;;  %v7360_v4 = vld [vmem:[%s9052_s5 + $0x8] sm:$0xff]  ;;  %v2060_v48 = vmul.f32 0.2, %v1996_v59  ;;  %vm2028_vm12 = vcmp.gt.f32.partialorder %v1996_v59, 0.0 }
 0x2d8   :  { %v2124_v39 = vsel %vm2028_vm12, 1.0, %v9352_v7 }
 0x2d9   :  { %v2092_v53 = vsel %vm2028_vm12, %v1996_v59, %v2060_v48  ;;  %v9393_v59 = vld [vmem:[#allocation54_spill] sm:$0xff] }
 0x2db   :  { %v7351_v42 = vpop.permute.xlu1 %1508  ;;  %5406 = vset.pattern.permute.xlu1 %v9171_v28 }
 0x2dc   :  { %245 = vperm.xlu1 %5406, %v7050_v40  }
 0x2e0   :  { %v1905_v12 = vpop.permute.xlu1 %1904  ;;  %250 = vperm.xlu1 %5406, %v7360_v4  }
 0x2e1   :  { %v1963_v34 = vmul.f32 %v6683_v26, %v1905_v12 }
 0x2e3   :  { %v1995_v28 = vadd.f32 %v1963_v34, %v1799_v29  ;;  %v967_v29 = vmul.f32 %v6616_v27, %v9393_v59  ;;  %v9394_v34 = vld [vmem:[#allocation76_spill] sm:$0xff] }
 0x2e4   :  { %5408 = vset.pattern.permute.xlu1 %v9188_v10  ;;  %v576_v48 = vmul.f32 %v6594_v31, %v9394_v34 }
 0x2e5   :  { %v2059_v40 = vmul.f32 0.2, %v1995_v28  ;;  %v7365_v36 = vpop.permute.xlu1 %255  ;;  %636 = vperm.xlu1 %5408, %v7260_v8   ;;  %vm2027_vm13 = vcmp.gt.f32.partialorder %v1995_v28, 0.0 }
 0x2e6   :  { %v2123_v50 = vsel %vm2027_vm13, 1.0, %v9352_v7 }
 0x2e7   :  { %v2091_v57 = vsel %vm2027_vm13, %v1995_v28, %v2059_v40  ;;  %v7370_v6 = vpack.c.bf16 %v2124_v39, %v2123_v50  ;;  %v803_v28 = vadd.f32 %v771_v43, %v607_v30  ;;  %v9395_v40 = vld [vmem:[#allocation100_spill] sm:$0xff]  ;;  %v9396_v39 = vld [vmem:[#allocation98_spill] sm:$0xff]  ;;  %v9401_v30 = vld [vmem:[#allocation69_spill] sm:$0xff] }
 0x2e8   :  { %v2159_v23 = vpack.c.bf16 %v2092_v53, %v2091_v57  ;;  %v772_v50 = vmul.f32 %v6604_v11, %v9395_v40  ;;  %v608_v57 = vadd.f32 %v576_v48, %v9396_v39  ;;  %v9397_v53 = vld [vmem:[#allocation125_spill] sm:$0xff]  ;;  %v1164_v34 = vmul.f32 %v6627_v47, %v9401_v30 }
 0x2e9   :  { %9388 = vst [vmem:[#allocation68_spill] sm:$0xff] %v7370_v6  ;;  %v7372_v54 = vpop.permute.xlu1 %260  ;;  %5409 = vset.pattern.permute.xlu1 %v9192_v61  ;;  %v999_v59 = vadd.f32 %v967_v29, %v803_v28  ;;  %v9400_v6 = vld [vmem:[#allocation10_spill] sm:$0xff]  ;;  %v1555_v39 = vmul.f32 %v6656_v46, %v7183_v1  ;;  %v1841_v29 = vpop.permute.xlu0 %1840 }
 0x2ea   :  { %9389 = vst [vmem:[#allocation30_spill] sm:$0xff] %v7372_v54  ;;  %1032 = vperm.xlu1 %5409, %v6961_v20   ;;  %4786 = vmatprep.subr.bf16.mxu0 %v2159_v23  ;;  %v968_v23 = vmul.f32 %v6616_v27, %v9397_v53  ;;  %v804_v14 = vadd.f32 %v772_v50, %v608_v57 }
 0x2eb   :  { %v1359_v43 = vmul.f32 %v6654_v3, %v9400_v6  ;;  %v1195_v48 = vadd.f32 %v1163_v52, %v999_v59  ;;  %v9402_v6 = vld [vmem:[#allocation88_spill] sm:$0xff]  ;;  %v1947_v52 = vmul.f32 %v6683_v26, %v1841_v29 }
 0x2ec   :  { %v1000_v40 = vadd.f32 %v968_v23, %v804_v14  ;;  %v1360_v28 = vmul.f32 %v6654_v3, %v9402_v6  ;;  %v1556_v23 = vmul.f32 %v6656_v46, %v7192_v32 }
 0x2ed   :  { %v1391_v53 = vadd.f32 %v1359_v43, %v1195_v48 }
 0x2ee   :  { %v7381_v12 = vpop.permute.xlu1 %644  ;;  %5410 = vset.pattern.permute.xlu1 %v9195_v62  ;;  %v1196_v50 = vadd.f32 %v1164_v34, %v1000_v40 }
 0x2ef   :  { %1432 = vperm.xlu1 %5410, %v7141_v44   ;;  %v9399_v44 = vld [vmem:[#allocation102_spill] sm:$0xff]  ;;  %v1587_v57 = vadd.f32 %v1555_v39, %v1391_v53 }
 0x2f0   :  { %v1392_v5 = vadd.f32 %v1360_v28, %v1196_v50 }
 0x2f1   :  { %v1783_v1 = vadd.f32 %v1751_v60, %v1587_v57 }
 0x2f2   :  { %v1588_v59 = vadd.f32 %v1556_v23, %v1392_v5 }
 0x2f3   :  { %v7396_v25 = vpop.permute.xlu1 %1040  ;;  %1436 = vperm.xlu1 %5410, %v9399_v44   ;;  %v1979_v43 = vadd.f32 %v1947_v52, %v1783_v1 }
 0x2f5   :  { %v2043_v40 = vmul.f32 0.2, %v1979_v43  ;;  %vm2011_vm14 = vcmp.gt.f32.partialorder %v1979_v43, 0.0 }
 0x2f7   :  { %5411 = vset.pattern.permute.xlu1 %v9211_v22  ;;  %v2075_v29 = vsel %vm2011_vm14, %v1979_v43, %v2043_v40 }
 0x2f8   :  { %v7408_v54 = vpop.permute.xlu1 %1440  ;;  %1836 = vperm.xlu1 %5411, %v7169_v18   ;;  %v1752_v18 = vmul.f32 %v6668_v55, %v7301_v19  ;;  %v2107_v19 = vsel %vm2011_vm14, 1.0, %v9352_v7 }
 0x2fa   :  { %v1784_v34 = vadd.f32 %v1752_v18, %v1588_v59 }
 0x2fc   :  { %v7416_v14 = vpop.permute.xlu1 %1444  ;;  %5412 = vset.pattern.permute.xlu1 %v9320_v35 }
 0x2fd   :  { %892 = vperm.xlu1 %5412, %v6830_v9  }
 0x301   :  { %v1845_v30 = vpop.permute.xlu1 %1844  ;;  %5413 = vset.pattern.permute.xlu1 %v9177_v0 }
 0x302   :  { %v1948_v32 = vmul.f32 %v6683_v26, %v1845_v30  ;;  %1292 = vperm.xlu1 %5413, %v6885_v45  }
 0x304   :  { %v1980_v48 = vadd.f32 %v1948_v32, %v1784_v34  ;;  %v9407_v32 = vld [vmem:[#allocation9_spill] sm:$0xff] }
 0x305   :  { %v590_v40 = vmul.f32 %v6594_v31, %v9407_v32 }
 0x306   :  { %v2044_v39 = vmul.f32 0.2, %v1980_v48  ;;  %v7425_v53 = vpop.permute.xlu1 %485  ;;  %1296 = vperm.xlu1 %5413, %v7214_v63   ;;  %vm2012_vm15 = vcmp.gt.f32.partialorder %v1980_v48, 0.0 }
 0x307   :  { %9403 = vst [vmem:[#allocation89_spill] sm:$0xff] %v7425_v53  ;;  %v2108_v60 = vsel %vm2012_vm15, 1.0, %v9352_v7 }
 0x308   :  { %v2076_v6 = vsel %vm2012_vm15, %v1980_v48, %v2044_v39  ;;  %v7430_v28 = vpack.c.bf16 %v2108_v60, %v2107_v19  ;;  %v9408_v39 = vld [vmem:[#allocation35_spill] sm:$0xff]  ;;  %v9409_v19 = vld [vmem:[#allocation129_spill] sm:$0xff] }
 0x309   :  { %v2151_v50 = vpack.c.bf16 %v2076_v6, %v2075_v29  ;;  %v622_v60 = vadd.f32 %v590_v40, %v9409_v19  ;;  %v9410_v29 = vld [vmem:[#allocation109_spill] sm:$0xff]  ;;  %v9415_v40 = vld [vmem:[#allocation92_spill] sm:$0xff] }
 0x30a   :  { %9404 = vst [vmem:[#allocation28_spill] sm:$0xff] %v7430_v28  ;;  %5414 = vset.pattern.permute.xlu1 %v9182_v58  ;;  %v589_v6 = vmul.f32 %v6594_v31, %v9410_v29  ;;  %v981_v19 = vmul.f32 %v6616_v27, %v9415_v40 }
 0x30b   :  { %v7433_v57 = vpop.permute.xlu1 %900  ;;  %1696 = vperm.xlu1 %5414, %v6916_v51   ;;  %4787 = vmatpush3.bf16.msra.mxu0 %v2151_v50  ;;  %v9411_v50 = vld [vmem:[#allocation80_spill] sm:$0xff] }
 0x30c   :  { %v982_v28 = vmul.f32 %v6616_v27, %v9411_v50  ;;  %v1374_v50 = vmul.f32 %v6654_v3, %v7237_v41  ;;  %v9416_v41 = vld [vmem:[#allocation90_spill] sm:$0xff] }
 0x30f   :  { %v7436_v23 = vpop.permute.xlu1 %904  ;;  %5415 = vset.pattern.permute.xlu1 %v9320_v35 }
 0x310   :  { %828 = vperm.xlu1 %5415, %v7249_v16  }
 0x314   :  { %v7440_v1 = vpop.permute.xlu1 %1304  ;;  %5417 = vset.pattern.permute.xlu1 %v9177_v0 }
 0x315   :  { %1228 = vperm.xlu1 %5417, %v6961_v20  }
 0x319   :  { %v1701_v52 = vpop.permute.xlu1 %1700  ;;  %1232 = vperm.xlu1 %5417, %v6970_v13  }
 0x31d   :  { %5418 = vset.pattern.permute.xlu1 %v9182_v58 }
 0x31e   :  { %1632 = vperm.xlu1 %5418, %v9399_v44   ;;  %v7447_v5 = vpop.permute.xlu1 %405 }
 0x31f   :  { %9405 = vst [vmem:[#allocation45_spill] sm:$0xff] %v7447_v5 }
 0x322   :  { %5419 = vset.pattern.permute.xlu1 %v9192_v61  ;;  %v7450_v18 = vpop.permute.xlu1 %410 }
 0x323   :  { %9406 = vst [vmem:[#allocation115_spill] sm:$0xff] %v7450_v18  ;;  %1088 = vperm.xlu1 %5419, %v6830_v9   ;;  %v9413_v18 = vld [vmem:[#allocation131_spill] sm:$0xff] }
 0x327   :  { %5420 = vset.pattern.permute.xlu1 %v9195_v62  ;;  %v7454_v59 = vpop.permute.xlu1 %840 }
 0x328   :  { %1488 = vperm.xlu1 %5420, %v6885_v45  }
 0x32c   :  { %1492 = vperm.xlu1 %5420, %v7214_v63   ;;  %v7458_v43 = vpop.permute.xlu1 %1236 }
 0x330   :  { %5421 = vset.pattern.permute.xlu1 %v9211_v22 }
 0x331   :  { %1892 = vperm.xlu1 %5421, %v6916_v51   ;;  %v7462_v30 = vpop.permute.xlu1 %1636  ;;  %v786_v51 = vmul.f32 %v6604_v11, %v9408_v39  ;;  %v9414_v39 = vld [vmem:[#allocation11_spill] sm:$0xff] }
 0x332   :  { %v621_v53 = vadd.f32 %v589_v6, %v9414_v39  ;;  %v1570_v6 = vmul.f32 %v6656_v46, %v7351_v42 }
 0x333   :  { %v818_v5 = vadd.f32 %v786_v51, %v622_v60 }
 0x335   :  { %5422 = vset.pattern.permute.xlu1 %v9192_v61  ;;  %v7465_v34 = vpop.permute.xlu1 %1640  ;;  %v785_v61 = vmul.f32 %v6604_v11, %v9413_v18  ;;  %v1014_v29 = vadd.f32 %v982_v28, %v818_v5  ;;  %v1177_v18 = vmul.f32 %v6627_v47, %v7063_v2  ;;  %v1373_v5 = vmul.f32 %v6654_v3, %v9416_v41  ;;  %v1901_v2 = vpop.permute.xlu0 %1900 }
 0x336   :  { %1024 = vperm.xlu1 %5422, %v7249_v16  }
 0x337   :  { %v817_v60 = vadd.f32 %v785_v61, %v621_v53 }
 0x339   :  { %v1013_v39 = vadd.f32 %v981_v19, %v817_v60 }
 0x33a   :  { %5424 = vset.pattern.permute.xlu1 %v9195_v62  ;;  %v7471_v48 = vpop.permute.xlu1 %330 }
 0x33b   :  { %1424 = vperm.xlu1 %5424, %v6961_v20   ;;  %v1178_v20 = vmul.f32 %v6627_v47, %v7079_v49  ;;  %v1209_v61 = vadd.f32 %v1177_v18, %v1013_v39 }
 0x33d   :  { %v1210_v49 = vadd.f32 %v1178_v20, %v1014_v29  ;;  %v9418_v20 = vld [vmem:[#allocation107_spill] sm:$0xff]  ;;  %v1405_v19 = vadd.f32 %v1373_v5, %v1209_v61  ;;  %v1962_v29 = vmul.f32 %v6683_v26, %v1901_v2 }
 0x33e   :  { %v1569_v42 = vmul.f32 %v6656_v46, %v9418_v20 }
 0x33f   :  { %1428 = vperm.xlu1 %5424, %v6970_v13   ;;  %v7482_v32 = vpop.permute.xlu1 %696  ;;  %v1406_v40 = vadd.f32 %v1374_v50, %v1210_v49  ;;  %v1765_v49 = vmul.f32 %v6668_v55, %v1701_v52 }
 0x340   :  { %9412 = vst [vmem:[#allocation66_spill] sm:$0xff] %v7482_v32 }
 0x341   :  { %v1602_v53 = vadd.f32 %v1570_v6, %v1406_v40  ;;  %v1601_v6 = vadd.f32 %v1569_v42, %v1405_v19 }
 0x343   :  { %5425 = vset.pattern.permute.xlu1 %v9211_v22  ;;  %v1797_v39 = vadd.f32 %v1765_v49, %v1601_v6  ;;  %v9423_v6 = vld [vmem:[#allocation25_spill] sm:$0xff] }
 0x344   :  { %1828 = vperm.xlu1 %5425, %v9399_v44   ;;  %v7495_v51 = vpop.permute.xlu1 %1096  ;;  %v9417_v44 = vld [vmem:[#allocation122_spill] sm:$0xff] }
 0x345   :  { %v1766_v32 = vmul.f32 %v6668_v55, %v9417_v44 }
 0x347   :  { %v1798_v50 = vadd.f32 %v1766_v32, %v1602_v53 }
 0x348   :  { %5426 = vset.pattern.permute.xlu1 %v9177_v0  ;;  %v7502_v28 = vpop.permute.xlu1 %1100 }
 0x349   :  { %1284 = vperm.xlu1 %5426, %v6830_v9   ;;  %v1994_v18 = vadd.f32 %v1962_v29, %v1798_v50  ;;  %v9422_v50 = vld [vmem:[#allocation36_spill] sm:$0xff] }
 0x34a   :  { %v769_v49 = vmul.f32 %v6604_v11, %v9422_v50  ;;  %v9429_v50 = vld [vmem:[#allocation42_spill] sm:$0xff] }
 0x34b   :  { %vm2026_vm0 = vcmp.gt.f32.partialorder %v1994_v18, 0.0  ;;  %v2058_v5 = vmul.f32 0.2, %v1994_v18 }
 0x34c   :  { %v2122_v61 = vsel %vm2026_vm0, 1.0, %v9352_v7 }
 0x34d   :  { %5427 = vset.pattern.permute.xlu1 %v9182_v58  ;;  %v7513_v60 = vpop.permute.xlu1 %1500  ;;  %v2090_v2 = vsel %vm2026_vm0, %v1994_v18, %v2058_v5  ;;  %v9425_v5 = vld [vmem:[#allocation121_spill] sm:$0xff] }
 0x34e   :  { %1684 = vperm.xlu1 %5427, %v6885_v45  }
 0x352   :  { %1688 = vperm.xlu1 %5427, %v7214_v63   ;;  %v1897_v9 = vpop.permute.xlu1 %1896 }
 0x353   :  { %v1961_v40 = vmul.f32 %v6683_v26, %v1897_v9 }
 0x355   :  { %v1993_v41 = vadd.f32 %v1961_v40, %v1797_v39  ;;  %v5724_v39 = vld [vmem:[%s9048_s1 + $0x80] sm:$0xff]  ;;  %v9424_v40 = vld [vmem:[#allocation55_spill] sm:$0xff] }
 0x356   :  { %5429 = vset.pattern.permute.xlu1 %v9177_v0  ;;  %v9421_v0 = vld [vmem:[#allocation120_spill] sm:$0xff] }
 0x357   :  { %v2057_v32 = vmul.f32 0.2, %v1993_v41  ;;  %1224 = vperm.xlu1 %5429, %v7260_v8   ;;  %v7521_v44 = vpop.permute.xlu1 %245  ;;  %vm2025_vm1 = vcmp.gt.f32.partialorder %v1993_v41, 0.0  ;;  %v573_v29 = vmul.f32 %v6594_v31, %v9421_v0  ;;  %v9428_v0 = vld [vmem:[#allocation23_spill] sm:$0xff] }
 0x358   :  { %9419 = vst [vmem:[#allocation87_spill] sm:$0xff] %v7521_v44  ;;  %v2121_v52 = vsel %vm2025_vm1, 1.0, %v9352_v7 }
 0x359   :  { %v2089_v53 = vsel %vm2025_vm1, %v1993_v41, %v2057_v32  ;;  %v7525_v20 = vpack.c.bf16 %v2122_v61, %v2121_v52  ;;  %v605_v9 = vadd.f32 %v573_v29, %v9423_v6  ;;  %v965_v41 = vmul.f32 %v6616_v27, %v9424_v40  ;;  %v9426_v61 = vld [vmem:[#allocation50_spill] sm:$0xff] }
 0x35a   :  { %v2158_v42 = vpack.c.bf16 %v2090_v2, %v2089_v53  ;;  %v574_v32 = vmul.f32 %v6594_v31, %v9425_v5  ;;  %v770_v53 = vmul.f32 %v6604_v11, %v9426_v61  ;;  %v9427_v2 = vld [vmem:[#allocation34_spill] sm:$0xff]  ;;  %v966_v29 = vmul.f32 %v6616_v27, %v9428_v0 }
 0x35b   :  { %9420 = vst [vmem:[#allocation119_spill] sm:$0xff] %v7525_v20  ;;  %5430 = vset.pattern.permute.xlu1 %v9182_v58  ;;  %v7528_v19 = vpop.permute.xlu1 %250  ;;  %v801_v52 = vadd.f32 %v769_v49, %v605_v9  ;;  %v1161_v6 = vmul.f32 %v6627_v47, %v9429_v50  ;;  %v1357_v49 = vmul.f32 %v6654_v3, %v7286_v38  ;;  %v9430_v9 = vld [vmem:[#allocation71_spill] sm:$0xff] }
 0x35c   :  { %1624 = vperm.xlu1 %5430, %v6970_v13   ;;  %4788 = vmatprep.subr.bf16.mxu0 %v2158_v42  ;;  %v606_v42 = vadd.f32 %v574_v32, %v9427_v2  ;;  %v1162_v5 = vmul.f32 %v6627_v47, %v9430_v9  ;;  %v1553_v2 = vmul.f32 %v6656_v46, %v7408_v54 }
 0x35d   :  { %v997_v44 = vadd.f32 %v965_v41, %v801_v52  ;;  %v1749_v50 = vmul.f32 %v6668_v55, %v7462_v30  ;;  %v9431_v52 = vld [vmem:[#allocation93_spill] sm:$0xff]  ;;  %v1750_v30 = vmul.f32 %v6668_v55, %v7465_v34 }
 0x35e   :  { %v802_v40 = vadd.f32 %v770_v53, %v606_v42  ;;  %v1358_v38 = vmul.f32 %v6654_v3, %v9431_v52  ;;  %v1833_v42 = vpop.permute.xlu0 %1832 }
 0x35f   :  { %v1193_v61 = vadd.f32 %v1161_v6, %v997_v44  ;;  %v1554_v44 = vmul.f32 %v6656_v46, %v7416_v14 }
 0x360   :  { %5431 = vset.pattern.permute.xlu1 %v9195_v62  ;;  %v7537_v18 = vpop.permute.xlu1 %636  ;;  %v998_v32 = vadd.f32 %v966_v29, %v802_v40  ;;  %v1945_v29 = vmul.f32 %v6683_v26, %v1833_v42 }
 0x361   :  { %1480 = vperm.xlu1 %5431, %v5724_v39   ;;  %v1389_v0 = vadd.f32 %v1357_v49, %v1193_v61 }
 0x363   :  { %v1585_v53 = vadd.f32 %v1553_v2, %v1389_v0 }
 0x365   :  { %5432 = vset.pattern.permute.xlu1 %v9211_v22  ;;  %v7554_v20 = vpop.permute.xlu1 %1032  ;;  %v1781_v54 = vadd.f32 %v1749_v50, %v1585_v53 }
 0x366   :  { %1880 = vperm.xlu1 %5432, %v6885_v45   ;;  %v1194_v45 = vadd.f32 %v1162_v5, %v998_v32 }
 0x367   :  { %v1977_v49 = vadd.f32 %v1945_v29, %v1781_v54  ;;  %v5471_v29 = vld [vmem:[#allocation2 + $0x4] ss:$8 sps:$4 sm:$0xff]  }
 0x368   :  { %v9434_v54 = vld [vmem:[#allocation70_spill] sm:$0xff]  ;;  %2483 = vmatprep.mubr.bf16.mxu0 %v5471_v29 }
 0x369   :  { %vm2009_vm2 = vcmp.gt.f32.partialorder %v1977_v49, 0.0 }
 0x36a   :  { %1884 = vperm.xlu1 %5432, %v7214_v63   ;;  %v7566_v41 = vpop.permute.xlu1 %1432  ;;  %v1390_v63 = vadd.f32 %v1358_v38, %v1194_v45  ;;  %v2105_v34 = vsel %vm2009_vm2, 1.0, %v9352_v7 }
 0x36c   :  { %v1586_v40 = vadd.f32 %v1554_v44, %v1390_v63  ;;  %v9433_v44 = vld [vmem:[#allocation22_spill] sm:$0xff]  ;;  %v9435_v63 = vld [vmem:[#allocation5_spill] sm:$0xff] }
 0x36e   :  { %5434 = vset.pattern.permute.xlu1 %v9195_v62  ;;  %v7574_v6 = vpop.permute.xlu1 %1436  ;;  %v1782_v5 = vadd.f32 %v1750_v30, %v1586_v40  ;;  %v2041_v62 = vmul.f32 0.2, %v1977_v49  ;;  %v783_v30 = vmul.f32 %v6604_v11, %v9435_v63  ;;  %v9443_v63 = vld [vmem:[#allocation26_spill] sm:$0xff] }
 0x36f   :  { %1420 = vperm.xlu1 %5434, %v7260_v8  }
 0x370   :  { %v2073_v50 = vsel %vm2009_vm2, %v1977_v49, %v2041_v62 }
 0x373   :  { %5435 = vset.pattern.permute.xlu1 %v9211_v22  ;;  %v1837_v9 = vpop.permute.xlu1 %1836 }
 0x374   :  { %v1946_v32 = vmul.f32 %v6683_v26, %v1837_v9  ;;  %1820 = vperm.xlu1 %5435, %v6970_v13  }
 0x376   :  { %v1978_v14 = vadd.f32 %v1946_v32, %v1782_v5  ;;  %v1175_v5 = vmul.f32 %v6627_v47, %v7333_v15  ;;  %v9437_v32 = vld [vmem:[#allocation52_spill] sm:$0xff] }
 0x377   :  { %v9441_v15 = vld [vmem:[#allocation108_spill] sm:$0xff] }
 0x378   :  { %v2042_v61 = vmul.f32 0.2, %v1978_v14  ;;  %5436 = vset.pattern.permute.xlu1 %v9182_v58  ;;  %v7583_v2 = vpop.permute.xlu1 %892  ;;  %vm2010_vm3 = vcmp.gt.f32.partialorder %v1978_v14, 0.0  ;;  %v1567_v29 = vmul.f32 %v6656_v46, %v9441_v15  ;;  %v9447_v15 = vld [vmem:[#allocation20_spill] sm:$0xff] }
 0x379   :  { %1676 = vperm.xlu1 %5436, %v5724_v39   ;;  %v2106_v0 = vsel %vm2010_vm3, 1.0, %v9352_v7  ;;  %v5725_v39 = vld [vmem:[%s9048_s1 + $0x88] sm:$0xff] }
 0x37a   :  { %v2074_v52 = vsel %vm2010_vm3, %v1978_v14, %v2042_v61  ;;  %v7587_v38 = vpack.c.bf16 %v2106_v0, %v2105_v34  ;;  %v9438_v61 = vld [vmem:[#allocation13_spill] sm:$0xff]  ;;  %v9439_v0 = vld [vmem:[#allocation94_spill] sm:$0xff] }
 0x37b   :  { %v2150_v45 = vpack.c.bf16 %v2074_v52, %v2073_v50  ;;  %v588_v34 = vmul.f32 %v6594_v31, %v9438_v61  ;;  %v1371_v50 = vmul.f32 %v6654_v3, %v9439_v0  ;;  %v1372_v61 = vmul.f32 %v6654_v3, %v7440_v1  ;;  %v9446_v1 = vld [vmem:[#allocation40_spill] sm:$0xff] }
 0x37c   :  { %9432 = vst [vmem:[#allocation83_spill] sm:$0xff] %v7587_v38 }
 0x37d   :  { %1612 = vperm.xlu1 %5436, %v7249_v16   ;;  %v7590_v13 = vpop.permute.xlu1 %1292  ;;  %4789 = vmatpush3.bf16.msra.mxu0 %v2150_v45 }
 0x381   :  { %1616 = vperm.xlu1 %5436, %v7260_v8   ;;  %v7593_v58 = vpop.permute.xlu1 %1296 }
 0x385   :  { %5438 = vset.pattern.permute.xlu1 %v9211_v22  ;;  %v587_v22 = vmul.f32 %v6594_v31, %v9434_v54 }
 0x386   :  { %1876 = vperm.xlu1 %5438, %v5725_v39   ;;  %v1697_v53 = vpop.permute.xlu1 %1696 }
 0x38a   :  { %1808 = vperm.xlu1 %5438, %v7249_v16   ;;  %v9436_v16 = vld [vmem:[#allocation14_spill] sm:$0xff] }
 0x38b   :  { %v7600_v42 = vpop.permute.xlu1 %828  ;;  %v619_v49 = vadd.f32 %v587_v22, %v9436_v16  ;;  %v9444_v16 = vld [vmem:[#allocation124_spill] sm:$0xff] }
 0x38d   :  { %v815_v9 = vadd.f32 %v783_v30, %v619_v49  ;;  %v980_v30 = vmul.f32 %v6616_v27, %v7227_v33  ;;  %v1763_v49 = vmul.f32 %v6668_v55, %v9444_v16 }
 0x38e   :  { %5439 = vset.pattern.permute.xlu1 %v9188_v10  ;;  %v979_v10 = vmul.f32 %v6616_v27, %v7223_v37  ;;  %v9440_v37 = vld [vmem:[#allocation38_spill] sm:$0xff] }
 0x38f   :  { %2284 = vperm.xlu1 %5439, %v9433_v44   ;;  %v784_v39 = vmul.f32 %v6604_v11, %v9440_v37  ;;  %v9442_v44 = vld [vmem:[#allocation27_spill] sm:$0xff] }
 0x390   :  { %v7604_v8 = vpop.permute.xlu1 %1228  ;;  %v1011_v14 = vadd.f32 %v979_v10, %v815_v9  ;;  %v620_v54 = vadd.f32 %v588_v34, %v9442_v44  ;;  %v1176_v10 = vmul.f32 %v6627_v47, %v7340_v24  ;;  %v9445_v34 = vld [vmem:[#allocation117_spill] sm:$0xff]  ;;  %v1568_v24 = vmul.f32 %v6656_v46, %v7513_v60  ;;  %v9448_v60 = vld [vmem:[#allocation103_spill] sm:$0xff] }
 0x391   :  { %v571_v33 = vmul.f32 %v6594_v31, %v9445_v34 }
 0x392   :  { %v1207_v52 = vadd.f32 %v1175_v5, %v1011_v14 }
 0x393   :  { %2220 = vperm.xlu1 %5439, %v7202_v56  }
 0x394   :  { %v7611_v40 = vpop.permute.xlu1 %1232  ;;  %v1403_v22 = vadd.f32 %v1371_v50, %v1207_v52 }
 0x396   :  { %v1599_v9 = vadd.f32 %v1567_v29, %v1403_v22  ;;  %v603_v29 = vadd.f32 %v571_v33, %v9447_v15  ;;  %v9452_v33 = vld [vmem:[#allocation60_spill] sm:$0xff] }
 0x397   :  { %2224 = vperm.xlu1 %5439, %v9437_v32   ;;  %v1889_v32 = vpop.permute.xlu0 %1888 }
 0x398   :  { %v1795_v50 = vadd.f32 %v1763_v49, %v1599_v9  ;;  %v1959_v52 = vmul.f32 %v6683_v26, %v1889_v32  ;;  %v9451_v32 = vld [vmem:[#allocation24_spill] sm:$0xff] }
 0x399   :  { %v7619_v62 = vpop.permute.xlu1 %1632 }
 0x39a   :  { %v1991_v22 = vadd.f32 %v1959_v52, %v1795_v50 }
 0x39b   :  { %2280 = vperm.xlu1 %5439, %v7102_v21   ;;  %v816_v21 = vadd.f32 %v784_v39, %v620_v54  ;;  %v767_v39 = vmul.f32 %v6604_v11, %v9446_v1  ;;  %v1764_v54 = vmul.f32 %v6668_v55, %v1697_v53  ;;  %v1159_v53 = vmul.f32 %v6627_v47, %v7396_v25  ;;  %v9453_v1 = vld [vmem:[#allocation91_spill] sm:$0xff] }
 0x39c   :  { %vm2023_vm4 = vcmp.gt.f32.partialorder %v1991_v22, 0.0  ;;  %v2055_v50 = vmul.f32 0.2, %v1991_v22 }
 0x39d   :  { %v1012_v14 = vadd.f32 %v980_v30, %v816_v21  ;;  %v9449_v30 = vld [vmem:[#allocation57_spill] sm:$0xff]  ;;  %v799_v49 = vadd.f32 %v767_v39, %v603_v29  ;;  %v964_v39 = vmul.f32 %v6616_v27, %v9453_v1  ;;  %v1355_v29 = vmul.f32 %v6654_v3, %v7458_v43  ;;  %v1825_v1 = vpop.permute.xlu0 %1824 }
 0x39e   :  { %v7626_v45 = vpop.permute.xlu1 %1088  ;;  %v963_v16 = vmul.f32 %v6616_v27, %v9449_v30  ;;  %v2119_v30 = vsel %vm2023_vm4, 1.0, %v9352_v7 }
 0x39f   :  { %2216 = vperm.xlu1 %5439, %v9443_v63   ;;  %v1208_v0 = vadd.f32 %v1176_v10, %v1012_v14  ;;  %v9450_v10 = vld [vmem:[#allocation118_spill] sm:$0xff]  ;;  %v768_v14 = vmul.f32 %v6604_v11, %v9451_v32 }
 0x3a0   :  { %v572_v9 = vmul.f32 %v6594_v31, %v9450_v10  ;;  %v995_v15 = vadd.f32 %v963_v16, %v799_v49  ;;  %v2087_v10 = vsel %vm2023_vm4, %v1991_v22, %v2055_v50  ;;  %v9454_v49 = vld [vmem:[#allocation81_spill] sm:$0xff]  ;;  %v7703_v22 = vld [vmem:[%s9052_s5 + $0x38] sm:$0xff]  ;;  %v9458_v50 = vld [vmem:[#allocation95_spill] sm:$0xff] }
 0x3a1   :  { %v1404_v44 = vadd.f32 %v1372_v61, %v1208_v0 }
 0x3a2   :  { %v604_v0 = vadd.f32 %v572_v9, %v9452_v33  ;;  %v9456_v9 = vld [vmem:[#allocation72_spill] sm:$0xff] }
 0x3a3   :  { %v7640_v5 = vpop.permute.xlu1 %1488  ;;  %2272 = vperm.xlu1 %5439, %v7121_v17   ;;  %v7655_v17 = vld [vmem:[%s9052_s5 + $0x58] sm:$0xff]  ;;  %v1600_v63 = vadd.f32 %v1568_v24, %v1404_v44  ;;  %v7676_v24 = vld [vmem:[%s9052_s5 + $0x48] sm:$0xff]  ;;  %v1160_v32 = vmul.f32 %v6627_v47, %v9456_v9 }
 0x3a4   :  { %v800_v25 = vadd.f32 %v768_v14, %v604_v0 }
 0x3a5   :  { %v1796_v34 = vadd.f32 %v1764_v54, %v1600_v63  ;;  %v1191_v63 = vadd.f32 %v1159_v53, %v995_v15  ;;  %v9457_v53 = vld [vmem:[#allocation126_spill] sm:$0xff] }
 0x3a6   :  { %v996_v14 = vadd.f32 %v964_v39, %v800_v25  ;;  %v1552_v25 = vmul.f32 %v6656_v46, %v7574_v6  ;;  %v7724_v6 = vld [vmem:[%s9052_s5 + $0x28] sm:$0xff] }
 0x3a7   :  { %v7650_v37 = vpop.permute.xlu1 %1492  ;;  %2208 = vperm.xlu1 %5439, %v7655_v17  }
 0x3a8   :  { %v1192_v39 = vadd.f32 %v1160_v32, %v996_v14 }
 0x3ab   :  { %2264 = vperm.xlu1 %5439, %v9448_v60   ;;  %v1551_v60 = vmul.f32 %v6656_v46, %v7566_v41  ;;  %v1747_v41 = vmul.f32 %v6668_v55, %v9457_v53 }
 0x3ac   :  { %v1893_v21 = vpop.permute.xlu1 %1892 }
 0x3ad   :  { %v1960_v61 = vmul.f32 %v6683_v26, %v1893_v21 }
 0x3af   :  { %v1992_v52 = vadd.f32 %v1960_v61, %v1796_v34  ;;  %2200 = vperm.xlu1 %5439, %v7676_v24   ;;  %v1387_v34 = vadd.f32 %v1355_v29, %v1191_v63  ;;  %v1943_v29 = vmul.f32 %v6683_v26, %v1825_v1  ;;  %v7716_v63 = vld [vmem:[%s9052_s5 + $0xa8] sm:$0xff] }
 0x3b1   :  { %v2056_v44 = vmul.f32 0.2, %v1992_v52  ;;  %v7683_v54 = vpop.permute.xlu1 %1024  ;;  %vm2024_vm5 = vcmp.gt.f32.partialorder %v1992_v52, 0.0  ;;  %v1583_v33 = vadd.f32 %v1551_v60, %v1387_v34 }
 0x3b2   :  { %v2120_v21 = vsel %vm2024_vm5, 1.0, %v9352_v7 }
 0x3b3   :  { %v2088_v16 = vsel %vm2024_vm5, %v1992_v52, %v2056_v44  ;;  %2256 = vperm.xlu1 %5439, %v9454_v49   ;;  %v7692_v43 = vpack.c.bf16 %v2120_v21, %v2119_v30  ;;  %v1356_v52 = vmul.f32 %v6654_v3, %v9458_v50  ;;  %v1779_v15 = vadd.f32 %v1747_v41, %v1583_v33 }
 0x3b4   :  { %v2157_v61 = vpack.c.bf16 %v2088_v16, %v2087_v10  ;;  %v1748_v30 = vmul.f32 %v6668_v55, %v7619_v62  ;;  %v7731_v62 = vld [vmem:[%s9052_s5 + $0x98] sm:$0xff] }
 0x3b5   :  { %9455 = vst [vmem:[#allocation104_spill] sm:$0xff] %v7692_v43  ;;  %v1388_v60 = vadd.f32 %v1356_v52, %v1192_v39  ;;  %v1975_v21 = vadd.f32 %v1943_v29, %v1779_v15  ;;  %v7743_v39 = vld [vmem:[%s9052_s5 + $0x18] sm:$0xff] }
 0x3b6   :  { %v7698_v0 = vpop.permute.xlu1 %1424  ;;  %4790 = vmatprep.subr.bf16.mxu0 %v2157_v61  ;;  %v9460_v29 = vld [vmem:[#allocation32_spill] sm:$0xff] }
 0x3b7   :  { %2192 = vperm.xlu1 %5439, %v7703_v22   ;;  %v1584_v10 = vadd.f32 %v1552_v25, %v1388_v60  ;;  %vm2007_vm6 = vcmp.gt.f32.partialorder %v1975_v21, 0.0  ;;  %v2039_v32 = vmul.f32 0.2, %v1975_v21  ;;  %v9461_v60 = vld [vmem:[#allocation79_spill] sm:$0xff] }
 0x3b8   :  { %v2103_v53 = vsel %vm2007_vm6, 1.0, %v9352_v7 }
 0x3b9   :  { %v1780_v49 = vadd.f32 %v1748_v30, %v1584_v10  ;;  %v2071_v33 = vsel %vm2007_vm6, %v1975_v21, %v2039_v32  ;;  %v585_v30 = vmul.f32 %v6594_v31, %v9461_v60  ;;  %v9462_v10 = vld [vmem:[#allocation47_spill] sm:$0xff] }
 0x3ba   :  { %v7711_v44 = vpop.permute.xlu1 %1428 }
 0x3bb   :  { %2248 = vperm.xlu1 %5439, %v7716_v63  }
 0x3bf   :  { %v1829_v16 = vpop.permute.xlu1 %1828  ;;  %2184 = vperm.xlu1 %5439, %v7724_v6  }
 0x3c0   :  { %v1944_v9 = vmul.f32 %v6683_v26, %v1829_v16  ;;  %v781_v16 = vmul.f32 %v6604_v11, %v9462_v10  ;;  %v1173_v10 = vmul.f32 %v6627_v47, %v7495_v51 }
 0x3c2   :  { %v1976_v14 = vadd.f32 %v1944_v9, %v1780_v49  ;;  %v5733_v49 = vld [vmem:[%s9052_s5 + $0xf8] sm:$0xff] }
 0x3c3   :  { %2240 = vperm.xlu1 %5439, %v7731_v62   ;;  %v9463_v9 = vld [vmem:[#allocation16_spill] sm:$0xff] }
 0x3c4   :  { %v2040_v34 = vmul.f32 0.2, %v1976_v14  ;;  %v7734_v61 = vpop.permute.xlu1 %1284  ;;  %vm2008_vm7 = vcmp.gt.f32.partialorder %v1976_v14, 0.0  ;;  %v586_v32 = vmul.f32 %v6594_v31, %v9463_v9 }
 0x3c5   :  { %v2104_v41 = vsel %vm2008_vm7, 1.0, %v9352_v7 }
 0x3c6   :  { %v2072_v1 = vsel %vm2008_vm7, %v1976_v14, %v2040_v34  ;;  %v7738_v50 = vpack.c.bf16 %v2104_v41, %v2103_v53  ;;  %v9464_v14 = vld [vmem:[#allocation105_spill] sm:$0xff]  ;;  %v977_v41 = vmul.f32 %v6616_v27, %v7433_v57  ;;  %v978_v57 = vmul.f32 %v6616_v27, %v7436_v23 }
 0x3c7   :  { %v2149_v52 = vpack.c.bf16 %v2072_v1, %v2071_v33  ;;  %2176 = vperm.xlu1 %5439, %v7743_v39   ;;  %v9465_v34 = vld [vmem:[#allocation17_spill] sm:$0xff] }
 0x3c8   :  { %9459 = vst [vmem:[#allocation37_spill] sm:$0xff] %v7738_v50  ;;  %v617_v53 = vadd.f32 %v585_v30, %v9465_v34  ;;  %v9466_v33 = vld [vmem:[#allocation49_spill] sm:$0xff] }
 0x3c9   :  { %v1685_v15 = vpop.permute.xlu1 %1684  ;;  %4791 = vmatpush3.bf16.msra.mxu0 %v2149_v52  ;;  %v618_v1 = vadd.f32 %v586_v32, %v9466_v33  ;;  %v1565_v33 = vmul.f32 %v6656_v46, %v7640_v5  ;;  %v7791_v23 = vld [vmem:[%s9052_s5 + $0xe0] sm:$0xff]  ;;  %v9470_v5 = vld [vmem:[#allocation48_spill] sm:$0xff] }
 0x3ca   :  { %v813_v60 = vadd.f32 %v781_v16, %v617_v53 }
 0x3cb   :  { %2232 = vperm.xlu1 %5439, %v9460_v29  }
 0x3cc   :  { %v1009_v32 = vadd.f32 %v977_v41, %v813_v60  ;;  %v1157_v41 = vmul.f32 %v6627_v47, %v7554_v20  ;;  %v570_v60 = vmul.f32 %v6594_v31, %v9470_v5  ;;  %v1566_v20 = vmul.f32 %v6656_v46, %v7650_v37 }
 0x3cd   :  { %v1689_v25 = vpop.permute.xlu1 %1688 }
 0x3ce   :  { %v1205_v53 = vadd.f32 %v1173_v10, %v1009_v32  ;;  %v766_v10 = vmul.f32 %v6604_v11, %v7381_v12 }
 0x3cf   :  { %2168 = vperm.xlu1 %5439, %v7360_v4   ;;  %v569_v4 = vmul.f32 %v6594_v31, %v9464_v14  ;;  %v9468_v14 = vld [vmem:[#allocation43_spill] sm:$0xff] }
 0x3d0   :  { %v765_v30 = vmul.f32 %v6604_v11, %v9468_v14 }
 0x3d1   :  { %v601_v52 = vadd.f32 %v569_v4, %v7365_v36  ;;  %v1369_v36 = vmul.f32 %v6654_v3, %v7590_v13  ;;  %v9469_v4 = vld [vmem:[#allocation59_spill] sm:$0xff] }
 0x3d2   :  { %v7750_v21 = vpop.permute.xlu1 %1224  ;;  %v961_v16 = vmul.f32 %v6616_v27, %v9469_v4 }
 0x3d3   :  { %5442 = vset.pattern.permute.xlu1 %v9320_v35  ;;  %v797_v51 = vadd.f32 %v765_v30, %v601_v52  ;;  %v1761_v52 = vmul.f32 %v6668_v55, %v1685_v15  ;;  %v1353_v30 = vmul.f32 %v6654_v3, %v7604_v8  ;;  %v9471_v15 = vld [vmem:[#allocation30_spill] sm:$0xff]  ;;  %v1549_v8 = vmul.f32 %v6656_v46, %v7698_v0 }
 0x3d4   :  { %2897 = vperm.xlu1 %5442, %v5733_v49   ;;  %v9467_v49 = vld [vmem:[#allocation41_spill] sm:$0xff]  ;;  %v602_v32 = vadd.f32 %v570_v60, %v9471_v15  ;;  %v1354_v15 = vmul.f32 %v6654_v3, %v7611_v40 }
 0x3d5   :  { %v782_v9 = vmul.f32 %v6604_v11, %v9467_v49  ;;  %v993_v14 = vadd.f32 %v961_v16, %v797_v51  ;;  %v1762_v51 = vmul.f32 %v6668_v55, %v1689_v25 }
 0x3d7   :  { %v7767_v29 = vpop.permute.xlu1 %1624  ;;  %v814_v34 = vadd.f32 %v782_v9, %v618_v1  ;;  %v1401_v1 = vadd.f32 %v1369_v36, %v1205_v53  ;;  %v962_v36 = vmul.f32 %v6616_v27, %v7454_v59  ;;  %v1189_v12 = vadd.f32 %v1157_v41, %v993_v14  ;;  %v7822_v59 = vld [vmem:[%s9052_s5 + $0xd0] sm:$0xff] }
 0x3d8   :  { %2829 = vperm.xlu1 %5442, %v7202_v56   ;;  %v1174_v56 = vmul.f32 %v6627_v47, %v7502_v28  ;;  %v1370_v28 = vmul.f32 %v6654_v3, %v7593_v58  ;;  %v5735_v58 = vld [vmem:[%s9052_s5 + $0x60] sm:$0xff] }
 0x3d9   :  { %v1010_v13 = vadd.f32 %v978_v57, %v814_v34  ;;  %v1597_v57 = vadd.f32 %v1565_v33, %v1401_v1  ;;  %v798_v33 = vadd.f32 %v766_v10, %v602_v32  ;;  %v9473_v10 = vld [vmem:[#allocation44_spill] sm:$0xff]  ;;  %v9476_v32 = vld [vmem:[#allocation89_spill] sm:$0xff] }
 0x3da   :  { %v780_v14 = vmul.f32 %v6604_v11, %v9473_v10 }
 0x3db   :  { %v1206_v9 = vadd.f32 %v1174_v56, %v1010_v13  ;;  %v1793_v34 = vadd.f32 %v1761_v52, %v1597_v57  ;;  %v9472_v56 = vld [vmem:[#allocation19_spill] sm:$0xff]  ;;  %v1385_v13 = vadd.f32 %v1353_v30, %v1189_v12  ;;  %v994_v0 = vadd.f32 %v962_v36, %v798_v33  ;;  %v1817_v52 = vpop.permute.xlu0 %1816  ;;  %v9474_v30 = vld [vmem:[#allocation73_spill] sm:$0xff] }
 0x3dc   :  { %v7786_v49 = vpop.permute.xlu1 %1480  ;;  %2885 = vperm.xlu1 %5442, %v7791_v23   ;;  %v584_v53 = vmul.f32 %v6594_v31, %v9472_v56  ;;  %v1158_v57 = vmul.f32 %v6627_v47, %v9474_v30  ;;  %v5737_v56 = vld [vmem:[%s9052_s5 + $0xf0] sm:$0xff] }
 0x3dd   :  { %v1402_v4 = vadd.f32 %v1370_v28, %v1206_v9  ;;  %v1581_v28 = vadd.f32 %v1549_v8, %v1385_v13 }
 0x3de   :  { %v616_v41 = vadd.f32 %v584_v53, %v7471_v48  ;;  %v583_v48 = vmul.f32 %v6594_v31, %v9476_v32  ;;  %v1550_v53 = vmul.f32 %v6656_v46, %v7711_v44  ;;  %v9483_v32 = vld [vmem:[#allocation21_spill] sm:$0xff] }
 0x3df   :  { %v1598_v1 = vadd.f32 %v1566_v20, %v1402_v4  ;;  %v9475_v20 = vld [vmem:[#allocation127_spill] sm:$0xff]  ;;  %v9477_v4 = vmov 3  }
 0x3e0   :  { %2821 = vperm.xlu1 %5442, %v5735_v58   ;;  %v1745_v58 = vmul.f32 %v6668_v55, %v9475_v20 }
 0x3e1   :  { %v1881_v16 = vpop.permute.xlu1 %1880  ;;  %v1794_v60 = vadd.f32 %v1762_v51, %v1598_v1  ;;  %v1190_v51 = vadd.f32 %v1158_v57, %v994_v0  ;;  %v764_v1 = vmul.f32 %v6604_v11, %v7537_v18 }
 0x3e2   :  { %v1957_v37 = vmul.f32 %v6683_v26, %v1881_v16  ;;  %v9478_v16 = vld [vmem:[#allocation115_spill] sm:$0xff]  ;;  %v1777_v40 = vadd.f32 %v1745_v58, %v1581_v28 }
 0x3e3   :  { %v568_v8 = vmul.f32 %v6594_v31, %v9478_v16  ;;  %v975_v16 = vmul.f32 %v6616_v27, %v7583_v2  ;;  %v9487_v2 = vld [vmem:[#allocation45_spill] sm:$0xff] }
 0x3e4   :  { %v1989_v5 = vadd.f32 %v1957_v37, %v1793_v34  ;;  %2877 = vperm.xlu1 %5442, %v7822_v59   ;;  %v812_v34 = vadd.f32 %v780_v14, %v616_v41  ;;  %v1941_v37 = vmul.f32 %v6683_v26, %v1817_v52  ;;  %v1386_v41 = vadd.f32 %v1354_v15, %v1190_v51  ;;  %v9481_v14 = vld [vmem:[#allocation66_spill] sm:$0xff] }
 0x3e5   :  { %v1885_v25 = vpop.permute.xlu1 %1884  ;;  %v1746_v52 = vmul.f32 %v6668_v55, %v7767_v29  ;;  %v779_v18 = vmul.f32 %v6604_v11, %v9481_v14  ;;  %v600_v57 = vadd.f32 %v568_v8, %v7528_v19  ;;  %v5738_v29 = vld [vmem:[%s9052_s5 + $0x50] sm:$0xff] }
 0x3e6   :  { %v1958_v9 = vmul.f32 %v6683_v26, %v1885_v25  ;;  %v2053_v36 = vmul.f32 0.2, %v1989_v5  ;;  %vm2021_vm8 = vcmp.gt.f32.partialorder %v1989_v5, 0.0  ;;  %v1973_v20 = vadd.f32 %v1941_v37, %v1777_v40  ;;  %v9489_v14 = vld [vmem:[#allocation87_spill] sm:$0xff] }
 0x3e7   :  { %v2117_v0 = vsel %vm2021_vm8, 1.0, %v9352_v7  ;;  %v1582_v58 = vadd.f32 %v1550_v53, %v1386_v41  ;;  %v796_v8 = vadd.f32 %v764_v1, %v600_v57  ;;  %v9485_v53 = vld [vmem:[#allocation75_spill] sm:$0xff]  ;;  %v9486_v41 = vld [vmem:[#allocation77_spill] sm:$0xff] }
 0x3e8   :  { %v1990_v12 = vadd.f32 %v1958_v9, %v1794_v60  ;;  %5443 = vset.pattern.permute.xlu1 %v9477_v4  ;;  %v2085_v28 = vsel %vm2021_vm8, %v1989_v5, %v2053_v36  ;;  %v9480_v9 = vld [vmem:[#allocation61_spill] sm:$0xff]  ;;  %v9482_v5 = vld [vmem:[#allocation46_spill] sm:$0xff]  ;;  %v615_v36 = vadd.f32 %v583_v48, %v9483_v32  ;;  %vm2005_vm10 = vcmp.gt.f32.partialorder %v1973_v20, 0.0 }
 0x3e9   :  { %3590 = vperm.xlu1 %5443, %v5737_v56   ;;  %v976_v10 = vmul.f32 %v6616_v27, %v9480_v9  ;;  %v763_v15 = vmul.f32 %v6604_v11, %v9482_v5  ;;  %v9484_v56 = vld [vmem:[#allocation63_spill] sm:$0xff]  ;;  %v1778_v37 = vadd.f32 %v1746_v52, %v1582_v58  ;;  %v1156_v11 = vmul.f32 %v6627_v47, %v9486_v41  ;;  %v9488_v1 = vld [vmem:[#allocation97_spill] sm:$0xff] }
 0x3ea   :  { %v2054_v33 = vmul.f32 0.2, %v1990_v12  ;;  %v7846_v13 = vpop.permute.xlu1 %1420  ;;  %vm2022_vm9 = vcmp.gt.f32.partialorder %v1990_v12, 0.0  ;;  %v960_v19 = vmul.f32 %v6616_v27, %v9484_v56  ;;  %v811_v48 = vadd.f32 %v779_v18, %v615_v36 }
 0x3eb   :  { %v2118_v25 = vsel %vm2022_vm9, 1.0, %v9352_v7  ;;  %v1368_v52 = vmul.f32 %v6654_v3, %v9488_v1  ;;  %v1563_v58 = vmul.f32 %v6656_v46, %v7786_v49  ;;  %v959_v32 = vmul.f32 %v6616_v27, %v7600_v42  ;;  %v9493_v1 = vld [vmem:[#allocation128_spill] sm:$0xff] }
 0x3ec   :  { %v2086_v60 = vsel %vm2022_vm9, %v1990_v12, %v2054_v33  ;;  %v7856_v44 = vpack.c.bf16 %v2118_v25, %v2117_v0  ;;  %v1008_v12 = vadd.f32 %v976_v10, %v812_v34  ;;  %v1172_v33 = vmul.f32 %v6627_v47, %v9485_v53 }
 0x3ed   :  { %v2156_v30 = vpack.c.bf16 %v2086_v60, %v2085_v28  ;;  %5444 = vset.pattern.permute.xlu1 %v9320_v35  ;;  %v1171_v34 = vmul.f32 %v6627_v47, %v7626_v45  ;;  %v567_v0 = vmul.f32 %v6594_v31, %v9487_v2  ;;  %v2037_v25 = vmul.f32 0.2, %v1973_v20 }
 0x3ee   :  { %9479 = vst [vmem:[#allocation58_spill] sm:$0xff] %v7856_v44  ;;  %2813 = vperm.xlu1 %5444, %v5738_v29   ;;  %v1204_v60 = vadd.f32 %v1172_v33, %v1008_v12  ;;  %v1007_v9 = vadd.f32 %v975_v16, %v811_v48  ;;  %v1367_v10 = vmul.f32 %v6654_v3, %v7734_v61  ;;  %v2101_v29 = vsel %vm2005_vm10, 1.0, %v9352_v7 }
 0x3ef   :  { %v1821_v51 = vpop.permute.xlu1 %1820  ;;  %4792 = vmatprep.subr.bf16.mxu0 %v2156_v30  ;;  %v599_v18 = vadd.f32 %v567_v0, %v9489_v14  ;;  %v992_v30 = vadd.f32 %v960_v19, %v796_v8  ;;  %v2069_v61 = vsel %vm2005_vm10, %v1973_v20, %v2037_v25  ;;  %v5739_v19 = vld [vmem:[%s9052_s5 + $0x78] sm:$0xff]  ;;  %v1155_v42 = vmul.f32 %v6627_v47, %v7683_v54  ;;  %v1873_v20 = vpop.permute.xlu0 %1872  ;;  %v5740_v47 = vld [vmem:[%s9052_s5 + $0xc8] sm:$0xff]  ;;  %v9492_v25 = vld [vmem:[#allocation99_spill] sm:$0xff] }
 0x3f0   :  { %v1942_v40 = vmul.f32 %v6683_v26, %v1821_v51  ;;  %v1203_v31 = vadd.f32 %v1171_v34, %v1007_v9  ;;  %v1352_v51 = vmul.f32 %v6654_v3, %v7750_v21  ;;  %v1548_v53 = vmul.f32 %v6656_v46, %v7846_v13  ;;  %v9491_v21 = vld [vmem:[#allocation110_spill] sm:$0xff] }
 0x3f1   :  { %v795_v27 = vadd.f32 %v763_v15, %v599_v18  ;;  %v1564_v33 = vmul.f32 %v6656_v46, %v9491_v21  ;;  %v1400_v48 = vadd.f32 %v1368_v52, %v1204_v60  ;;  %v1955_v54 = vmul.f32 %v6683_v26, %v1873_v20 }
 0x3f2   :  { %v1974_v28 = vadd.f32 %v1942_v40, %v1778_v37  ;;  %2817 = vperm.xlu1 %5444, %v7655_v17   ;;  %v1399_v16 = vadd.f32 %v1367_v10, %v1203_v31  ;;  %v1188_v37 = vadd.f32 %v1156_v11, %v992_v30  ;;  %v1760_v52 = vmul.f32 %v6668_v55, %v9493_v1  ;;  %v5481_v1 = vld [vmem:[#allocation2 + $0x44] ss:$8 sps:$4 sm:$0xff]  }
 0x3f3   :  { %v991_v41 = vadd.f32 %v959_v32, %v795_v27  ;;  %v1813_v60 = vpop.permute.xlu0 %1812  ;;  %v1596_v9 = vadd.f32 %v1564_v33, %v1400_v48 }
 0x3f4   :  { %v2038_v45 = vmul.f32 0.2, %v1974_v28  ;;  %v1677_v57 = vpop.permute.xlu1 %1676  ;;  %vm2006_vm11 = vcmp.gt.f32.partialorder %v1974_v28, 0.0  ;;  %v1595_v40 = vadd.f32 %v1563_v58, %v1399_v16  ;;  %v1384_v34 = vadd.f32 %v1352_v51, %v1188_v37 }
 0x3f5   :  { %v2102_v5 = vsel %vm2006_vm11, 1.0, %v9352_v7  ;;  %v1759_v49 = vmul.f32 %v6668_v55, %v1677_v57  ;;  %v1187_v15 = vadd.f32 %v1155_v42, %v991_v41  ;;  %v1940_v30 = vmul.f32 %v6683_v26, %v1813_v60  ;;  %v9494_v57 = vld [vmem:[#allocation112_spill] sm:$0xff]  ;;  %v5745_v60 = vld [vmem:[%s9052_s5 + $0xc0] sm:$0xff] }
 0x3f6   :  { %v2070_v36 = vsel %vm2006_vm11, %v1974_v28, %v2038_v45  ;;  %5445 = vset.pattern.permute.xlu1 %v9477_v4  ;;  %v7898_v12 = vpack.c.bf16 %v2102_v5, %v2101_v29  ;;  %v1580_v13 = vadd.f32 %v1548_v53, %v1384_v34  ;;  %v1351_v28 = vmul.f32 %v6654_v3, %v9492_v25  ;;  %v5469_v34 = vld [vmem:[#allocation2] ss:$8 sps:$4 sm:$0xff]   ;;  %v5478_v25 = vld [vmem:[#allocation2 + $0x34] ss:$8 sps:$4 sm:$0xff]  }
 0x3f7   :  { %v2148_v56 = vpack.c.bf16 %v2070_v36, %v2069_v61  ;;  %3530 = vperm.xlu1 %5445, %v5739_v19   ;;  %v1791_v2 = vadd.f32 %v1759_v49, %v1595_v40  ;;  %v1547_v31 = vmul.f32 %v6656_v46, %v9494_v57  ;;  %v1792_v58 = vadd.f32 %v1760_v52, %v1596_v9  ;;  %v5484_v52 = vld [vmem:[#allocation2 + $0x54] ss:$8 sps:$4 sm:$0xff]   ;;  %v5746_v9 = vld [vmem:[%s9052_s5 + $0x20] sm:$0xff] }
 0x3f8   :  { %9490 = vst [vmem:[#allocation6_spill] sm:$0xff] %v7898_v12  ;;  %v1613_v8 = vpop.permute.xlu1 %1612  ;;  %v1383_v18 = vadd.f32 %v1351_v28, %v1187_v15  ;;  %v5742_v15 = vld [vmem:[%s9052_s5 + $0x68] sm:$0xff]  ;;  %v5480_v28 = vld [vmem:[#allocation2 + $0x30] ss:$8 sps:$4 sm:$0xff]  }
 0x3f9   :  { %4793 = vmatpush3.bf16.msra.mxu0 %v2148_v56  ;;  %v1987_v10 = vadd.f32 %v1955_v54, %v1791_v2  ;;  %v1743_v3 = vmul.f32 %v6668_v55, %v1613_v8  ;;  %v5472_v2 = vld [vmem:[#allocation2 + $0x14] ss:$8 sps:$4 sm:$0xff]   ;;  %v5475_v54 = vld [vmem:[#allocation2 + $0x24] ss:$8 sps:$4 sm:$0xff]  }
 0x3fa   :  { %v1579_v61 = vadd.f32 %v1547_v31, %v1383_v18  ;;  %v5492_v18 = vld [vmem:[#allocation2 + $0x70] ss:$8 sps:$4 sm:$0xff]   ;;  %v5496_v31 = vld [vmem:[#allocation2 + $0x94] ss:$8 sps:$4 sm:$0xff]  }
 0x3fb   :  { %5446 = vset.pattern.permute.xlu1 %v9320_v35  ;;  %v2051_v32 = vmul.f32 0.2, %v1987_v10  ;;  %vm2019_vm12 = vcmp.gt.f32.partialorder %v1987_v10, 0.0  ;;  %v5748_v57 = vld [vmem:[%s9052_s5 + $0x10] sm:$0xff] }
 0x3fc   :  { %v1617_v0 = vpop.permute.xlu1 %1616  ;;  %2873 = vperm.xlu1 %5446, %v5740_v47   ;;  %v1775_v51 = vadd.f32 %v1743_v3, %v1579_v61  ;;  %v2115_v56 = vsel %vm2019_vm12, 1.0, %v9352_v7  ;;  %v5474_v47 = vld [vmem:[#allocation2 + $0x10] ss:$8 sps:$4 sm:$0xff]  }
 0x3fd   :  { %v1744_v11 = vmul.f32 %v6668_v55, %v1617_v0  ;;  %v5741_v55 = vld [vmem:[%s9052_s5 + $0x40] sm:$0xff]  ;;  %v2083_v46 = vsel %vm2019_vm12, %v1987_v10, %v2051_v32  ;;  %v5743_v0 = vld [vmem:[%s9052_s5 + $0xb8] sm:$0xff] }
 0x3fe   :  { %v5489_v10 = vld [vmem:[#allocation2 + $0x60] ss:$8 sps:$4 sm:$0xff]   ;;  %v5498_v3 = vld [vmem:[#allocation2 + $0x90] ss:$8 sps:$4 sm:$0xff]   ;;  %v5502_v32 = vld [vmem:[#allocation2 + $0xb4] ss:$8 sps:$4 sm:$0xff]  }
 0x3ff   :  { %v1776_v14 = vadd.f32 %v1744_v11, %v1580_v13  ;;  %v5477_v13 = vld [vmem:[#allocation2 + $0x20] ss:$8 sps:$4 sm:$0xff]   ;;  %v5744_v11 = vld [vmem:[%s9052_s5 + $0x30] sm:$0xff] }
 0x400   :  { %5447 = vset.pattern.permute.xlu1 %v9477_v4 }
 0x401   :  { %v1877_v45 = vpop.permute.xlu1 %1876  ;;  %3582 = vperm.xlu1 %5447, %v7791_v23   ;;  %v1972_v5 = vadd.f32 %v1940_v30, %v1776_v14  ;;  %v5490_v14 = vld [vmem:[#allocation2 + $0x74] ss:$8 sps:$4 sm:$0xff]   ;;  %v5493_v30 = vld [vmem:[#allocation2 + $0x84] ss:$8 sps:$4 sm:$0xff]  }
 0x402   :  { %v1956_v29 = vmul.f32 %v6683_v26, %v1877_v45  ;;  %v5747_v45 = vld [vmem:[%s9052_s5 + $0xb0] sm:$0xff] }
 0x403   :  { %vm2004_vm14 = vcmp.gt.f32.partialorder %v1972_v5, 0.0  ;;  %v2036_v20 = vmul.f32 0.2, %v1972_v5 }
 0x404   :  { %v1988_v36 = vadd.f32 %v1956_v29, %v1792_v58  ;;  %v2100_v53 = vsel %vm2004_vm14, 1.0, %v9352_v7  ;;  %v5499_v58 = vld [vmem:[#allocation2 + $0xa4] ss:$8 sps:$4 sm:$0xff]  }
 0x405   :  { %v1809_v16 = vpop.permute.xlu1 %1808  ;;  %5448 = vset.pattern.permute.xlu1 %v9320_v35  ;;  %v2068_v33 = vsel %vm2004_vm14, %v1972_v5, %v2036_v20  ;;  %v5749_v29 = vld [vmem:[%s9052_s5 + $0x88] sm:$0xff] }
 0x406   :  { %v2052_v49 = vmul.f32 0.2, %v1988_v36  ;;  %v1939_v23 = vmul.f32 %v6683_v26, %v1809_v16  ;;  %vm2020_vm13 = vcmp.gt.f32.partialorder %v1988_v36, 0.0  ;;  %2805 = vperm.xlu1 %5448, %v5741_v55   ;;  %v5501_v5 = vld [vmem:[#allocation2 + $0xa0] ss:$8 sps:$4 sm:$0xff]  }
 0x407   :  { %v2116_v19 = vsel %vm2020_vm13, 1.0, %v9352_v7  ;;  %v5751_v16 = vld [vmem:[%s9052_s5] sm:$0xff] }
 0x408   :  { %v1971_v27 = vadd.f32 %v1939_v23, %v1775_v51  ;;  %v2084_v42 = vsel %vm2020_vm13, %v1988_v36, %v2052_v49  ;;  %v7936_v8 = vpack.c.bf16 %v2116_v19, %v2115_v56  ;;  %v5750_v36 = vld [vmem:[%s9052_s5 + $0xa0] sm:$0xff]  ;;  %v5752_v23 = vld [vmem:[%s9052_s5 + $0x8] sm:$0xff]  ;;  %v5510_v19 = vld [vmem:[#allocation2 + $0xd0] ss:$8 sps:$4 sm:$0xff]  }
 0x409   :  { %v2155_v37 = vpack.c.bf16 %v2084_v42, %v2083_v46  ;;  %v5505_v51 = vld [vmem:[#allocation2 + $0xc4] ss:$8 sps:$4 sm:$0xff]   ;;  %v5507_v46 = vld [vmem:[#allocation2 + $0xc0] ss:$8 sps:$4 sm:$0xff]  }
 0x40a   :  { %9495 = vst [vmem:[#allocation39_spill] sm:$0xff] %v7936_v8  ;;  %v2035_v40 = vmul.f32 0.2, %v1971_v27  ;;  %vm2003_vm15 = vcmp.gt.f32.partialorder %v1971_v27, 0.0  ;;  %2809 = vperm.xlu1 %5448, %v7676_v24   ;;  %v7991_v61 = vpop.permute.xlu1 %2284  ;;  %v5513_v20 = vld [vmem:[#allocation2 + $0xe0] ss:$8 sps:$4 sm:$0xff]  }
 0x40b   :  { %4794 = vmatprep.subr.bf16.mxu0 %v2155_v37  ;;  %v2099_v26 = vsel %vm2003_vm15, 1.0, %v9352_v7  ;;  %v5514_v37 = vld [vmem:[#allocation2 + $0xf4] ss:$8 sps:$4 sm:$0xff]  }
 0x40c   :  { %v2067_v21 = vsel %vm2003_vm15, %v1971_v27, %v2035_v40  ;;  %v7941_v41 = vpack.c.bf16 %v2100_v53, %v2099_v26  ;;  %v5511_v27 = vld [vmem:[#allocation2 + $0xe4] ss:$8 sps:$4 sm:$0xff]   ;;  %v5516_v26 = vld [vmem:[#allocation2 + $0xf0] ss:$8 sps:$4 sm:$0xff]  }
 0x40d   :  { %v2147_v48 = vpack.c.bf16 %v2068_v33, %v2067_v21 }
 0x40e   :  { %9496 = vst [vmem:[#allocation53_spill] sm:$0xff] %v7941_v41  ;;  %5449 = vset.pattern.permute.xlu1 %v9477_v4  ;;  %v8000_v49 = vpop.permute.xlu1 %2220 }
 0x40f   :  { %4795 = vmatpush3.bf16.msra.mxu0 %v2147_v48  ;;  %3522 = vperm.xlu1 %5449, %v5742_v15  }
 0x412   :  { %2484 = vmatmul.mubr.bf16.vlgmr.msra.gmra.mxu0 %v5469_v34  ;;  %v8005_v55 = vpop.permute.xlu1 %2224 }
 0x413   :  { %2491 = vmatprep.mubr.bf16.mxu0 %v5472_v2  ;;  %5450 = vset.pattern.permute.xlu1 %v9320_v35 }
 0x414   :  { %2865 = vperm.xlu1 %5450, %v5743_v0  }
 0x416   :  { %v8009_v56 = vpop.permute.xlu1 %2280 }
 0x418   :  { %5451 = vset.pattern.permute.xlu1 %v9477_v4 }
 0x419   :  { %3574 = vperm.xlu1 %5451, %v7822_v59   ;;  %v5483_v59 = vld [vmem:[#allocation2 + $0x40] ss:$8 sps:$4 sm:$0xff]  }
 0x41a   :  { %2492 = vmatmul.mubr.bf16.gmra.mxu0 %v5474_v47  ;;  %v8013_v42 = vpop.permute.xlu1 %2216 }
 0x41b   :  { %2499 = vmatprep.mubr.bf16.mxu0 %v5475_v54 }
 0x41d   :  { %5452 = vset.pattern.permute.xlu1 %v9320_v35 }
 0x41e   :  { %2797 = vperm.xlu1 %5452, %v5744_v11   ;;  %v8015_v40 = vpop.permute.xlu1 %2272 }
 0x422   :  { %2500 = vmatmul.mubr.bf16.gmra.mxu0 %v5477_v13  ;;  %2801 = vperm.xlu1 %5452, %v7703_v22   ;;  %v8027_v33 = vpop.permute.xlu1 %2208 }
 0x423   :  { %2507 = vmatprep.mubr.bf16.mxu0 %v5478_v25 }
 0x426   :  { %5453 = vset.pattern.permute.xlu1 %v9477_v4  ;;  %v8031_v34 = vpop.permute.xlu1 %2264 }
 0x427   :  { %3514 = vperm.xlu1 %5453, %v7655_v17   ;;  %v5486_v17 = vld [vmem:[#allocation2 + $0x50] ss:$8 sps:$4 sm:$0xff]  }
 0x42a   :  { %2508 = vmatmul.mubr.bf16.gmra.mxu0 %v5480_v28  ;;  %v8035_v15 = vpop.permute.xlu1 %2200 }
 0x42b   :  { %2515 = vmatprep.mubr.bf16.mxu0 %v5481_v1  ;;  %5454 = vset.pattern.permute.xlu1 %v9320_v35 }
 0x42c   :  { %2857 = vperm.xlu1 %5454, %v7716_v63   ;;  %v5487_v63 = vld [vmem:[#allocation2 + $0x64] ss:$8 sps:$4 sm:$0xff]  }
 0x42e   :  { %v8039_v47 = vpop.permute.xlu1 %2256 }
 0x430   :  { %5455 = vset.pattern.permute.xlu1 %v9477_v4 }
 0x431   :  { %3566 = vperm.xlu1 %5455, %v5745_v60  }
 0x432   :  { %2516 = vmatmul.mubr.bf16.gmra.mxu0 %v5483_v59  ;;  %v8043_v13 = vpop.permute.xlu1 %2192 }
 0x433   :  { %2523 = vmatprep.mubr.bf16.mxu0 %v5484_v52 }
 0x435   :  { %5456 = vset.pattern.permute.xlu1 %v9320_v35 }
 0x436   :  { %2789 = vperm.xlu1 %5456, %v5746_v9   ;;  %v8047_v25 = vpop.permute.xlu1 %2248 }
 0x43a   :  { %2524 = vmatmul.mubr.bf16.gmra.mxu0 %v5486_v17  ;;  %2793 = vperm.xlu1 %5456, %v7724_v6   ;;  %v2185_v1 = vpop.permute.xlu1 %2184 }
 0x43b   :  { %2531 = vmatprep.mubr.bf16.mxu0 %v5487_v63 }
 0x43e   :  { %5457 = vset.pattern.permute.xlu1 %v9477_v4  ;;  %v8051_v52 = vpop.permute.xlu1 %2240 }
 0x43f   :  { %3506 = vperm.xlu1 %5457, %v7676_v24   ;;  %v5495_v24 = vld [vmem:[#allocation2 + $0x80] ss:$8 sps:$4 sm:$0xff]  }
 0x442   :  { %2532 = vmatmul.mubr.bf16.gmra.mxu0 %v5489_v10  ;;  %v2177_v17 = vpop.permute.xlu1 %2176 }
 0x443   :  { %2539 = vmatprep.mubr.bf16.mxu0 %v5490_v14  ;;  %5458 = vset.pattern.permute.xlu1 %v9320_v35 }
 0x444   :  { %2849 = vperm.xlu1 %5458, %v7731_v62  }
 0x446   :  { %v8055_v10 = vpop.permute.xlu1 %2232 }
 0x448   :  { %5459 = vset.pattern.permute.xlu1 %v9477_v4 }
 0x449   :  { %3558 = vperm.xlu1 %5459, %v5747_v45  }
 0x44a   :  { %2540 = vmatmul.mubr.bf16.gmra.mxu0 %v5492_v18 }
 0x44b   :  { %2547 = vmatprep.mubr.bf16.mxu0 %v5493_v30 }
 0x44d   :  { %5460 = vset.pattern.permute.xlu1 %v9320_v35 }
 0x44e   :  { %2781 = vperm.xlu1 %5460, %v5748_v57  }
 0x452   :  { %2548 = vmatmul.mubr.bf16.gmra.mxu0 %v5495_v24  ;;  %2785 = vperm.xlu1 %5460, %v7743_v39  }
 0x453   :  { %2555 = vmatprep.mubr.bf16.mxu0 %v5496_v31  ;;  %v2169_v31 = vpop.permute.xlu1 %2168 }
 0x456   :  { %5461 = vset.pattern.permute.xlu1 %v9477_v4 }
 0x457   :  { %3498 = vperm.xlu1 %5461, %v7703_v22   ;;  %v5504_v22 = vld [vmem:[#allocation2 + $0xb0] ss:$8 sps:$4 sm:$0xff]  }
 0x45a   :  { %2556 = vmatmul.mubr.bf16.gmra.mxu0 %v5498_v3 }
 0x45b   :  { %2563 = vmatprep.mubr.bf16.mxu0 %v5499_v58  ;;  %5463 = vset.pattern.permute.xlu1 %v9320_v35 }
 0x45c   :  { %2841 = vperm.xlu1 %5463, %v5749_v29  }
 0x460   :  { %5464 = vset.pattern.permute.xlu1 %v9477_v4 }
 0x461   :  { %3550 = vperm.xlu1 %5464, %v5750_v36  }
 0x462   :  { %2564 = vmatmul.mubr.bf16.gmra.mxu0 %v5501_v5 }
 0x463   :  { %2571 = vmatprep.mubr.bf16.mxu0 %v5502_v32 }
 0x465   :  { %5465 = vset.pattern.permute.xlu1 %v9320_v35  ;;  %v5508_v35 = vld [vmem:[#allocation2 + $0xd4] ss:$8 sps:$4 sm:$0xff]  }
 0x466   :  { %2773 = vperm.xlu1 %5465, %v5751_v16  }
 0x46a   :  { %2572 = vmatmul.mubr.bf16.gmra.mxu0 %v5504_v22  ;;  %2777 = vperm.xlu1 %5465, %v5752_v23  }
 0x46b   :  { %2579 = vmatprep.mubr.bf16.mxu0 %v5505_v51 }
 0x46e   :  { %5466 = vset.pattern.permute.xlu1 %v9477_v4 }
 0x46f   :  { %3490 = vperm.xlu1 %5466, %v7724_v6   ;;  %v8017_v6 = vpop.permute.xlu0 %2288 }
 0x472   :  { %2580 = vmatmul.mubr.bf16.gmra.mxu0 %v5507_v46 }
 0x473   :  { %2587 = vmatprep.mubr.bf16.mxu0 %v5508_v35  ;;  %3546 = vperm.xlu1 %5466, %v7731_v62   ;;  %v8019_v62 = vpop.permute.xlu0 %2276 }
 0x477   :  { %3482 = vperm.xlu1 %5466, %v7743_v39   ;;  %v8021_v53 = vpop.permute.xlu0 %2212 }
 0x47a   :  { %2588 = vmatmul.mubr.bf16.gmra.mxu0 %v5510_v19 }
 0x47b   :  { %2595 = vmatprep.mubr.bf16.mxu0 %v5511_v27  ;;  %3538 = vperm.xlu1 %5466, %v5749_v29   ;;  %v8023_v39 = vpop.permute.xlu0 %2268 }
 0x47f   :  { %3474 = vperm.xlu1 %5466, %v5752_v23   ;;  %v8025_v21 = vpop.permute.xlu0 %2204 }
 0x482   :  { %2596 = vmatmul.mubr.bf16.gmra.mxu0 %v5513_v20 }
 0x483   :  { %2603 = vmatprep.mubr.bf16.mxu0 %v5514_v37  ;;  %v8029_v48 = vpop.permute.xlu0 %2260 }
 0x487   :  { %v8033_v2 = vpop.permute.xlu0 %2196 }
 0x48a   :  { %2604 = vmatmul.mubr.bf16.gmra.mxu0 %v5516_v26 }
 0x48b   :  { %v8037_v0 = vpop.permute.xlu0 %2252 }
 0x48f   :  { %v8041_v54 = vpop.permute.xlu0 %2188 }
 0x493   :  { %v8045_v11 = vpop.permute.xlu0 %2244 }
 0x497   :  { %v2181_v28 = vpop.permute.xlu0 %2180 }
 0x49b   :  { %v8049_v59 = vpop.permute.xlu0 %2236 }
 0x49f   :  { %v2173_v60 = vpop.permute.xlu0 %2172 }
 0x4a3   :  { %v8053_v9 = vpop.permute.xlu0 %2228 }
 0x4a7   :  { %v2165_v18 = vpop.permute.xlu0 %2164 }
 0x4d2   :  { %v4796_v63 = vpop.f32.mrf.mxu0 }
 0x4d4   :  { %v4797_v14 = vpop.f32.mrf.mxu0 }
 0x4d5   :  { %v4798_v30 = vadd.f32 %v4797_v14, %v4796_v63 }
 0x4d6   :  { %v4799_v45 = vpop.f32.mrf.mxu0 }
 0x4d7   :  { %v2486_v24 = vadd.f32 %v4798_v30, %v2165_v18 }
 0x4d8   :  { %v4800_v57 = vpop.f32.mrf.mxu0 }
 0x4d9   :  { %v4801_v3 = vadd.f32 %v4800_v57, %v4799_v45  ;;  %vm2612_vm0 = vcmp.gt.f32.partialorder %v2486_v24, 0.0  ;;  %v2644_v29 = vmul.f32 0.2, %v2486_v24 }
 0x4da   :  { %v4802_v58 = vpop.f32.mrf.mxu0  ;;  %v2708_v16 = vsel %vm2612_vm0, 1.0, %v9352_v7 }
 0x4db   :  { %v2489_v5 = vadd.f32 %v4801_v3, %v2169_v31  ;;  %v8059_v35 = vsel %vm2612_vm0, %v2486_v24, %v2644_v29 }
 0x4dc   :  { %v4803_v32 = vpop.f32.mrf.mxu0 }
 0x4dd   :  { %vm2613_vm1 = vcmp.gt.f32.partialorder %v2489_v5, 0.0  ;;  %v2645_v36 = vmul.f32 0.2, %v2489_v5  ;;  %v4804_v22 = vadd.f32 %v4803_v32, %v4802_v58 }
 0x4de   :  { %v2709_v51 = vsel %vm2613_vm1, 1.0, %v9352_v7  ;;  %v4805_v23 = vpop.f32.mrf.mxu0 }
 0x4df   :  { %v2494_v46 = vadd.f32 %v4804_v22, %v2173_v60  ;;  %v8061_v19 = vsel %vm2613_vm1, %v2489_v5, %v2645_v36  ;;  %v8063_v27 = vpack.c.bf16 %v2709_v51, %v2708_v16 }
 0x4e0   :  { %v4806_v20 = vpop.f32.mrf.mxu0 }
 0x4e1   :  { %9497 = vst [vmem:[#allocation29_spill] sm:$0xff] %v8063_v27  ;;  %v4807_v26 = vadd.f32 %v4806_v20, %v4805_v23  ;;  %vm2614_vm2 = vcmp.gt.f32.partialorder %v2494_v46, 0.0  ;;  %v2646_v14 = vmul.f32 0.2, %v2494_v46 }
 0x4e2   :  { %v4808_v63 = vpop.f32.mrf.mxu0  ;;  %v2710_v24 = vsel %vm2614_vm2, 1.0, %v9352_v7 }
 0x4e3   :  { %v2497_v18 = vadd.f32 %v4807_v26, %v2177_v17  ;;  %v8069_v58 = vsel %vm2614_vm2, %v2494_v46, %v2646_v14 }
 0x4e4   :  { %v4809_v30 = vpop.f32.mrf.mxu0 }
 0x4e5   :  { %v2647_v45 = vmul.f32 0.2, %v2497_v18  ;;  %v4810_v57 = vadd.f32 %v4809_v30, %v4808_v63  ;;  %vm2615_vm3 = vcmp.gt.f32.partialorder %v2497_v18, 0.0 }
 0x4e6   :  { %v4811_v60 = vpop.f32.mrf.mxu0  ;;  %v2711_v31 = vsel %vm2615_vm3, 1.0, %v9352_v7 }
 0x4e7   :  { %v2502_v3 = vadd.f32 %v4810_v57, %v2181_v28  ;;  %v8071_v29 = vsel %vm2615_vm3, %v2497_v18, %v2647_v45  ;;  %v8073_v5 = vpack.c.bf16 %v2711_v31, %v2710_v24 }
 0x4e8   :  { %v4812_v32 = vpop.f32.mrf.mxu0 }
 0x4e9   :  { %9498 = vst [vmem:[#allocation56_spill] sm:$0xff] %v8073_v5  ;;  %v4813_v36 = vadd.f32 %v4812_v32, %v4811_v60  ;;  %vm2616_vm4 = vcmp.gt.f32.partialorder %v2502_v3, 0.0  ;;  %v2648_v16 = vmul.f32 0.2, %v2502_v3 }
 0x4ea   :  { %v4814_v22 = vpop.f32.mrf.mxu0  ;;  %v2712_v46 = vsel %vm2616_vm4, 1.0, %v9352_v7 }
 0x4eb   :  { %v2505_v51 = vadd.f32 %v4813_v36, %v2185_v1  ;;  %v8080_v18 = vsel %vm2616_vm4, %v2502_v3, %v2648_v16 }
 0x4ec   :  { %v4815_v23 = vpop.f32.mrf.mxu0 }
 0x4ed   :  { %v2649_v20 = vmul.f32 0.2, %v2505_v51  ;;  %v4816_v26 = vadd.f32 %v4815_v23, %v4814_v22  ;;  %vm2617_vm5 = vcmp.gt.f32.partialorder %v2505_v51, 0.0 }
 0x4ee   :  { %v4817_v28 = vpop.f32.mrf.mxu0  ;;  %v2713_v63 = vsel %vm2617_vm5, 1.0, %v9352_v7 }
 0x4ef   :  { %v2510_v14 = vadd.f32 %v4816_v26, %v8041_v54  ;;  %v8082_v30 = vsel %vm2617_vm5, %v2505_v51, %v2649_v20  ;;  %v8084_v45 = vpack.c.bf16 %v2713_v63, %v2712_v46 }
 0x4f0   :  { %v4818_v57 = vpop.f32.mrf.mxu0 }
 0x4f1   :  { %9499 = vst [vmem:[#allocation101_spill] sm:$0xff] %v8084_v45  ;;  %v4819_v60 = vadd.f32 %v4818_v57, %v4817_v28  ;;  %vm2618_vm6 = vcmp.gt.f32.partialorder %v2510_v14, 0.0  ;;  %v2650_v31 = vmul.f32 0.2, %v2510_v14  ;;  %v5519_v28 = vld [vmem:[#allocation2 + $0x104] ss:$8 sps:$4 sm:$0xff]  }
 0x4f2   :  { %v4820_v24 = vpop.f32.mrf.mxu0  ;;  %v2714_v3 = vsel %vm2618_vm6, 1.0, %v9352_v7  ;;  %3092 = vmatprep.mubr.bf16.mxu1 %v5519_v28 }
 0x4f3   :  { %v2513_v32 = vadd.f32 %v4819_v60, %v8043_v13  ;;  %v8092_v20 = vsel %vm2618_vm6, %v2510_v14, %v2650_v31 }
 0x4f4   :  { %v4821_v36 = vpop.f32.mrf.mxu0 }
 0x4f5   :  { %v2651_v22 = vmul.f32 0.2, %v2513_v32  ;;  %v4822_v23 = vadd.f32 %v4821_v36, %v4820_v24  ;;  %vm2619_vm7 = vcmp.gt.f32.partialorder %v2513_v32, 0.0 }
 0x4f6   :  { %v4823_v54 = vpop.f32.mrf.mxu0  ;;  %v2715_v16 = vsel %vm2619_vm7, 1.0, %v9352_v7 }
 0x4f7   :  { %v2518_v51 = vadd.f32 %v4822_v23, %v8033_v2  ;;  %v8094_v26 = vsel %vm2619_vm7, %v2513_v32, %v2651_v22  ;;  %v8096_v46 = vpack.c.bf16 %v2715_v16, %v2714_v3 }
 0x4f8   :  { %v4824_v63 = vpop.f32.mrf.mxu0 }
 0x4f9   :  { %9500 = vst [vmem:[#allocation78_spill] sm:$0xff] %v8096_v46  ;;  %v4825_v57 = vadd.f32 %v4824_v63, %v4823_v54  ;;  %vm2620_vm8 = vcmp.gt.f32.partialorder %v2518_v51, 0.0  ;;  %v2652_v24 = vmul.f32 0.2, %v2518_v51 }
 0x4fa   :  { %v4826_v60 = vpop.f32.mrf.mxu0  ;;  %v2716_v32 = vsel %vm2620_vm8, 1.0, %v9352_v7 }
 0x4fb   :  { %v2521_v36 = vadd.f32 %v4825_v57, %v8035_v15  ;;  %v8104_v3 = vsel %vm2620_vm8, %v2518_v51, %v2652_v24 }
 0x4fc   :  { %v4827_v37 = vpop.f32.mrf.mxu0 }
 0x4fd   :  { %v2653_v2 = vmul.f32 0.2, %v2521_v36  ;;  %v4828_v14 = vadd.f32 %v4827_v37, %v4826_v60  ;;  %vm2621_vm9 = vcmp.gt.f32.partialorder %v2521_v36, 0.0 }
 0x4fe   :  { %v4829_v31 = vpop.f32.mrf.mxu0  ;;  %v2717_v22 = vsel %vm2621_vm9, 1.0, %v9352_v7 }
 0x4ff   :  { %v2526_v23 = vadd.f32 %v4828_v14, %v8025_v21  ;;  %v8106_v54 = vsel %vm2621_vm9, %v2521_v36, %v2653_v2  ;;  %v8108_v16 = vpack.c.bf16 %v2717_v22, %v2716_v32 }
 0x500   :  { %v4830_v28 = vpop.f32.mrf.mxu0 }
 0x501   :  { %9501 = vst [vmem:[#allocation67_spill] sm:$0xff] %v8108_v16  ;;  %v4831_v63 = vadd.f32 %v4830_v28, %v4829_v31  ;;  %vm2622_vm10 = vcmp.gt.f32.partialorder %v2526_v23, 0.0  ;;  %v2654_v57 = vmul.f32 0.2, %v2526_v23 }
 0x502   :  { %v4832_v37 = vpop.f32.mrf.mxu0  ;;  %v2718_v24 = vsel %vm2622_vm10, 1.0, %v9352_v7 }
 0x503   :  { %v2529_v60 = vadd.f32 %v4831_v63, %v8027_v33  ;;  %v8116_v14 = vsel %vm2622_vm10, %v2526_v23, %v2654_v57 }
 0x504   :  { %v4833_v17 = vpop.f32.mrf.mxu0 }
 0x505   :  { %vm2623_vm11 = vcmp.gt.f32.partialorder %v2529_v60, 0.0  ;;  %v2655_v1 = vmul.f32 0.2, %v2529_v60  ;;  %v4834_v21 = vadd.f32 %v4833_v17, %v4832_v37 }
 0x506   :  { %v4835_v51 = vpop.f32.mrf.mxu0  ;;  %v2719_v36 = vsel %vm2623_vm11, 1.0, %v9352_v7 }
 0x507   :  { %v2534_v2 = vadd.f32 %v4834_v21, %v8021_v53  ;;  %v8118_v32 = vsel %vm2623_vm11, %v2529_v60, %v2655_v1  ;;  %v8120_v31 = vpack.c.bf16 %v2719_v36, %v2718_v24 }
 0x508   :  { %v4836_v22 = vpop.f32.mrf.mxu0 }
 0x509   :  { %9502 = vst [vmem:[#allocation84_spill] sm:$0xff] %v8120_v31  ;;  %v4837_v28 = vadd.f32 %v4836_v22, %v4835_v51  ;;  %vm2624_vm12 = vcmp.gt.f32.partialorder %v2534_v2, 0.0  ;;  %v2656_v17 = vmul.f32 0.2, %v2534_v2 }
 0x50a   :  { %v4838_v63 = vpop.f32.mrf.mxu0  ;;  %v2720_v1 = vsel %vm2624_vm12, 1.0, %v9352_v7 }
 0x50b   :  { %v2537_v37 = vadd.f32 %v4837_v28, %v8013_v42  ;;  %v8128_v21 = vsel %vm2624_vm12, %v2534_v2, %v2656_v17 }
 0x50c   :  { %v4839_v13 = vpop.f32.mrf.mxu0 }
 0x50d   :  { %vm2625_vm13 = vcmp.gt.f32.partialorder %v2537_v37, 0.0  ;;  %v2657_v15 = vmul.f32 0.2, %v2537_v37  ;;  %v4840_v53 = vadd.f32 %v4839_v13, %v4838_v63 }
 0x50e   :  { %v4841_v23 = vpop.f32.mrf.mxu0  ;;  %v2721_v57 = vsel %vm2625_vm13, 1.0, %v9352_v7 }
 0x50f   :  { %v2542_v60 = vadd.f32 %v4840_v53, %v8000_v49  ;;  %v8130_v24 = vsel %vm2625_vm13, %v2537_v37, %v2657_v15  ;;  %v8132_v51 = vpack.c.bf16 %v2721_v57, %v2720_v1 }
 0x510   :  { %v4842_v36 = vpop.f32.mrf.mxu0 }
 0x511   :  { %9503 = vst [vmem:[#allocation7_spill] sm:$0xff] %v8132_v51  ;;  %v4843_v22 = vadd.f32 %v4842_v36, %v4841_v23  ;;  %vm2626_vm14 = vcmp.gt.f32.partialorder %v2542_v60, 0.0  ;;  %v2658_v63 = vmul.f32 0.2, %v2542_v60 }
 0x512   :  { %v4844_v28 = vpop.f32.mrf.mxu0  ;;  %v2722_v15 = vsel %vm2626_vm14, 1.0, %v9352_v7 }
 0x513   :  { %v2545_v13 = vadd.f32 %v4843_v22, %v8005_v55  ;;  %v8140_v53 = vsel %vm2626_vm14, %v2542_v60, %v2658_v63 }
 0x514   :  { %v4845_v33 = vpop.f32.mrf.mxu0 }
 0x515   :  { %v4846_v43 = vadd.f32 %v4845_v33, %v4844_v28  ;;  %vm2627_vm15 = vcmp.gt.f32.partialorder %v2545_v13, 0.0  ;;  %v2659_v49 = vmul.f32 0.2, %v2545_v13 }
 0x516   :  { %v4847_v2 = vpop.f32.mrf.mxu0  ;;  %v2723_v17 = vsel %vm2627_vm15, 1.0, %v9352_v7 }
 0x517   :  { %v2550_v37 = vadd.f32 %v4846_v43, %v8053_v9  ;;  %v8142_v1 = vsel %vm2627_vm15, %v2545_v13, %v2659_v49  ;;  %v8144_v23 = vpack.c.bf16 %v2723_v17, %v2722_v15 }
 0x518   :  { %v4848_v55 = vpop.f32.mrf.mxu0 }
 0x519   :  { %9504 = vst [vmem:[#allocation31_spill] sm:$0xff] %v8144_v23  ;;  %v4849_v33 = vadd.f32 %v4848_v55, %v4847_v2  ;;  %vm2628_vm0 = vcmp.gt.f32.partialorder %v2550_v37, 0.0  ;;  %v2660_v22 = vmul.f32 0.2, %v2550_v37 }
 0x51a   :  { %v4850_v36 = vpop.f32.mrf.mxu0  ;;  %v2724_v60 = vsel %vm2628_vm0, 1.0, %v9352_v7 }
 0x51b   :  { %v2553_v28 = vadd.f32 %v4849_v33, %v8055_v10  ;;  %v8152_v49 = vsel %vm2628_vm0, %v2550_v37, %v2660_v22 }
 0x51c   :  { %v4851_v42 = vpop.f32.mrf.mxu0 }
 0x51d   :  { %vm2629_vm1 = vcmp.gt.f32.partialorder %v2553_v28, 0.0  ;;  %v2661_v44 = vmul.f32 0.2, %v2553_v28  ;;  %v4852_v43 = vadd.f32 %v4851_v42, %v4850_v36 }
 0x51e   :  { %v4853_v9 = vpop.f32.mrf.mxu0  ;;  %v2725_v13 = vsel %vm2629_vm1, 1.0, %v9352_v7 }
 0x51f   :  { %v2558_v63 = vadd.f32 %v4852_v43, %v8049_v59  ;;  %v8154_v15 = vsel %vm2629_vm1, %v2553_v28, %v2661_v44  ;;  %v8156_v2 = vpack.c.bf16 %v2725_v13, %v2724_v60 }
 0x520   :  { %v4854_v17 = vpop.f32.mrf.mxu0 }
 0x521   :  { %9505 = vst [vmem:[#allocation82_spill] sm:$0xff] %v8156_v2  ;;  %v4855_v55 = vadd.f32 %v4854_v17, %v4853_v9  ;;  %vm2630_vm2 = vcmp.gt.f32.partialorder %v2558_v63, 0.0  ;;  %v2662_v42 = vmul.f32 0.2, %v2558_v63 }
 0x522   :  { %v4856_v33 = vpop.f32.mrf.mxu0  ;;  %v2726_v44 = vsel %vm2630_vm2, 1.0, %v9352_v7 }
 0x523   :  { %v2561_v36 = vadd.f32 %v4855_v55, %v8051_v52  ;;  %v8166_v43 = vsel %vm2630_vm2, %v2558_v63, %v2662_v42 }
 0x524   :  { %v4857_v57 = vpop.f32.mrf.mxu0 }
 0x525   :  { %vm2631_vm3 = vcmp.gt.f32.partialorder %v2561_v36, 0.0  ;;  %v2663_v8 = vmul.f32 0.2, %v2561_v36  ;;  %v4858_v59 = vadd.f32 %v4857_v57, %v4856_v33 }
 0x526   :  { %v4859_v37 = vpop.f32.mrf.mxu0  ;;  %v2727_v22 = vsel %vm2631_vm3, 1.0, %v9352_v7 }
 0x527   :  { %v8164_v28 = vadd.f32 %v4858_v59, %v8045_v11  ;;  %v8168_v9 = vsel %vm2631_vm3, %v2561_v36, %v2663_v8  ;;  %v8170_v60 = vpack.c.bf16 %v2727_v22, %v2726_v44 }
 0x528   :  { %v4860_v13 = vpop.f32.mrf.mxu0 }
 0x529   :  { %9506 = vst [vmem:[#allocation64_spill] sm:$0xff] %v8170_v60  ;;  %v4861_v17 = vadd.f32 %v4860_v13, %v4859_v37  ;;  %vm2632_vm4 = vcmp.gt.f32.partialorder %v8164_v28, 0.0 }
 0x52a   :  { %v4862_v57 = vpop.f32.mrf.mxu0  ;;  %v2728_v8 = vsel %vm2632_vm4, 1.0, %v9352_v7 }
 0x52b   :  { %v8176_v55 = vadd.f32 %v4861_v17, %v8047_v25 }
 0x52c   :  { %v4863_v33 = vpop.f32.mrf.mxu0 }
 0x52d   :  { %vm2633_vm5 = vcmp.gt.f32.partialorder %v8176_v55, 0.0  ;;  %v4864_v11 = vadd.f32 %v4863_v33, %v4862_v57 }
 0x52e   :  { %v4865_v63 = vpop.f32.mrf.mxu0  ;;  %v2729_v42 = vsel %vm2633_vm5, 1.0, %v9352_v7 }
 0x52f   :  { %v8186_v36 = vadd.f32 %v4864_v11, %v8037_v0  ;;  %v8188_v59 = vpack.c.bf16 %v2729_v42, %v2728_v8 }
 0x530   :  { %v4866_v25 = vpop.f32.mrf.mxu0 }
 0x531   :  { %9507 = vst [vmem:[#allocation113_spill] sm:$0xff] %v8188_v59  ;;  %v4867_v37 = vadd.f32 %v4866_v25, %v4865_v63  ;;  %vm2634_vm6 = vcmp.gt.f32.partialorder %v8186_v36, 0.0 }
 0x532   :  { %v4868_v44 = vpop.f32.mrf.mxu0  ;;  %v2730_v0 = vsel %vm2634_vm6, 1.0, %v9352_v7 }
 0x533   :  { %v8192_v22 = vadd.f32 %v4867_v37, %v8039_v47 }
 0x534   :  { %v4869_v13 = vpop.f32.mrf.mxu0 }
 0x535   :  { %vm2635_vm7 = vcmp.gt.f32.partialorder %v8192_v22, 0.0  ;;  %v4870_v17 = vadd.f32 %v4869_v13, %v4868_v44 }
 0x536   :  { %v4871_v57 = vpop.f32.mrf.mxu0  ;;  %v2731_v33 = vsel %vm2635_vm7, 1.0, %v9352_v7 }
 0x537   :  { %v8202_v11 = vadd.f32 %v4870_v17, %v8029_v48  ;;  %v8204_v63 = vpack.c.bf16 %v2731_v33, %v2730_v0 }
 0x538   :  { %v4872_v47 = vpop.f32.mrf.mxu0 }
 0x539   :  { %9508 = vst [vmem:[#allocation85_spill] sm:$0xff] %v8204_v63  ;;  %v4873_v8 = vadd.f32 %v4872_v47, %v4871_v57  ;;  %vm2636_vm8 = vcmp.gt.f32.partialorder %v8202_v11, 0.0 }
 0x53a   :  { %v4874_v42 = vpop.f32.mrf.mxu0  ;;  %v2732_v48 = vsel %vm2636_vm8, 1.0, %v9352_v7 }
 0x53b   :  { %v8208_v25 = vadd.f32 %v4873_v8, %v8031_v34 }
 0x53c   :  { %v4875_v37 = vpop.f32.mrf.mxu0 }
 0x53d   :  { %vm2637_vm9 = vcmp.gt.f32.partialorder %v8208_v25, 0.0  ;;  %v4876_v44 = vadd.f32 %v4875_v37, %v4874_v42 }
 0x53e   :  { %v4877_v13 = vpop.f32.mrf.mxu0  ;;  %v2733_v17 = vsel %vm2637_vm9, 1.0, %v9352_v7 }
 0x53f   :  { %v2590_v57 = vadd.f32 %v4876_v44, %v8023_v39  ;;  %v8218_v0 = vpack.c.bf16 %v2733_v17, %v2732_v48 }
 0x540   :  { %v4878_v33 = vpop.f32.mrf.mxu0 }
 0x541   :  { %9509 = vst [vmem:[#allocation8_spill] sm:$0xff] %v8218_v0  ;;  %v4879_v34 = vadd.f32 %v4878_v33, %v4877_v13  ;;  %vm2638_vm10 = vcmp.gt.f32.partialorder %v2590_v57, 0.0 }
 0x542   :  { %v4880_v47 = vpop.f32.mrf.mxu0  ;;  %v2734_v52 = vsel %vm2638_vm10, 1.0, %v9352_v7 }
 0x543   :  { %v2593_v8 = vadd.f32 %v4879_v34, %v8015_v40 }
 0x544   :  { %v4881_v42 = vpop.f32.mrf.mxu0 }
 0x545   :  { %vm2639_vm11 = vcmp.gt.f32.partialorder %v2593_v8, 0.0  ;;  %v4882_v37 = vadd.f32 %v4881_v42, %v4880_v47 }
 0x546   :  { %v4883_v10 = vpop.f32.mrf.mxu0  ;;  %v2735_v38 = vsel %vm2639_vm11, 1.0, %v9352_v7 }
 0x547   :  { %v2598_v39 = vadd.f32 %v4882_v37, %v8019_v62  ;;  %v8226_v44 = vpack.c.bf16 %v2735_v38, %v2734_v52 }
 0x548   :  { %v4884_v48 = vpop.f32.mrf.mxu0 }
 0x549   :  { %9510 = vst [vmem:[#allocation111_spill] sm:$0xff] %v8226_v44  ;;  %v4885_v13 = vadd.f32 %v4884_v48, %v4883_v10  ;;  %vm2640_vm12 = vcmp.gt.f32.partialorder %v2598_v39, 0.0 }
 0x54a   :  { %v4886_v17 = vpop.f32.mrf.mxu0  ;;  %v2736_v42 = vsel %vm2640_vm12, 1.0, %v9352_v7 }
 0x54b   :  { %v2601_v40 = vadd.f32 %v4885_v13, %v8009_v56  ;;  %v2672_v13 = vmul.f32 0.2, %v2598_v39 }
 0x54c   :  { %v4887_v33 = vpop.f32.mrf.mxu0 }
 0x54d   :  { %vm2641_vm13 = vcmp.gt.f32.partialorder %v2601_v40, 0.0  ;;  %v4888_v34 = vadd.f32 %v4887_v33, %v4886_v17  ;;  %v2673_v37 = vmul.f32 0.2, %v2601_v40  ;;  %v2671_v33 = vmul.f32 0.2, %v2593_v8 }
 0x54e   :  { %v4889_v47 = vpop.f32.mrf.mxu0  ;;  %v2737_v50 = vsel %vm2641_vm13, 1.0, %v9352_v7 }
 0x54f   :  { %v2606_v62 = vadd.f32 %v4888_v34, %v7991_v61  ;;  %v8234_v38 = vpack.c.bf16 %v2737_v50, %v2736_v42  ;;  %v2705_v50 = vsel %vm2641_vm13, %v2601_v40, %v2673_v37  ;;  %v2703_v44 = vsel %vm2639_vm11, %v2593_v8, %v2671_v33  ;;  %v5535_v33 = vld [vmem:[#allocation2 + $0x164] ss:$8 sps:$4 sm:$0xff]  }
 0x550   :  { %v4890_v52 = vpop.f32.mrf.mxu0  ;;  %v9517_v37 = vpack.c.bf16 %v8094_v26, %v8092_v20  ;;  %v9522_v20 = vpack.c.bf16 %v8061_v19, %v8059_v35  ;;  %v5520_v26 = vld [vmem:[#allocation2 + $0x114] ss:$8 sps:$4 sm:$0xff]   ;;  %v5529_v35 = vld [vmem:[#allocation2 + $0x144] ss:$8 sps:$4 sm:$0xff]  }
 0x551   :  { %9511 = vst [vmem:[#allocation86_spill] sm:$0xff] %v8234_v38  ;;  %v4891_v10 = vadd.f32 %v4890_v52, %v4889_v47  ;;  %vm2642_vm14 = vcmp.gt.f32.partialorder %v2606_v62, 0.0  ;;  %v2674_v56 = vmul.f32 0.2, %v2606_v62  ;;  %v2670_v47 = vmul.f32 0.2, %v2590_v57 }
 0x552   :  { %v2738_v12 = vsel %vm2642_vm14, 1.0, %v9352_v7  ;;  %v2669_v52 = vmul.f32 0.2, %v8208_v25 }
 0x553   :  { %v2609_v48 = vadd.f32 %v4891_v10, %v8017_v6  ;;  %v2706_v63 = vsel %vm2642_vm14, %v2606_v62, %v2674_v56  ;;  %v2704_v6 = vsel %vm2640_vm12, %v2598_v39, %v2672_v13  ;;  %v9513_v10 = vpack.c.bf16 %v8142_v1, %v8140_v53  ;;  %v5532_v56 = vld [vmem:[#allocation2 + $0x154] ss:$8 sps:$4 sm:$0xff]  }
 0x554   :  { %v2770_v42 = vpack.c.bf16 %v2705_v50, %v2704_v6  ;;  %v2701_v39 = vsel %vm2637_vm9, %v8208_v25, %v2669_v52  ;;  %v2666_v53 = vmul.f32 0.2, %v8186_v36  ;;  %v5538_v6 = vld [vmem:[#allocation2 + $0x174] ss:$8 sps:$4 sm:$0xff]   ;;  %v5540_v52 = vld [vmem:[#allocation2 + $0x170] ss:$8 sps:$4 sm:$0xff]  }
 0x555   :  { %vm2643_vm15 = vcmp.gt.f32.partialorder %v2609_v48, 0.0  ;;  %v2675_v17 = vmul.f32 0.2, %v2609_v48 }
 0x556   :  { %v2739_v41 = vsel %vm2643_vm15, 1.0, %v9352_v7  ;;  %v2698_v25 = vsel %vm2634_vm6, %v8186_v36, %v2666_v53  ;;  %v9518_v36 = vpack.c.bf16 %v8082_v30, %v8080_v18  ;;  %v5522_v18 = vld [vmem:[#allocation2 + $0x110] ss:$8 sps:$4 sm:$0xff]   ;;  %v5523_v30 = vld [vmem:[#allocation2 + $0x124] ss:$8 sps:$4 sm:$0xff]  }
 0x557   :  { %v2707_v0 = vsel %vm2643_vm15, %v2609_v48, %v2675_v17  ;;  %v8239_v61 = vpack.c.bf16 %v2739_v41, %v2738_v12  ;;  %v2668_v12 = vmul.f32 0.2, %v8202_v11  ;;  %v2702_v41 = vsel %vm2638_vm10, %v2590_v57, %v2670_v47  ;;  %v5531_v48 = vld [vmem:[#allocation2 + $0x140] ss:$8 sps:$4 sm:$0xff]   ;;  %v5534_v17 = vld [vmem:[#allocation2 + $0x150] ss:$8 sps:$4 sm:$0xff]  }
 0x558   :  { %v2771_v34 = vpack.c.bf16 %v2707_v0, %v2706_v63  ;;  %v2769_v40 = vpack.c.bf16 %v2703_v44, %v2702_v41  ;;  %v2667_v63 = vmul.f32 0.2, %v8192_v22  ;;  %v9514_v0 = vpack.c.bf16 %v8130_v24, %v8128_v21  ;;  %v5543_v41 = vld [vmem:[#allocation2 + $0x180] ss:$8 sps:$4 sm:$0xff]   ;;  %v5547_v53 = vld [vmem:[#allocation2 + $0x1a4] ss:$8 sps:$4 sm:$0xff]  }
 0x559   :  { %9512 = vst [vmem:[#allocation106_spill] sm:$0xff] %v8239_v61  ;;  %v2700_v1 = vsel %vm2636_vm8, %v8202_v11, %v2668_v12  ;;  %v2665_v57 = vmul.f32 0.2, %v8176_v55  ;;  %v9515_v44 = vpack.c.bf16 %v8118_v32, %v8116_v14  ;;  %v2664_v24 = vmul.f32 0.2, %v8164_v28 }
 0x55a   :  { %4892 = vmatprep.subr.bf16.mxu1 %v2771_v34  ;;  %v2768_v8 = vpack.c.bf16 %v2701_v39, %v2700_v1  ;;  %v2699_v21 = vsel %vm2635_vm7, %v8192_v22, %v2667_v63  ;;  %v9516_v11 = vpack.c.bf16 %v8106_v54, %v8104_v3  ;;  %v9519_v3 = vpack.c.bf16 %v8168_v9, %v8166_v43  ;;  %v8299_v43 = vpop.permute.xlu1 %2897  ;;  %v5537_v34 = vld [vmem:[#allocation2 + $0x160] ss:$8 sps:$4 sm:$0xff]  }
 0x55b   :  { %4893 = vmatpush3.bf16.msra.mxu1 %v9513_v10  ;;  %v2767_v62 = vpack.c.bf16 %v2699_v21, %v2698_v25  ;;  %v2697_v14 = vsel %vm2633_vm5, %v8176_v55, %v2665_v57  ;;  %v2696_v32 = vsel %vm2632_vm4, %v8164_v28, %v2664_v24  ;;  %v9520_v54 = vpack.c.bf16 %v8071_v29, %v8069_v58  ;;  %v5517_v55 = vld [vmem:[#allocation2 + $0x100] ss:$8 sps:$4 sm:$0xff]   ;;  %v5526_v29 = vld [vmem:[#allocation2 + $0x134] ss:$8 sps:$4 sm:$0xff]   ;;  %v5541_v10 = vld [vmem:[#allocation2 + $0x184] ss:$8 sps:$4 sm:$0xff]  }
 0x55c   :  { %4894 = vmatprep.subr.bf16.mxu1 %v2770_v42  ;;  %v2766_v22 = vpack.c.bf16 %v2697_v14, %v2696_v32  ;;  %v9521_v28 = vpack.c.bf16 %v8154_v15, %v8152_v49  ;;  %v5525_v58 = vld [vmem:[#allocation2 + $0x120] ss:$8 sps:$4 sm:$0xff]   ;;  %v5528_v49 = vld [vmem:[#allocation2 + $0x130] ss:$8 sps:$4 sm:$0xff]   ;;  %v5550_v57 = vld [vmem:[#allocation2 + $0x1b4] ss:$8 sps:$4 sm:$0xff]  }
 0x55d   :  { %v5552_v21 = vld [vmem:[#allocation2 + $0x1b0] ss:$8 sps:$4 sm:$0xff]   ;;  %v5553_v24 = vld [vmem:[#allocation2 + $0x1c4] ss:$8 sps:$4 sm:$0xff]   ;;  %v5556_v14 = vld [vmem:[#allocation2 + $0x1d4] ss:$8 sps:$4 sm:$0xff]  }
 0x55e   :  { %v8301_v9 = vpop.permute.xlu1 %2829 }
 0x55f   :  { %4895 = vmatpush3.bf16.msra.mxu1 %v9514_v0  ;;  %v5546_v0 = vld [vmem:[#allocation2 + $0x190] ss:$8 sps:$4 sm:$0xff]  }
 0x560   :  { %4896 = vmatprep.subr.bf16.mxu1 %v2769_v40  ;;  %v5544_v40 = vld [vmem:[#allocation2 + $0x194] ss:$8 sps:$4 sm:$0xff]  }
 0x562   :  { %v8303_v15 = vpop.permute.xlu1 %2885 }
 0x563   :  { %4897 = vmatpush3.bf16.msra.mxu1 %v9515_v44 }
 0x564   :  { %4898 = vmatprep.subr.bf16.mxu1 %v2768_v8  ;;  %v5549_v8 = vld [vmem:[#allocation2 + $0x1a0] ss:$8 sps:$4 sm:$0xff]  }
 0x566   :  { %v8305_v19 = vpop.permute.xlu1 %2821 }
 0x567   :  { %4899 = vmatpush3.bf16.msra.mxu1 %v9516_v11 }
 0x568   :  { %4900 = vmatprep.subr.bf16.mxu1 %v2767_v62  ;;  %v5555_v62 = vld [vmem:[#allocation2 + $0x1c0] ss:$8 sps:$4 sm:$0xff]  }
 0x56a   :  { %v8307_v13 = vpop.permute.xlu1 %2877 }
 0x56b   :  { %4901 = vmatpush3.bf16.msra.mxu1 %v9517_v37  ;;  %v5559_v37 = vld [vmem:[#allocation2 + $0x1e4] ss:$8 sps:$4 sm:$0xff]  }
 0x56c   :  { %4902 = vmatprep.subr.bf16.mxu1 %v2766_v22  ;;  %v5558_v22 = vld [vmem:[#allocation2 + $0x1d0] ss:$8 sps:$4 sm:$0xff]  }
 0x56e   :  { %v8309_v50 = vpop.permute.xlu1 %3590 }
 0x56f   :  { %4903 = vmatpush3.bf16.msra.mxu1 %v9518_v36 }
 0x570   :  { %4904 = vmatprep.subr.bf16.mxu1 %v9519_v3  ;;  %v5561_v3 = vld [vmem:[#allocation2 + $0x1e0] ss:$8 sps:$4 sm:$0xff]  }
 0x572   :  { %v8311_v47 = vpop.permute.xlu1 %2813 }
 0x573   :  { %4905 = vmatpush3.bf16.msra.mxu1 %v9520_v54  ;;  %v5562_v54 = vld [vmem:[#allocation2 + $0x1f4] ss:$8 sps:$4 sm:$0xff]  }
 0x574   :  { %4906 = vmatprep.subr.bf16.mxu1 %v9521_v28 }
 0x576   :  { %v8313_v42 = vpop.permute.xlu1 %2817 }
 0x577   :  { %4907 = vmatpush3.bf16.msra.mxu1 %v9522_v20 }
 0x57a   :  { %3093 = vmatmul.mubr.bf16.vlgmr.msra.gmra.mxu1 %v5517_v55  ;;  %v8315_v12 = vpop.permute.xlu1 %3530  ;;  %v5564_v55 = vld [vmem:[#allocation2 + $0x1f0] ss:$8 sps:$4 sm:$0xff]  }
 0x57b   :  { %3100 = vmatprep.mubr.bf16.mxu1 %v5520_v26 }
 0x57e   :  { %v8317_v63 = vpop.permute.xlu1 %2873 }
 0x582   :  { %3101 = vmatmul.mubr.bf16.gmra.mxu1 %v5522_v18  ;;  %v8319_v39 = vpop.permute.xlu1 %3582 }
 0x583   :  { %3108 = vmatprep.mubr.bf16.mxu1 %v5523_v30 }
 0x586   :  { %v8321_v1 = vpop.permute.xlu1 %2805 }
 0x58a   :  { %3109 = vmatmul.mubr.bf16.gmra.mxu1 %v5525_v58  ;;  %v8323_v44 = vpop.permute.xlu1 %2809 }
 0x58b   :  { %3116 = vmatprep.mubr.bf16.mxu1 %v5526_v29 }
 0x58e   :  { %v8325_v25 = vpop.permute.xlu1 %3522 }
 0x592   :  { %3117 = vmatmul.mubr.bf16.gmra.mxu1 %v5528_v49  ;;  %v8327_v11 = vpop.permute.xlu1 %2865 }
 0x593   :  { %3124 = vmatprep.mubr.bf16.mxu1 %v5529_v35 }
 0x596   :  { %v8329_v32 = vpop.permute.xlu1 %3574 }
 0x59a   :  { %3125 = vmatmul.mubr.bf16.gmra.mxu1 %v5531_v48  ;;  %v8331_v36 = vpop.permute.xlu1 %2797 }
 0x59b   :  { %3132 = vmatprep.mubr.bf16.mxu1 %v5532_v56 }
 0x59e   :  { %v8333_v28 = vpop.permute.xlu1 %2801 }
 0x5a2   :  { %3133 = vmatmul.mubr.bf16.gmra.mxu1 %v5534_v17  ;;  %v8335_v20 = vpop.permute.xlu1 %3514 }
 0x5a3   :  { %3140 = vmatprep.mubr.bf16.mxu1 %v5535_v33  ;;  %9523 = vst [vmem:[#allocation74_spill] sm:$0xff] %v8335_v20 }
 0x5a6   :  { %v8337_v26 = vpop.permute.xlu1 %2857 }
 0x5aa   :  { %3141 = vmatmul.mubr.bf16.gmra.mxu1 %v5537_v34  ;;  %v8339_v18 = vpop.permute.xlu1 %3566 }
 0x5ab   :  { %3148 = vmatprep.mubr.bf16.mxu1 %v5538_v6  ;;  %9524 = vst [vmem:[#allocation33_spill] sm:$0xff] %v8339_v18 }
 0x5ae   :  { %v2790_v30 = vpop.permute.xlu1 %2789 }
 0x5b2   :  { %3149 = vmatmul.mubr.bf16.gmra.mxu1 %v5540_v52  ;;  %v2794_v58 = vpop.permute.xlu1 %2793 }
 0x5b3   :  { %3156 = vmatprep.mubr.bf16.mxu1 %v5541_v10 }
 0x5b6   :  { %v8341_v29 = vpop.permute.xlu1 %3506 }
 0x5b7   :  { %9525 = vst [vmem:[#allocation96_spill] sm:$0xff] %v8341_v29 }
 0x5ba   :  { %3157 = vmatmul.mubr.bf16.gmra.mxu1 %v5543_v41  ;;  %v8343_v49 = vpop.permute.xlu1 %2849 }
 0x5bb   :  { %3164 = vmatprep.mubr.bf16.mxu1 %v5544_v40 }
 0x5be   :  { %v8345_v35 = vpop.permute.xlu1 %3558 }
 0x5bf   :  { %9526 = vst [vmem:[#allocation54_spill] sm:$0xff] %v8345_v35 }
 0x5c2   :  { %3165 = vmatmul.mubr.bf16.gmra.mxu1 %v5546_v0  ;;  %v2782_v48 = vpop.permute.xlu1 %2781 }
 0x5c3   :  { %3172 = vmatprep.mubr.bf16.mxu1 %v5547_v53 }
 0x5c6   :  { %v2786_v56 = vpop.permute.xlu1 %2785 }
 0x5ca   :  { %3173 = vmatmul.mubr.bf16.gmra.mxu1 %v5549_v8  ;;  %v8347_v17 = vpop.permute.xlu1 %3498 }
 0x5cb   :  { %3180 = vmatprep.mubr.bf16.mxu1 %v5550_v57  ;;  %9527 = vst [vmem:[#allocation76_spill] sm:$0xff] %v8347_v17 }
 0x5ce   :  { %v8349_v33 = vpop.permute.xlu1 %2841 }
 0x5d2   :  { %3181 = vmatmul.mubr.bf16.gmra.mxu1 %v5552_v21  ;;  %v8351_v34 = vpop.permute.xlu1 %3550 }
 0x5d3   :  { %3188 = vmatprep.mubr.bf16.mxu1 %v5553_v24  ;;  %9528 = vst [vmem:[#allocation100_spill] sm:$0xff] %v8351_v34 }
 0x5d6   :  { %v2774_v52 = vpop.permute.xlu1 %2773 }
 0x5da   :  { %3189 = vmatmul.mubr.bf16.gmra.mxu1 %v5555_v62  ;;  %v2778_v57 = vpop.permute.xlu1 %2777 }
 0x5db   :  { %3196 = vmatprep.mubr.bf16.mxu1 %v5556_v14 }
 0x5e2   :  { %3197 = vmatmul.mubr.bf16.gmra.mxu1 %v5558_v22  ;;  %v8353_v22 = vpop.permute.xlu0 %2893 }
 0x5e3   :  { %3204 = vmatprep.mubr.bf16.mxu1 %v5559_v37 }
 0x5ea   :  { %3205 = vmatmul.mubr.bf16.gmra.mxu1 %v5561_v3 }
 0x5eb   :  { %3212 = vmatprep.mubr.bf16.mxu1 %v5562_v54 }
 0x5f2   :  { %3213 = vmatmul.mubr.bf16.gmra.mxu1 %v5564_v55 }
 0x63a   :  { %v4908_v6 = vpop.f32.mrf.mxu1 }
 0x63c   :  { %v4909_v10 = vpop.f32.mrf.mxu1 }
 0x63d   :  { %v4910_v41 = vadd.f32 %v4909_v10, %v4908_v6 }
 0x63e   :  { %v4911_v40 = vpop.f32.mrf.mxu1 }
 0x63f   :  { %v3095_v0 = vadd.f32 %v4910_v41, %v2774_v52 }
 0x640   :  { %v4912_v53 = vpop.f32.mrf.mxu1 }
 0x641   :  { %v4913_v8 = vadd.f32 %v4912_v53, %v4911_v40  ;;  %v3253_v24 = vmul.f32 0.2, %v3095_v0  ;;  %vm3221_vm0 = vcmp.gt.f32.partialorder %v3095_v0, 0.0 }
 0x642   :  { %v4914_v21 = vpop.f32.mrf.mxu1  ;;  %v3317_v55 = vsel %vm3221_vm0, 1.0, %v9352_v7 }
 0x643   :  { %v3098_v62 = vadd.f32 %v4913_v8, %v2778_v57  ;;  %v8359_v41 = vsel %vm3221_vm0, %v3095_v0, %v3253_v24 }
 0x644   :  { %v4915_v14 = vpop.f32.mrf.mxu1  ;;  %9530 = vst [vmem:[#allocation125_spill] sm:$0xff] %v8359_v41 }
 0x645   :  { %v3254_v37 = vmul.f32 0.2, %v3098_v62  ;;  %v4916_v3 = vadd.f32 %v4915_v14, %v4914_v21  ;;  %vm3222_vm1 = vcmp.gt.f32.partialorder %v3098_v62, 0.0  ;;  %v8365_v21 = vpop.permute.xlu0 %2833 }
 0x646   :  { %v4917_v54 = vpop.f32.mrf.mxu1  ;;  %v3318_v6 = vsel %vm3222_vm1, 1.0, %v9352_v7 }
 0x647   :  { %v3103_v10 = vadd.f32 %v4916_v3, %v2782_v48  ;;  %v8357_v52 = vpack.c.bf16 %v3318_v6, %v3317_v55  ;;  %v8361_v40 = vsel %vm3222_vm1, %v3098_v62, %v3254_v37 }
 0x648   :  { %9531 = vst [vmem:[#allocation65_spill] sm:$0xff] %v8361_v40  ;;  %v4918_v53 = vpop.f32.mrf.mxu1 }
 0x649   :  { %9529 = vst [vmem:[#allocation98_spill] sm:$0xff] %v8357_v52  ;;  %v4919_v57 = vadd.f32 %v4918_v53, %v4917_v54  ;;  %vm3223_vm2 = vcmp.gt.f32.partialorder %v3103_v10, 0.0  ;;  %v3255_v14 = vmul.f32 0.2, %v3103_v10 }
 0x64a   :  { %v4920_v61 = vpop.f32.mrf.mxu1  ;;  %v3319_v0 = vsel %vm3223_vm2, 1.0, %v9352_v7 }
 0x64b   :  { %v3106_v38 = vadd.f32 %v4919_v57, %v2786_v56  ;;  %v8369_v37 = vsel %vm3223_vm2, %v3103_v10, %v3255_v14  ;;  %v8377_v57 = vpop.permute.xlu0 %2889 }
 0x64c   :  { %v4921_v59 = vpop.f32.mrf.mxu1  ;;  %9532 = vst [vmem:[#allocation102_spill] sm:$0xff] %v8369_v37 }
 0x64d   :  { %vm3224_vm3 = vcmp.gt.f32.partialorder %v3106_v38, 0.0  ;;  %v3256_v48 = vmul.f32 0.2, %v3106_v38  ;;  %v4922_v3 = vadd.f32 %v4921_v59, %v4920_v61 }
 0x64e   :  { %v3320_v24 = vsel %vm3224_vm3, 1.0, %v9352_v7  ;;  %v4923_v62 = vpop.f32.mrf.mxu1 }
 0x64f   :  { %v8371_v55 = vsel %vm3224_vm3, %v3106_v38, %v3256_v48  ;;  %v8373_v54 = vpack.c.bf16 %v3320_v24, %v3319_v0  ;;  %v3111_v6 = vadd.f32 %v4922_v3, %v2790_v30  ;;  %v8381_v3 = vpop.permute.xlu0 %2825 }
 0x650   :  { %9533 = vst [vmem:[#allocation10_spill] sm:$0xff] %v8371_v55  ;;  %v4924_v53 = vpop.f32.mrf.mxu1 }
 0x651   :  { %9534 = vst [vmem:[#allocation69_spill] sm:$0xff] %v8373_v54  ;;  %v4925_v8 = vadd.f32 %v4924_v53, %v4923_v62  ;;  %vm3225_vm4 = vcmp.gt.f32.partialorder %v3111_v6, 0.0  ;;  %v3257_v61 = vmul.f32 0.2, %v3111_v6 }
 0x652   :  { %v4926_v59 = vpop.f32.mrf.mxu1  ;;  %v3321_v38 = vsel %vm3225_vm4, 1.0, %v9352_v7 }
 0x653   :  { %v3114_v4 = vadd.f32 %v4925_v8, %v2794_v58  ;;  %v8383_v0 = vsel %vm3225_vm4, %v3111_v6, %v3257_v61  ;;  %v8393_v51 = vpop.permute.xlu0 %2881 }
 0x654   :  { %v4927_v60 = vpop.f32.mrf.mxu1  ;;  %9535 = vst [vmem:[#allocation88_spill] sm:$0xff] %v8383_v0 }
 0x655   :  { %vm3226_vm5 = vcmp.gt.f32.partialorder %v3114_v4, 0.0  ;;  %v3258_v10 = vmul.f32 0.2, %v3114_v4  ;;  %v4928_v14 = vadd.f32 %v4927_v60, %v4926_v59 }
 0x656   :  { %v3322_v48 = vsel %vm3226_vm5, 1.0, %v9352_v7  ;;  %v4929_v30 = vpop.f32.mrf.mxu1 }
 0x657   :  { %v8385_v24 = vsel %vm3226_vm5, %v3114_v4, %v3258_v10  ;;  %v8387_v62 = vpack.c.bf16 %v3322_v48, %v3321_v38  ;;  %v3119_v53 = vadd.f32 %v4928_v14, %v8331_v36 }
 0x658   :  { %9536 = vst [vmem:[#allocation9_spill] sm:$0xff] %v8385_v24  ;;  %v4930_v58 = vpop.f32.mrf.mxu1 }
 0x659   :  { %9537 = vst [vmem:[#allocation35_spill] sm:$0xff] %v8387_v62  ;;  %v4931_v60 = vadd.f32 %v4930_v58, %v4929_v30  ;;  %vm3227_vm6 = vcmp.gt.f32.partialorder %v3119_v53, 0.0  ;;  %v3259_v56 = vmul.f32 0.2, %v3119_v53 }
 0x65a   :  { %v4932_v59 = vpop.f32.mrf.mxu1  ;;  %v3323_v61 = vsel %vm3227_vm6, 1.0, %v9352_v7 }
 0x65b   :  { %v3122_v2 = vadd.f32 %v4931_v60, %v8333_v28  ;;  %v8397_v14 = vsel %vm3227_vm6, %v3119_v53, %v3259_v56  ;;  %v5567_v53 = vld [vmem:[#allocation2 + $0x304] ss:$8 sps:$4 sm:$0xff]  }
 0x65c   :  { %v4933_v23 = vpop.f32.mrf.mxu1  ;;  %9538 = vst [vmem:[#allocation129_spill] sm:$0xff] %v8397_v14  ;;  %3837 = vmatprep.mubr.bf16.mxu1 %v5567_v53 }
 0x65d   :  { %vm3228_vm7 = vcmp.gt.f32.partialorder %v3122_v2, 0.0  ;;  %v3260_v4 = vmul.f32 0.2, %v3122_v2  ;;  %v4934_v6 = vadd.f32 %v4933_v23, %v4932_v59  ;;  %v8406_v23 = vpop.permute.xlu0 %2869 }
 0x65e   :  { %v3324_v36 = vsel %vm3228_vm7, 1.0, %v9352_v7  ;;  %v4935_v10 = vpop.f32.mrf.mxu1 }
 0x65f   :  { %v8399_v38 = vsel %vm3228_vm7, %v3122_v2, %v3260_v4  ;;  %v8401_v48 = vpack.c.bf16 %v3324_v36, %v3323_v61  ;;  %v3127_v30 = vadd.f32 %v4934_v6, %v8321_v1 }
 0x660   :  { %9539 = vst [vmem:[#allocation109_spill] sm:$0xff] %v8399_v38  ;;  %v4936_v28 = vpop.f32.mrf.mxu1 }
 0x661   :  { %9540 = vst [vmem:[#allocation80_spill] sm:$0xff] %v8401_v48  ;;  %v4937_v60 = vadd.f32 %v4936_v28, %v4935_v10  ;;  %vm3229_vm8 = vcmp.gt.f32.partialorder %v3127_v30, 0.0  ;;  %v3261_v59 = vmul.f32 0.2, %v3127_v30  ;;  %v8420_v16 = vpop.permute.xlu0 %2861 }
 0x662   :  { %v4938_v8 = vpop.f32.mrf.mxu1  ;;  %v3325_v61 = vsel %vm3229_vm8, 1.0, %v9352_v7 }
 0x663   :  { %v3130_v31 = vadd.f32 %v4937_v60, %v8323_v44  ;;  %v8411_v36 = vsel %vm3229_vm8, %v3127_v30, %v3261_v59 }
 0x664   :  { %v4939_v56 = vpop.f32.mrf.mxu1  ;;  %9541 = vst [vmem:[#allocation131_spill] sm:$0xff] %v8411_v36 }
 0x665   :  { %vm3230_vm9 = vcmp.gt.f32.partialorder %v3130_v31, 0.0  ;;  %v3262_v2 = vmul.f32 0.2, %v3130_v31  ;;  %v4940_v4 = vadd.f32 %v4939_v56, %v4938_v8 }
 0x666   :  { %v3326_v1 = vsel %vm3230_vm9, 1.0, %v9352_v7  ;;  %v4941_v6 = vpop.f32.mrf.mxu1 }
 0x667   :  { %v8413_v10 = vsel %vm3230_vm9, %v3130_v31, %v3262_v2  ;;  %v8415_v28 = vpack.c.bf16 %v3326_v1, %v3325_v61  ;;  %v3135_v58 = vadd.f32 %v4940_v4, %v8311_v47  ;;  %v8425_v61 = vpop.permute.xlu0 %2853 }
 0x668   :  { %9542 = vst [vmem:[#allocation11_spill] sm:$0xff] %v8413_v10  ;;  %v4942_v44 = vpop.f32.mrf.mxu1 }
 0x669   :  { %v4943_v8 = vadd.f32 %v4942_v44, %v4941_v6  ;;  %vm3231_vm10 = vcmp.gt.f32.partialorder %v3135_v58, 0.0  ;;  %v3263_v46 = vmul.f32 0.2, %v3135_v58  ;;  %v3445_v48 = vunpack.c.l.bf16 %v8415_v28 }
 0x66a   :  { %v4944_v56 = vpop.f32.mrf.mxu1  ;;  %v3327_v2 = vsel %vm3231_vm10, 1.0, %v9352_v7 }
 0x66b   :  { %v3138_v53 = vadd.f32 %v4943_v8, %v8313_v42  ;;  %v8427_v1 = vsel %vm3231_vm10, %v3135_v58, %v3263_v46  ;;  %v2846_v41 = vpop.permute.xlu0 %2845 }
 0x66c   :  { %v4945_v30 = vpop.f32.mrf.mxu1  ;;  %9543 = vst [vmem:[#allocation92_spill] sm:$0xff] %v8427_v1 }
 0x66d   :  { %vm3232_vm11 = vcmp.gt.f32.partialorder %v3138_v53, 0.0  ;;  %v3264_v31 = vmul.f32 0.2, %v3138_v53  ;;  %v4946_v59 = vadd.f32 %v4945_v30, %v4944_v56 }
 0x66e   :  { %v3328_v47 = vsel %vm3232_vm11, 1.0, %v9352_v7  ;;  %v4947_v4 = vpop.f32.mrf.mxu1 }
 0x66f   :  { %v8429_v60 = vsel %vm3232_vm11, %v3138_v53, %v3264_v31  ;;  %v8431_v6 = vpack.c.bf16 %v3328_v47, %v3327_v2  ;;  %v3143_v44 = vadd.f32 %v4946_v59, %v8305_v19 }
 0x670   :  { %9544 = vst [vmem:[#allocation90_spill] sm:$0xff] %v8429_v60  ;;  %v4948_v42 = vpop.f32.mrf.mxu1 }
 0x671   :  { %v4949_v56 = vadd.f32 %v4948_v42, %v4947_v4  ;;  %vm3233_vm12 = vcmp.gt.f32.partialorder %v3143_v44, 0.0  ;;  %v3265_v45 = vmul.f32 0.2, %v3143_v44  ;;  %v3447_v29 = vunpack.c.l.bf16 %v8431_v6 }
 0x672   :  { %v4950_v30 = vpop.f32.mrf.mxu1  ;;  %v3329_v53 = vsel %vm3233_vm12, 1.0, %v9352_v7  ;;  %v3448_v20 = vunpack.c.h.bf16 %v8431_v6 }
 0x673   :  { %v3146_v5 = vadd.f32 %v4949_v56, %v8381_v3  ;;  %v8439_v59 = vsel %vm3233_vm12, %v3143_v44, %v3265_v45 }
 0x674   :  { %v4951_v27 = vpop.f32.mrf.mxu1 }
 0x675   :  { %vm3234_vm13 = vcmp.gt.f32.partialorder %v3146_v5, 0.0  ;;  %v3266_v46 = vmul.f32 0.2, %v3146_v5  ;;  %v4952_v58 = vadd.f32 %v4951_v27, %v4950_v30  ;;  %v2838_v27 = vpop.permute.xlu0 %2837 }
 0x676   :  { %v3330_v31 = vsel %vm3234_vm13, 1.0, %v9352_v7  ;;  %v4953_v19 = vpop.f32.mrf.mxu1 }
 0x677   :  { %v8441_v2 = vsel %vm3234_vm13, %v3146_v5, %v3266_v46  ;;  %v8443_v47 = vpack.c.bf16 %v3330_v31, %v3329_v53  ;;  %v3151_v4 = vadd.f32 %v4952_v58, %v8301_v9 }
 0x678   :  { %v4954_v42 = vpop.f32.mrf.mxu1 }
 0x679   :  { %v4955_v56 = vadd.f32 %v4954_v42, %v4953_v19  ;;  %vm3235_vm14 = vcmp.gt.f32.partialorder %v3151_v4, 0.0  ;;  %v3267_v30 = vmul.f32 0.2, %v3151_v4  ;;  %v8457_v3 = vpop.permute.xlu0 %3594 }
 0x67a   :  { %v4956_v8 = vpop.f32.mrf.mxu1  ;;  %v3331_v46 = vsel %vm3235_vm14, 1.0, %v9352_v7 }
 0x67b   :  { %v3154_v40 = vadd.f32 %v4955_v56, %v8365_v21  ;;  %v8451_v53 = vsel %vm3235_vm14, %v3151_v4, %v3267_v30 }
 0x67c   :  { %v4957_v37 = vpop.f32.mrf.mxu1 }
 0x67d   :  { %v4958_v45 = vadd.f32 %v4957_v37, %v4956_v8  ;;  %vm3236_vm15 = vcmp.gt.f32.partialorder %v3154_v40, 0.0  ;;  %v3268_v5 = vmul.f32 0.2, %v3154_v40 }
 0x67e   :  { %v4959_v44 = vpop.f32.mrf.mxu1  ;;  %v3332_v9 = vsel %vm3236_vm15, 1.0, %v9352_v7 }
 0x67f   :  { %v3159_v58 = vadd.f32 %v4958_v45, %v2838_v27  ;;  %v8453_v31 = vsel %vm3236_vm15, %v3154_v40, %v3268_v5  ;;  %v8455_v19 = vpack.c.bf16 %v3332_v9, %v3331_v46  ;;  %v8464_v5 = vpop.permute.xlu0 %3526 }
 0x680   :  { %v4960_v42 = vpop.f32.mrf.mxu1 }
 0x681   :  { %v4961_v21 = vadd.f32 %v4960_v42, %v4959_v44  ;;  %vm3237_vm0 = vcmp.gt.f32.partialorder %v3159_v58, 0.0  ;;  %v3269_v56 = vmul.f32 0.2, %v3159_v58 }
 0x682   :  { %v4962_v8 = vpop.f32.mrf.mxu1  ;;  %v3333_v40 = vsel %vm3237_vm0, 1.0, %v9352_v7 }
 0x683   :  { %v3162_v55 = vadd.f32 %v4961_v21, %v8349_v33  ;;  %v8468_v9 = vsel %vm3237_vm0, %v3159_v58, %v3269_v56  ;;  %v8475_v54 = vpop.permute.xlu0 %3586 }
 0x684   :  { %v4963_v52 = vpop.f32.mrf.mxu1  ;;  %9546 = vst [vmem:[#allocation107_spill] sm:$0xff] %v8468_v9 }
 0x685   :  { %vm3238_vm1 = vcmp.gt.f32.partialorder %v3162_v55, 0.0  ;;  %v3270_v4 = vmul.f32 0.2, %v3162_v55  ;;  %v4964_v27 = vadd.f32 %v4963_v52, %v4962_v8 }
 0x686   :  { %v3334_v30 = vsel %vm3238_vm1, 1.0, %v9352_v7  ;;  %v4965_v45 = vpop.f32.mrf.mxu1 }
 0x687   :  { %v8466_v44 = vpack.c.bf16 %v3334_v30, %v3333_v40  ;;  %v3167_v46 = vadd.f32 %v4964_v27, %v2846_v41  ;;  %v8470_v42 = vsel %vm3238_vm1, %v3162_v55, %v3270_v4 }
 0x688   :  { %9547 = vst [vmem:[#allocation120_spill] sm:$0xff] %v8470_v42  ;;  %v4966_v37 = vpop.f32.mrf.mxu1 }
 0x689   :  { %9545 = vst [vmem:[#allocation122_spill] sm:$0xff] %v8466_v44  ;;  %v4967_v21 = vadd.f32 %v4966_v37, %v4965_v45  ;;  %vm3239_vm2 = vcmp.gt.f32.partialorder %v3167_v46, 0.0  ;;  %v3271_v8 = vmul.f32 0.2, %v3167_v46  ;;  %v3519_v45 = vpop.permute.xlu0 %3518 }
 0x68a   :  { %v4968_v52 = vpop.f32.mrf.mxu1  ;;  %v3335_v41 = vsel %vm3239_vm2, 1.0, %v9352_v7 }
 0x68b   :  { %v3170_v0 = vadd.f32 %v4967_v21, %v8343_v49  ;;  %v8481_v4 = vsel %vm3239_vm2, %v3167_v46, %v3271_v8 }
 0x68c   :  { %v4969_v24 = vpop.f32.mrf.mxu1  ;;  %9549 = vst [vmem:[#allocation25_spill] sm:$0xff] %v8481_v4 }
 0x68d   :  { %vm3240_vm3 = vcmp.gt.f32.partialorder %v3170_v0, 0.0  ;;  %v3272_v40 = vmul.f32 0.2, %v3170_v0  ;;  %v8487_v42 = vpop.permute.xlu0 %3578 }
 0x68e   :  { %v3336_v55 = vsel %vm3240_vm3, 1.0, %v9352_v7  ;;  %v4971_v58 = vpop.f32.mrf.mxu1 }
 0x68f   :  { %v8479_v56 = vpack.c.bf16 %v3336_v55, %v3335_v41  ;;  %v8483_v37 = vsel %vm3240_vm3, %v3170_v0, %v3272_v40 }
 0x690   :  { %9550 = vst [vmem:[#allocation55_spill] sm:$0xff] %v8483_v37  ;;  %v4972_v27 = vpop.f32.mrf.mxu1 }
 0x691   :  { %9548 = vst [vmem:[#allocation36_spill] sm:$0xff] %v8479_v56  ;;  %v8489_v41 = vpop.permute.xlu0 %3510  ;;  %v4973_v35 = vadd.f32 %v4972_v27, %v4971_v58 }
 0x692   :  { %v4974_v30 = vpop.f32.mrf.mxu1 }
 0x694   :  { %v4975_v21 = vpop.f32.mrf.mxu1 }
 0x695   :  { %v8491_v40 = vpop.permute.xlu0 %3570 }
 0x696   :  { %v4977_v33 = vpop.f32.mrf.mxu1  ;;  %9551 = vst [vmem:[#allocation121_spill] sm:$0xff] %v8491_v40 }
 0x698   :  { %v4978_v9 = vpop.f32.mrf.mxu1 }
 0x699   :  { %v8493_v4 = vpop.permute.xlu0 %3502  ;;  %v4979_v58 = vadd.f32 %v4978_v9, %v4977_v33 }
 0x69a   :  { %v4980_v44 = vpop.f32.mrf.mxu1  ;;  %9552 = vst [vmem:[#allocation50_spill] sm:$0xff] %v8493_v4  ;;  %v3449_v4 = vunpack.c.l.bf16 %v8443_v47 }
 0x69c   :  { %v4981_v34 = vpop.f32.mrf.mxu1 }
 0x69d   :  { %v4982_v36 = vadd.f32 %v4981_v34, %v4980_v44  ;;  %v8497_v18 = vpop.permute.xlu0 %3562  ;;  %v3451_v44 = vunpack.c.l.bf16 %v8455_v19 }
 0x69e   :  { %v4983_v14 = vpop.f32.mrf.mxu1 }
 0x6a0   :  { %v4984_v46 = vpop.f32.mrf.mxu1 }
 0x6a1   :  { %v4985_v1 = vadd.f32 %v4984_v46, %v4983_v14  ;;  %v8512_v46 = vadd.f32 %v4973_v35, %v8337_v26  ;;  %v8527_v26 = vmul.f32 %v3519_v45, %v3449_v4 }
 0x6a2   :  { %v4986_v8 = vpop.f32.mrf.mxu1 }
 0x6a3   :  { %vm3242_vm8 = vcmp.gt.f32.partialorder %v8512_v46, 0.0 }
 0x6a4   :  { %v4987_v0 = vpop.f32.mrf.mxu1 }
 0x6a5   :  { %v4988_v40 = vadd.f32 %v4987_v0, %v4986_v8 }
 0x6a6   :  { %v4989_v55 = vpop.f32.mrf.mxu1 }
 0x6a7   :  { %v8521_v9 = vadd.f32 %v4988_v40, %v8307_v13 }
 0x6a8   :  { %v4990_v38 = vpop.f32.mrf.mxu1 }
 0x6a9   :  { %v4991_v62 = vadd.f32 %v4990_v38, %v4989_v55  ;;  %vm3247_vm10 = vcmp.gt.f32.partialorder %v8521_v9, 0.0 }
 0x6aa   :  { %v4992_v49 = vpop.f32.mrf.mxu1  ;;  %v3343_v4 = vsel %vm3247_vm10, 1.0, %v9352_v7 }
 0x6ab   :  { %v8507_v27 = vadd.f32 %v4991_v62, %v8393_v51  ;;  %v8532_v62 = vpop.permute.xlu0 %3494 }
 0x6ac   :  { %v4993_v37 = vpop.f32.mrf.mxu1 }
 0x6ad   :  { %v4994_v56 = vadd.f32 %v4993_v37, %v4992_v49  ;;  %v3450_v37 = vunpack.c.h.bf16 %v8443_v47  ;;  %v4976_v49 = vadd.f32 %v4975_v21, %v4974_v30  ;;  %v8515_v47 = vadd.f32 %v4982_v36, %v8406_v23 }
 0x6ae   :  { %v4995_v17 = vpop.f32.mrf.mxu1  ;;  %vm3248_vm6 = vcmp.gt.f32.partialorder %v8507_v27, 0.0  ;;  %v3280_v30 = vmul.f32 0.2, %v8507_v27 }
 0x6af   :  { %v8503_v38 = vadd.f32 %v4994_v56, %v8303_v15  ;;  %v8518_v56 = vadd.f32 %v4985_v1, %v8317_v63  ;;  %v8530_v35 = vmul.f32 %v8325_v25, %v3450_v37  ;;  %v8535_v63 = vadd.f32 %v4979_v58, %v8327_v11  ;;  %v8573_v45 = vpop.permute.xlu0 %3554 }
 0x6b0   :  { %v4996_v10 = vpop.f32.mrf.mxu1  ;;  %vm3245_vm7 = vcmp.gt.f32.partialorder %v8515_v47, 0.0  ;;  %v8546_v25 = vmul.f32 %v8464_v5, %v3451_v44 }
 0x6b1   :  { %v4997_v60 = vadd.f32 %v4996_v10, %v4995_v17  ;;  %v3452_v17 = vunpack.c.h.bf16 %v8455_v19  ;;  %v4970_v10 = vadd.f32 %v4969_v24, %v4968_v52  ;;  %vm3249_vm5 = vcmp.gt.f32.partialorder %v8503_v38, 0.0 }
 0x6b2   :  { %v4998_v34 = vpop.f32.mrf.mxu1  ;;  %vm3246_vm9 = vcmp.gt.f32.partialorder %v8518_v56, 0.0  ;;  %v3345_v11 = vsel %vm3249_vm5, 1.0, %v9352_v7  ;;  %vm3244_vm12 = vcmp.gt.f32.partialorder %v8535_v63, 0.0  ;;  %v3341_v33 = vsel %vm3245_vm7, 1.0, %v9352_v7 }
 0x6b3   :  { %v3210_v14 = vadd.f32 %v4997_v60, %v8377_v57  ;;  %v8524_v57 = vadd.f32 %v4976_v49, %v8420_v16  ;;  %v8542_v23 = vadd.f32 %v4970_v10, %v8425_v61  ;;  %v8549_v60 = vmul.f32 %v8315_v12, %v3452_v17 }
 0x6b4   :  { %v4999_v15 = vpop.f32.mrf.mxu1  ;;  %v3344_v61 = vsel %vm3248_vm6, 1.0, %v9352_v7  ;;  %v3342_v52 = vsel %vm3246_vm9, 1.0, %v9352_v7  ;;  %v3281_v8 = vmul.f32 0.2, %v8503_v38  ;;  %v3340_v17 = vsel %vm3244_vm12, 1.0, %v9352_v7 }
 0x6b5   :  { %vm3250_vm4 = vcmp.gt.f32.partialorder %v3210_v14, 0.0  ;;  %v5000_v51 = vadd.f32 %v4999_v15, %v4998_v34  ;;  %vm3243_vm11 = vcmp.gt.f32.partialorder %v8524_v57, 0.0  ;;  %v3282_v1 = vmul.f32 0.2, %v3210_v14 }
 0x6b6   :  { %v5001_v24 = vpop.f32.mrf.mxu1  ;;  %v3346_v13 = vsel %vm3250_vm4, 1.0, %v9352_v7  ;;  %v3362_v21 = vpack.c.bf16 %v3344_v61, %v3343_v4  ;;  %v3278_v10 = vmul.f32 0.2, %v8518_v56  ;;  %v3361_v15 = vpack.c.bf16 %v3342_v52, %v3341_v33 }
 0x6b7   :  { %v3215_v16 = vadd.f32 %v5000_v51, %v8353_v22  ;;  %v3363_v12 = vpack.c.bf16 %v3346_v13, %v3345_v11  ;;  %v3314_v55 = vsel %vm3250_vm4, %v3210_v14, %v3282_v1  ;;  %v3313_v14 = vsel %vm3249_vm5, %v8503_v38, %v3281_v8  ;;  %v8592_v1 = vpop.permute.xlu0 %3486 }
 0x6b8   :  { %v5002_v36 = vpop.f32.mrf.mxu1  ;;  %v3312_v11 = vsel %vm3248_vm6, %v8507_v27, %v3280_v30  ;;  %v3464_v61 = vunpack.c.h.bf16 %v3362_v21  ;;  %vm3241_vm15 = vcmp.gt.f32.partialorder %v8542_v23, 0.0  ;;  %v3338_v27 = vsel %vm3242_vm8, 1.0, %v9352_v7 }
 0x6b9   :  { %v5003_v22 = vadd.f32 %v5002_v36, %v5001_v24  ;;  %vm3251_vm13 = vcmp.gt.f32.partialorder %v3215_v16, 0.0  ;;  %v3283_v19 = vmul.f32 0.2, %v3215_v16  ;;  %v3465_v37 = vunpack.c.l.bf16 %v3363_v12 }
 0x6ba   :  { %v3347_v0 = vsel %vm3251_vm13, 1.0, %v9352_v7  ;;  %v3466_v58 = vunpack.c.h.bf16 %v3363_v12  ;;  %v3279_v24 = vmul.f32 0.2, %v8521_v9  ;;  %v8594_v12 = vpop.permute.xlu1 %3490  ;;  %v3339_v4 = vsel %vm3243_vm11, 1.0, %v9352_v7 }
 0x6bb   :  { %v3218_v5 = vadd.f32 %v5003_v22, %v8299_v43  ;;  %v3315_v34 = vsel %vm3251_vm13, %v3215_v16, %v3283_v19  ;;  %v3379_v16 = vpack.c.bf16 %v3314_v55, %v3313_v14  ;;  %v3463_v22 = vunpack.c.l.bf16 %v3362_v21 }
 0x6bc   :  { %v9553_v19 = vpack.c.bf16 %v8453_v31, %v8451_v53  ;;  %v3625_v33 = vmul.f32 %v8319_v39, %v3465_v37  ;;  %v3626_v52 = vmul.f32 %v8475_v54, %v3466_v58  ;;  %v3277_v39 = vmul.f32 0.2, %v8515_v47  ;;  %v8634_v37 = vpop.permute.xlu0 %3542 }
 0x6bd   :  { %vm3252_vm14 = vcmp.gt.f32.partialorder %v3218_v5, 0.0  ;;  %v3284_v43 = vmul.f32 0.2, %v3218_v5  ;;  %v3311_v54 = vsel %vm3247_vm10, %v8521_v9, %v3279_v24  ;;  %v3360_v31 = vpack.c.bf16 %v3340_v17, %v3339_v4  ;;  %v9559_v17 = vld [vmem:[#allocation33_spill] sm:$0xff]  ;;  %v9564_v4 = vld [vmem:[#allocation11_spill] sm:$0xff] }
 0x6be   :  { %v3348_v40 = vsel %vm3252_vm14, 1.0, %v9352_v7  ;;  %v3378_v30 = vpack.c.bf16 %v3312_v11, %v3311_v54  ;;  %v3310_v21 = vsel %vm3246_vm9, %v8518_v56, %v3278_v10  ;;  %v3461_v8 = vunpack.c.l.bf16 %v3361_v15 }
 0x6bf   :  { %v3364_v49 = vpack.c.bf16 %v3348_v40, %v3347_v0  ;;  %v3316_v44 = vsel %vm3252_vm14, %v3218_v5, %v3284_v43  ;;  %v9554_v43 = vpack.c.bf16 %v8441_v2, %v8439_v59  ;;  %v3624_v0 = vmul.f32 %v8487_v42, %v3464_v61  ;;  %v9555_v59 = vld [vmem:[#allocation74_spill] sm:$0xff] }
 0x6c0   :  { %v3380_v51 = vpack.c.bf16 %v3316_v44, %v3315_v34  ;;  %v3462_v40 = vunpack.c.h.bf16 %v3361_v15  ;;  %v3635_v9 = vpack.c.bf16 %v8530_v35, %v8527_v26  ;;  %v3607_v56 = vmul.f32 %v8489_v41, %v3447_v29  ;;  %v9556_v34 = vld [vmem:[#allocation90_spill] sm:$0xff]  ;;  %v9557_v44 = vld [vmem:[#allocation92_spill] sm:$0xff]  ;;  %v9560_v15 = vld [vmem:[#allocation121_spill] sm:$0xff] }
 0x6c1   :  { %v3467_v13 = vunpack.c.l.bf16 %v3364_v49  ;;  %v3468_v36 = vunpack.c.h.bf16 %v3364_v49  ;;  %v3608_v2 = vmul.f32 %v9555_v59, %v3448_v20  ;;  %v3446_v55 = vunpack.c.h.bf16 %v8415_v28 }
 0x6c2   :  { %5004 = vmatprep.subr.bf16.mxu0 %v3380_v51  ;;  %v3337_v42 = vsel %vm3241_vm15, 1.0, %v9352_v7  ;;  %v3274_v26 = vmul.f32 0.2, %v8512_v46  ;;  %v3275_v35 = vmul.f32 0.2, %v8524_v57  ;;  %v3309_v29 = vsel %vm3245_vm7, %v8515_v47, %v3277_v39  ;;  %v9561_v47 = vld [vmem:[#allocation80_spill] sm:$0xff] }
 0x6c3   :  { %5005 = vmatpush3.bf16.msra.mxu0 %v9553_v19  ;;  %v3627_v38 = vmul.f32 %v8309_v50, %v3467_v13  ;;  %v3628_v5 = vmul.f32 %v8457_v3, %v3468_v36  ;;  %v3636_v50 = vpack.c.bf16 %v8549_v60, %v8546_v25  ;;  %v3276_v3 = vmul.f32 0.2, %v8535_v63  ;;  %v9567_v39 = vld [vmem:[#allocation54_spill] sm:$0xff] }
 0x6c4   :  { %5006 = vmatprep.subr.bf16.mxu0 %v3379_v16  ;;  %v3643_v25 = vpack.c.bf16 %v3626_v52, %v3625_v33  ;;  %v3623_v60 = vmul.f32 %v8329_v32, %v3463_v22  ;;  %v8636_v32 = vpop.permute.xlu1 %3546  ;;  %v3359_v20 = vpack.c.bf16 %v3338_v27, %v3337_v42  ;;  %v3377_v6 = vpack.c.bf16 %v3310_v21, %v3309_v29  ;;  %v9562_v16 = vld [vmem:[#allocation50_spill] sm:$0xff]  ;;  %v9563_v22 = vld [vmem:[#allocation96_spill] sm:$0xff]  ;;  %v3479_v52 = vpop.permute.xlu0 %3478 }
 0x6c5   :  { %v3644_v53 = vpack.c.bf16 %v3628_v5, %v3627_v38  ;;  %v3308_v41 = vsel %vm3244_vm12, %v8535_v63, %v3276_v3  ;;  %v3459_v49 = vunpack.c.l.bf16 %v3360_v31  ;;  %v9558_v58 = vpack.c.bf16 %v9556_v34, %v9557_v44  ;;  %v9576_v34 = vld [vmem:[#allocation122_spill] sm:$0xff] }
 0x6c6   :  { %v3642_v7 = vpack.c.bf16 %v3624_v0, %v3623_v60  ;;  %v3621_v10 = vmul.f32 %v9559_v17, %v3461_v8  ;;  %v3622_v51 = vmul.f32 %v9560_v15, %v3462_v40  ;;  %v3460_v24 = vunpack.c.h.bf16 %v3360_v31  ;;  %v9568_v31 = vld [vmem:[#allocation35_spill] sm:$0xff]  ;;  %v9570_v0 = vld [vmem:[#allocation36_spill] sm:$0xff]  ;;  %v9571_v40 = vld [vmem:[#allocation109_spill] sm:$0xff] }
 0x6c7   :  { %5007 = vmatpush3.bf16.msra.mxu0 %v9554_v43  ;;  %5026 = vmatprep.subr.bf16.mxu1 %v3644_v53  ;;  %v3443_v14 = vunpack.c.l.bf16 %v9561_v47  ;;  %v3444_v13 = vunpack.c.h.bf16 %v9561_v47  ;;  %v3273_v36 = vmul.f32 0.2, %v8542_v23  ;;  %v3307_v63 = vsel %vm3243_vm11, %v8524_v57, %v3275_v35  ;;  %v9575_v35 = vld [vmem:[#allocation69_spill] sm:$0xff] }
 0x6c8   :  { %5008 = vmatprep.subr.bf16.mxu0 %v3378_v30  ;;  %5027 = vmatpush3.bf16.msra.mxu1 %v3636_v50  ;;  %v3605_v11 = vmul.f32 %v9562_v16, %v3445_v48  ;;  %v3606_v61 = vmul.f32 %v9563_v22, %v3446_v55  ;;  %v3376_v19 = vpack.c.bf16 %v3308_v41, %v3307_v63  ;;  %v3457_v33 = vunpack.c.l.bf16 %v3359_v20  ;;  %v3483_v27 = vpop.permute.xlu1 %3482  ;;  %v9565_v50 = vld [vmem:[#allocation131_spill] sm:$0xff]  ;;  %v3535_v42 = vpop.permute.xlu0 %3534  ;;  %v9581_v47 = vld [vmem:[#allocation25_spill] sm:$0xff] }
 0x6c9   :  { %5028 = vmatprep.subr.bf16.mxu1 %v3643_v25  ;;  %v3634_v38 = vpack.c.bf16 %v3608_v2, %v3607_v56  ;;  %v3306_v5 = vsel %vm3242_vm8, %v8512_v46, %v3274_v26  ;;  %v9566_v3 = vpack.c.bf16 %v9564_v4, %v9565_v50  ;;  %v3641_v57 = vpack.c.bf16 %v3622_v51, %v3621_v10  ;;  %v9569_v25 = vld [vmem:[#allocation76_spill] sm:$0xff]  ;;  %v9588_v4 = vld [vmem:[#allocation107_spill] sm:$0xff] }
 0x6ca   :  { %v3619_v28 = vmul.f32 %v9567_v39, %v3459_v49  ;;  %v3620_v48 = vmul.f32 %v8497_v18, %v3460_v24  ;;  %v3458_v53 = vunpack.c.h.bf16 %v3359_v20  ;;  %v3305_v46 = vsel %vm3241_vm15, %v8542_v23, %v3273_v36  ;;  %v9574_v2 = vld [vmem:[#allocation100_spill] sm:$0xff]  ;;  %v9580_v24 = vld [vmem:[#allocation55_spill] sm:$0xff] }
 0x6cb   :  { %5009 = vmatpush3.bf16.msra.mxu0 %v9558_v58  ;;  %v3603_v54 = vmul.f32 %v8532_v62, %v3443_v14  ;;  %v3441_v30 = vunpack.c.l.bf16 %v9568_v31  ;;  %v3442_v21 = vunpack.c.h.bf16 %v9568_v31  ;;  %v3375_v8 = vpack.c.bf16 %v3306_v5, %v3305_v46  ;;  %v9577_v58 = vld [vmem:[#allocation9_spill] sm:$0xff]  ;;  %v5570_v31 = vld [vmem:[#allocation2 + $0x310] ss:$8 sps:$4 sm:$0xff]  }
 0x6cc   :  { %5010 = vmatprep.subr.bf16.mxu0 %v3377_v6  ;;  %5029 = vmatpush3.bf16.msra.mxu1 %v3635_v9  ;;  %v3633_v43 = vpack.c.bf16 %v3606_v61, %v3605_v11  ;;  %v3604_v60 = vmul.f32 %v9569_v25, %v3444_v13  ;;  %v3455_v18 = vunpack.c.l.bf16 %v9570_v0  ;;  %v9572_v9 = vld [vmem:[#allocation129_spill] sm:$0xff]  ;;  %v3640_v59 = vpack.c.bf16 %v3620_v48, %v3619_v28  ;;  %v3539_v26 = vpop.permute.xlu1 %3538  ;;  %v3471_v11 = vpop.permute.xlu0 %3470  ;;  %v9585_v61 = vld [vmem:[#allocation102_spill] sm:$0xff] }
 0x6cd   :  { %5030 = vmatprep.subr.bf16.mxu1 %v3642_v7  ;;  %v9573_v56 = vpack.c.bf16 %v9571_v40, %v9572_v9  ;;  %v3617_v55 = vmul.f32 %v9574_v2, %v3457_v33  ;;  %v3618_v23 = vmul.f32 %v8573_v45, %v3458_v53  ;;  %v3456_v62 = vunpack.c.h.bf16 %v9570_v0  ;;  %v9578_v45 = vld [vmem:[#allocation88_spill] sm:$0xff]  ;;  %v5565_v46 = vld [vmem:[#allocation2 + $0x300] ss:$8 sps:$4 sm:$0xff]   ;;  %v5577_v25 = vld [vmem:[#allocation2 + $0x344] ss:$8 sps:$4 sm:$0xff]  }
 0x6ce   :  { %v3439_v29 = vunpack.c.l.bf16 %v9575_v35  ;;  %v3440_v20 = vunpack.c.h.bf16 %v9575_v35  ;;  %v3632_v6 = vpack.c.bf16 %v3604_v60, %v3603_v54  ;;  %v3601_v41 = vmul.f32 %v8592_v1, %v3441_v30  ;;  %v9583_v1 = vld [vmem:[#allocation98_spill] sm:$0xff]  ;;  %v9587_v33 = vld [vmem:[#allocation120_spill] sm:$0xff] }
 0x6cf   :  { %5011 = vmatpush3.bf16.msra.mxu0 %v9566_v3  ;;  %v3602_v49 = vmul.f32 %v8594_v12, %v3442_v21  ;;  %v3453_v44 = vunpack.c.l.bf16 %v9576_v34  ;;  %v9579_v7 = vpack.c.bf16 %v9577_v58, %v9578_v45  ;;  %v3639_v17 = vpack.c.bf16 %v3618_v23, %v3617_v55  ;;  %v5568_v54 = vld [vmem:[#allocation2 + $0x314] ss:$8 sps:$4 sm:$0xff]   ;;  %v5571_v30 = vld [vmem:[#allocation2 + $0x324] ss:$8 sps:$4 sm:$0xff]   ;;  %v5573_v21 = vld [vmem:[#allocation2 + $0x320] ss:$8 sps:$4 sm:$0xff]  }
 0x6d0   :  { %5012 = vmatprep.subr.bf16.mxu0 %v3376_v19  ;;  %5031 = vmatpush3.bf16.msra.mxu1 %v3634_v38  ;;  %v3615_v10 = vmul.f32 %v8634_v37, %v3455_v18  ;;  %v3616_v15 = vmul.f32 %v8636_v32, %v3456_v62  ;;  %v3454_v51 = vunpack.c.h.bf16 %v9576_v34  ;;  %v9582_v14 = vpack.c.bf16 %v9580_v24, %v9581_v47  ;;  %v3475_v22 = vpop.permute.xlu1 %3474  ;;  %v9584_v37 = vld [vmem:[#allocation10_spill] sm:$0xff]  ;;  %v5580_v0 = vld [vmem:[#allocation2 + $0x354] ss:$8 sps:$4 sm:$0xff]   ;;  %v5582_v18 = vld [vmem:[#allocation2 + $0x350] ss:$8 sps:$4 sm:$0xff]  }
 0x6d1   :  { %5032 = vmatprep.subr.bf16.mxu1 %v3641_v57  ;;  %v3437_v12 = vunpack.c.l.bf16 %v9583_v1  ;;  %v3438_v13 = vunpack.c.h.bf16 %v9583_v1  ;;  %v3631_v36 = vpack.c.bf16 %v3602_v49, %v3601_v41  ;;  %v3599_v63 = vmul.f32 %v3479_v52, %v3439_v29  ;;  %v9590_v52 = vld [vmem:[#allocation65_spill] sm:$0xff]  ;;  %v5592_v23 = vld [vmem:[#allocation2 + $0x394] ss:$8 sps:$4 sm:$0xff]   ;;  %v5594_v62 = vld [vmem:[#allocation2 + $0x390] ss:$8 sps:$4 sm:$0xff]  }
 0x6d2   :  { %v3600_v16 = vmul.f32 %v3483_v27, %v3440_v20  ;;  %v9586_v32 = vpack.c.bf16 %v9584_v37, %v9585_v61  ;;  %v3638_v19 = vpack.c.bf16 %v3616_v15, %v3615_v10  ;;  %v3613_v38 = vmul.f32 %v3535_v42, %v3453_v44  ;;  %v9591_v27 = vld [vmem:[#allocation125_spill] sm:$0xff]  ;;  %v5598_v35 = vld [vmem:[#allocation2 + $0x3b4] ss:$8 sps:$4 sm:$0xff]   ;;  %v5600_v29 = vld [vmem:[#allocation2 + $0x3b0] ss:$8 sps:$4 sm:$0xff]  }
 0x6d3   :  { %5013 = vmatpush3.bf16.msra.mxu0 %v9573_v56  ;;  %v3614_v5 = vmul.f32 %v3539_v26, %v3454_v51  ;;  %v9589_v50 = vpack.c.bf16 %v9587_v33, %v9588_v4  ;;  %v3597_v3 = vmul.f32 %v3471_v11, %v3437_v12  ;;  %v3598_v57 = vmul.f32 %v3475_v22, %v3438_v13  ;;  %v5579_v60 = vld [vmem:[#allocation2 + $0x340] ss:$8 sps:$4 sm:$0xff]   ;;  %v5583_v40 = vld [vmem:[#allocation2 + $0x364] ss:$8 sps:$4 sm:$0xff]   ;;  %v5586_v56 = vld [vmem:[#allocation2 + $0x374] ss:$8 sps:$4 sm:$0xff]  }
 0x6d4   :  { %5014 = vmatprep.subr.bf16.mxu0 %v3375_v8  ;;  %5033 = vmatpush3.bf16.msra.mxu1 %v3633_v43  ;;  %v3630_v39 = vpack.c.bf16 %v3600_v16, %v3599_v63  ;;  %v9592_v28 = vpack.c.bf16 %v9590_v52, %v9591_v27  ;;  %v5574_v8 = vld [vmem:[#allocation2 + $0x334] ss:$8 sps:$4 sm:$0xff]   ;;  %v5576_v43 = vld [vmem:[#allocation2 + $0x330] ss:$8 sps:$4 sm:$0xff]   ;;  %v5585_v9 = vld [vmem:[#allocation2 + $0x360] ss:$8 sps:$4 sm:$0xff]  }
 0x6d5   :  { %5034 = vmatprep.subr.bf16.mxu1 %v3640_v59  ;;  %v3637_v48 = vpack.c.bf16 %v3614_v5, %v3613_v38  ;;  %v3629_v53 = vpack.c.bf16 %v3598_v57, %v3597_v3  ;;  %v5588_v59 = vld [vmem:[#allocation2 + $0x370] ss:$8 sps:$4 sm:$0xff]   ;;  %v5589_v2 = vld [vmem:[#allocation2 + $0x384] ss:$8 sps:$4 sm:$0xff]   ;;  %v5591_v55 = vld [vmem:[#allocation2 + $0x380] ss:$8 sps:$4 sm:$0xff]  }
 0x6d6   :  { %v5595_v42 = vld [vmem:[#allocation2 + $0x3a4] ss:$8 sps:$4 sm:$0xff]   ;;  %v5597_v26 = vld [vmem:[#allocation2 + $0x3a0] ss:$8 sps:$4 sm:$0xff]   ;;  %v5606_v41 = vld [vmem:[#allocation2 + $0x3d4] ss:$8 sps:$4 sm:$0xff]  }
 0x6d7   :  { %5015 = vmatpush3.bf16.msra.mxu0 %v9579_v7  ;;  %v5603_v20 = vld [vmem:[#allocation2 + $0x3c4] ss:$8 sps:$4 sm:$0xff]   ;;  %v5604_v49 = vld [vmem:[#allocation2 + $0x3d0] ss:$8 sps:$4 sm:$0xff]   ;;  %v5607_v44 = vld [vmem:[#allocation2 + $0x3e0] ss:$8 sps:$4 sm:$0xff]  }
 0x6d8   :  { %5016 = vmatprep.subr.bf16.mxu0 %v9582_v14  ;;  %5035 = vmatpush3.bf16.msra.mxu1 %v3632_v6  ;;  %v5601_v6 = vld [vmem:[#allocation2 + $0x3c0] ss:$8 sps:$4 sm:$0xff]   ;;  %v5609_v34 = vld [vmem:[#allocation2 + $0x3e4] ss:$8 sps:$4 sm:$0xff]   ;;  %v5612_v58 = vld [vmem:[#allocation2 + $0x3f4] ss:$8 sps:$4 sm:$0xff]  }
 0x6d9   :  { %5036 = vmatprep.subr.bf16.mxu1 %v3639_v17  ;;  %v5610_v45 = vld [vmem:[#allocation2 + $0x3f0] ss:$8 sps:$4 sm:$0xff]   ;;  %v4711_v7 = vld.sshfl [vmem:[%s9051_s4] sm:$0x33 pattern:$0x76325410] }
 0x6da   :  { %v3394_v17 = vcombine.high %v4711_v7, %v4711_v7  ;;  %v9593_v24 = vld [vmem:[#allocation29_spill] sm:$0xff]  ;;  %v9594_v61 = vld [vmem:[#allocation56_spill] sm:$0xff] }
 0x6db   :  { %5017 = vmatpush3.bf16.msra.mxu0 %v9586_v32  ;;  %v3966_v47 = vunpack.c.l.bf16 %v9593_v24  ;;  %v3968_v32 = vunpack.c.l.bf16 %v9594_v61  ;;  %v3969_v4 = vunpack.c.h.bf16 %v9594_v61  ;;  %v9595_v27 = vld [vmem:[#allocation101_spill] sm:$0xff]  ;;  %v9599_v61 = vld [vmem:[#allocation7_spill] sm:$0xff] }
 0x6dc   :  { %5018 = vmatprep.subr.bf16.mxu0 %v9589_v50  ;;  %5037 = vmatpush3.bf16.msra.mxu1 %v3631_v36  ;;  %v3967_v36 = vunpack.c.h.bf16 %v9593_v24 }
 0x6dd   :  { %5038 = vmatprep.subr.bf16.mxu1 %v3638_v19  ;;  %3429 = vmatprep.mubr.bf16.mxu0 %v3394_v17 }
 0x6df   :  { %5019 = vmatpush3.bf16.msra.mxu0 %v9592_v28  ;;  %v3970_v28 = vunpack.c.l.bf16 %v9595_v27 }
 0x6e0   :  { %5039 = vmatpush3.bf16.msra.mxu1 %v3630_v39 }
 0x6e1   :  { %5040 = vmatprep.subr.bf16.mxu1 %v3637_v48 }
 0x6e2   :  { %3430 = vmatmul.mubr.bf16.vlgmr.msra.gmra.mxu0 %v4711_v7 }
 0x6e4   :  { %5041 = vmatpush3.bf16.msra.mxu1 %v3629_v53 }
 0x6e7   :  { %3838 = vmatmul.mubr.bf16.vlgmr.msra.gmra.mxu1 %v5565_v46 }
 0x6e8   :  { %3845 = vmatprep.mubr.bf16.mxu1 %v5568_v54 }
 0x6ef   :  { %3846 = vmatmul.mubr.bf16.gmra.mxu1 %v5570_v31  ;;  %v3971_v31 = vunpack.c.h.bf16 %v9595_v27 }
 0x6f0   :  { %3853 = vmatprep.mubr.bf16.mxu1 %v5571_v30 }
 0x6f7   :  { %3854 = vmatmul.mubr.bf16.gmra.mxu1 %v5573_v21 }
 0x6f8   :  { %3861 = vmatprep.mubr.bf16.mxu1 %v5574_v8 }
 0x6ff   :  { %3862 = vmatmul.mubr.bf16.gmra.mxu1 %v5576_v43  ;;  %v9607_v43 = vld [vmem:[#allocation111_spill] sm:$0xff] }
 0x700   :  { %3869 = vmatprep.mubr.bf16.mxu1 %v5577_v25 }
 0x707   :  { %3870 = vmatmul.mubr.bf16.gmra.mxu1 %v5579_v60  ;;  %v9596_v60 = vld [vmem:[#allocation78_spill] sm:$0xff] }
 0x708   :  { %3877 = vmatprep.mubr.bf16.mxu1 %v5580_v0  ;;  %v3972_v0 = vunpack.c.l.bf16 %v9596_v60 }
 0x70f   :  { %3878 = vmatmul.mubr.bf16.gmra.mxu1 %v5582_v18 }
 0x710   :  { %3885 = vmatprep.mubr.bf16.mxu1 %v5583_v40 }
 0x717   :  { %3886 = vmatmul.mubr.bf16.gmra.mxu1 %v5585_v9 }
 0x718   :  { %3893 = vmatprep.mubr.bf16.mxu1 %v5586_v56 }
 0x71f   :  { %3894 = vmatmul.mubr.bf16.gmra.mxu1 %v5588_v59  ;;  %v3973_v59 = vunpack.c.h.bf16 %v9596_v60 }
 0x720   :  { %3901 = vmatprep.mubr.bf16.mxu1 %v5589_v2 }
 0x727   :  { %3902 = vmatmul.mubr.bf16.gmra.mxu1 %v5591_v55 }
 0x728   :  { %3909 = vmatprep.mubr.bf16.mxu1 %v5592_v23 }
 0x72f   :  { %3910 = vmatmul.mubr.bf16.gmra.mxu1 %v5594_v62  ;;  %v5615_v62 = vld [vmem:[#allocation2 + $0x204] ss:$8 sps:$4 sm:$0xff]  }
 0x730   :  { %3917 = vmatprep.mubr.bf16.mxu1 %v5595_v42  ;;  %4238 = vmatprep.mubr.bf16.mxu0 %v5615_v62 }
 0x737   :  { %3918 = vmatmul.mubr.bf16.gmra.mxu1 %v5597_v26 }
 0x738   :  { %3925 = vmatprep.mubr.bf16.mxu1 %v5598_v35  ;;  %v9597_v35 = vld [vmem:[#allocation67_spill] sm:$0xff] }
 0x73f   :  { %3926 = vmatmul.mubr.bf16.gmra.mxu1 %v5600_v29  ;;  %v3974_v29 = vunpack.c.l.bf16 %v9597_v35 }
 0x740   :  { %3933 = vmatprep.mubr.bf16.mxu1 %v5603_v20 }
 0x747   :  { %3934 = vmatmul.mubr.bf16.gmra.mxu1 %v5601_v6 }
 0x748   :  { %3941 = vmatprep.mubr.bf16.mxu1 %v5606_v41 }
 0x74f   :  { %3942 = vmatmul.mubr.bf16.gmra.mxu1 %v5604_v49 }
 0x750   :  { %3949 = vmatprep.mubr.bf16.mxu1 %v5609_v34  ;;  %v3975_v34 = vunpack.c.h.bf16 %v9597_v35 }
 0x757   :  { %3950 = vmatmul.mubr.bf16.gmra.mxu1 %v5607_v44 }
 0x758   :  { %3957 = vmatprep.mubr.bf16.mxu1 %v5612_v58 }
 0x75f   :  { %3958 = vmatmul.mubr.bf16.gmra.mxu1 %v5610_v45 }
 0x7a7   :  { %v5042_v10 = vpop.f32.mrf.mxu1 }
 0x7a9   :  { %v5043_v15 = vpop.f32.mrf.mxu1 }
 0x7aa   :  { %v5044_v51 = vadd.f32 %v5043_v15, %v5042_v10  ;;  %v9598_v10 = vld [vmem:[#allocation84_spill] sm:$0xff] }
 0x7ab   :  { %v5045_v14 = vpop.f32.mrf.mxu1  ;;  %v3976_v15 = vunpack.c.l.bf16 %v9598_v10 }
 0x7ac   :  { %v8715_v1 = vmul.f32 %v5044_v51, %v3966_v47 }
 0x7ad   :  { %v5046_v12 = vpop.f32.mrf.mxu1 }
 0x7ae   :  { %v5047_v13 = vadd.f32 %v5046_v12, %v5045_v14  ;;  %v3977_v12 = vunpack.c.h.bf16 %v9598_v10 }
 0x7af   :  { %v5048_v63 = vpop.f32.mrf.mxu1 }
 0x7b0   :  { %v8718_v16 = vmul.f32 %v5047_v13, %v3967_v36 }
 0x7b1   :  { %v5049_v11 = vpop.f32.mrf.mxu1 }
 0x7b2   :  { %v5050_v37 = vadd.f32 %v5049_v11, %v5048_v63 }
 0x7b3   :  { %v5051_v19 = vpop.f32.mrf.mxu1 }
 0x7b4   :  { %v8723_v38 = vmul.f32 %v5050_v37, %v3968_v32  ;;  %v3978_v32 = vunpack.c.l.bf16 %v9599_v61 }
 0x7b5   :  { %v5052_v5 = vpop.f32.mrf.mxu1 }
 0x7b6   :  { %v5053_v33 = vadd.f32 %v5052_v5, %v5051_v19 }
 0x7b7   :  { %v5054_v50 = vpop.f32.mrf.mxu1 }
 0x7b8   :  { %v8726_v3 = vmul.f32 %v5053_v33, %v3969_v4 }
 0x7b9   :  { %v5055_v57 = vpop.f32.mrf.mxu1 }
 0x7ba   :  { %v5056_v52 = vadd.f32 %v5055_v57, %v5054_v50  ;;  %v3979_v50 = vunpack.c.h.bf16 %v9599_v61 }
 0x7bb   :  { %v5057_v48 = vpop.f32.mrf.mxu1 }
 0x7bc   :  { %v8731_v53 = vmul.f32 %v5056_v52, %v3970_v28 }
 0x7bd   :  { %v5058_v46 = vpop.f32.mrf.mxu1 }
 0x7be   :  { %v5059_v54 = vadd.f32 %v5058_v46, %v5057_v48  ;;  %v9600_v46 = vld [vmem:[#allocation31_spill] sm:$0xff] }
 0x7bf   :  { %v5060_v30 = vpop.f32.mrf.mxu1  ;;  %v3981_v60 = vunpack.c.h.bf16 %v9600_v46 }
 0x7c0   :  { %v8734_v21 = vmul.f32 %v5059_v54, %v3971_v31  ;;  %v3980_v54 = vunpack.c.l.bf16 %v9600_v46 }
 0x7c1   :  { %v5061_v8 = vpop.f32.mrf.mxu1 }
 0x7c2   :  { %v5062_v25 = vadd.f32 %v5061_v8, %v5060_v30 }
 0x7c3   :  { %v5063_v18 = vpop.f32.mrf.mxu1 }
 0x7c4   :  { %v8739_v40 = vmul.f32 %v5062_v25, %v3972_v0 }
 0x7c5   :  { %v5064_v9 = vpop.f32.mrf.mxu1 }
 0x7c6   :  { %v5065_v56 = vadd.f32 %v5064_v9, %v5063_v18 }
 0x7c7   :  { %v5066_v2 = vpop.f32.mrf.mxu1 }
 0x7c8   :  { %v8742_v55 = vmul.f32 %v5065_v56, %v3973_v59 }
 0x7c9   :  { %v5067_v23 = vpop.f32.mrf.mxu1 }
 0x7ca   :  { %v4033_v42 = vpack.c.bf16 %v8742_v55, %v8739_v40  ;;  %v5068_v26 = vadd.f32 %v5067_v23, %v5066_v2  ;;  %v9601_v2 = vld [vmem:[#allocation82_spill] sm:$0xff] }
 0x7cb   :  { %v5069_v20 = vpop.f32.mrf.mxu1  ;;  %v3982_v23 = vunpack.c.l.bf16 %v9601_v2  ;;  %v5613_v55 = vld [vmem:[#allocation2 + $0x200] ss:$8 sps:$4 sm:$0xff]  }
 0x7cc   :  { %v8747_v6 = vmul.f32 %v5068_v26, %v3974_v29  ;;  %v242_v29 = vld [vmem:[%s9053_s6] sm:$0xf] }
 0x7cd   :  { %v5070_v41 = vpop.f32.mrf.mxu1  ;;  %3383 = vperm.xlu0 %5467, %v242_v29  }
 0x7ce   :  { %v5071_v49 = vadd.f32 %v5070_v41, %v5069_v20  ;;  %v3983_v41 = vunpack.c.h.bf16 %v9601_v2 }
 0x7cf   :  { %v5072_v44 = vpop.f32.mrf.mxu1 }
 0x7d0   :  { %v8750_v58 = vmul.f32 %v5071_v49, %v3975_v34 }
 0x7d1   :  { %v5073_v45 = vpop.f32.mrf.mxu1 }
 0x7d2   :  { %v4034_v7 = vpack.c.bf16 %v8750_v58, %v8747_v6  ;;  %v5074_v17 = vadd.f32 %v5073_v45, %v5072_v44  ;;  %v9613_v6 = vpack.c.bf16 %v8726_v3, %v8723_v38  ;;  %v5616_v58 = vld [vmem:[#allocation2 + $0x214] ss:$8 sps:$4 sm:$0xff]   ;;  %v5624_v38 = vld [vmem:[#allocation2 + $0x230] ss:$8 sps:$4 sm:$0xff]   ;;  %v5625_v3 = vld [vmem:[#allocation2 + $0x244] ss:$8 sps:$4 sm:$0xff]  }
 0x7d3   :  { %v5075_v51 = vpop.f32.mrf.mxu1 }
 0x7d4   :  { %v8755_v24 = vmul.f32 %v5074_v17, %v3976_v15  ;;  %v9602_v17 = vld [vmem:[#allocation64_spill] sm:$0xff] }
 0x7d5   :  { %v5076_v47 = vpop.f32.mrf.mxu1  ;;  %v3984_v10 = vunpack.c.l.bf16 %v9602_v17 }
 0x7d6   :  { %v5077_v14 = vadd.f32 %v5076_v47, %v5075_v51  ;;  %v9603_v51 = vmov 3  }
 0x7d7   :  { %v5078_v13 = vpop.f32.mrf.mxu1  ;;  %5468 = vset.pattern.permute.xlu0 %v9603_v51 }
 0x7d8   :  { %v8758_v36 = vmul.f32 %v5077_v14, %v3977_v12 }
 0x7d9   :  { %v5079_v63 = vpop.f32.mrf.mxu1 }
 0x7da   :  { %v4035_v11 = vpack.c.bf16 %v8758_v36, %v8755_v24  ;;  %v5080_v37 = vadd.f32 %v5079_v63, %v5078_v13  ;;  %v3985_v63 = vunpack.c.h.bf16 %v9602_v17  ;;  %v9611_v24 = vpack.c.bf16 %v8734_v21, %v8731_v53  ;;  %v5618_v53 = vld [vmem:[#allocation2 + $0x210] ss:$8 sps:$4 sm:$0xff]   ;;  %v5619_v21 = vld [vmem:[#allocation2 + $0x224] ss:$8 sps:$4 sm:$0xff]  }
 0x7db   :  { %v5081_v19 = vpop.f32.mrf.mxu1 }
 0x7dc   :  { %v8763_v5 = vmul.f32 %v5080_v37, %v3978_v32 }
 0x7dd   :  { %v5082_v33 = vpop.f32.mrf.mxu1 }
 0x7de   :  { %v5083_v4 = vadd.f32 %v5082_v33, %v5081_v19  ;;  %v9604_v33 = vld [vmem:[#allocation113_spill] sm:$0xff] }
 0x7df   :  { %v5084_v57 = vpop.f32.mrf.mxu1 }
 0x7e0   :  { %v8766_v52 = vmul.f32 %v5083_v4, %v3979_v50  ;;  %v3986_v4 = vunpack.c.l.bf16 %v9604_v33 }
 0x7e1   :  { %v5085_v27 = vpop.f32.mrf.mxu1 }
 0x7e2   :  { %v4036_v28 = vpack.c.bf16 %v8766_v52, %v8763_v5  ;;  %v5086_v48 = vadd.f32 %v5085_v27, %v5084_v57  ;;  %v5627_v52 = vld [vmem:[#allocation2 + $0x240] ss:$8 sps:$4 sm:$0xff]  }
 0x7e3   :  { %v5087_v31 = vpop.f32.mrf.mxu1 }
 0x7e4   :  { %v8771_v30 = vmul.f32 %v5086_v48, %v3980_v54  ;;  %v3987_v54 = vunpack.c.h.bf16 %v9604_v33  ;;  %v9606_v33 = vld [vmem:[#allocation106_spill] sm:$0xff] }
 0x7e5   :  { %v5088_v8 = vpop.f32.mrf.mxu1 }
 0x7e6   :  { %v5089_v25 = vadd.f32 %v5088_v8, %v5087_v31 }
 0x7e7   :  { %v5090_v0 = vpop.f32.mrf.mxu1 }
 0x7e8   :  { %v8774_v18 = vmul.f32 %v5089_v25, %v3981_v60  ;;  %v3993_v60 = vunpack.c.h.bf16 %v9607_v43 }
 0x7e9   :  { %v5091_v9 = vpop.f32.mrf.mxu1 }
 0x7ea   :  { %v4037_v56 = vpack.c.bf16 %v8774_v18, %v8771_v30  ;;  %v5092_v59 = vadd.f32 %v5091_v9, %v5090_v0 }
 0x7eb   :  { %v5093_v62 = vpop.f32.mrf.mxu1 }
 0x7ec   :  { %v8779_v26 = vmul.f32 %v5092_v59, %v3982_v23 }
 0x7ed   :  { %v5094_v35 = vpop.f32.mrf.mxu1 }
 0x7ee   :  { %v5095_v20 = vadd.f32 %v5094_v35, %v5093_v62 }
 0x7ef   :  { %v5096_v49 = vpop.f32.mrf.mxu1 }
 0x7f0   :  { %v8785_v34 = vmul.f32 %v5095_v20, %v3983_v41 }
 0x7f1   :  { %v5097_v44 = vpop.f32.mrf.mxu1 }
 0x7f2   :  { %v5098_v45 = vadd.f32 %v5097_v44, %v5096_v49  ;;  %v9614_v40 = vpack.c.bf16 %v8785_v34, %v8779_v26  ;;  %v5628_v26 = vld [vmem:[#allocation2 + $0x254] ss:$8 sps:$4 sm:$0xff]  }
 0x7f3   :  { %v5099_v47 = vpop.f32.mrf.mxu1 }
 0x7f4   :  { %v8791_v14 = vmul.f32 %v5098_v45, %v3984_v10 }
 0x7f5   :  { %v5100_v12 = vpop.f32.mrf.mxu1 }
 0x7f6   :  { %v5101_v13 = vadd.f32 %v5100_v12, %v5099_v47 }
 0x7f7   :  { %v5102_v37 = vpop.f32.mrf.mxu1 }
 0x7f8   :  { %v8794_v61 = vmul.f32 %v5101_v13, %v3985_v63  ;;  %v9605_v63 = vld [vmem:[#allocation86_spill] sm:$0xff] }
 0x7f9   :  { %v5103_v32 = vpop.f32.mrf.mxu1 }
 0x7fa   :  { %v5104_v19 = vadd.f32 %v5103_v32, %v5102_v37  ;;  %v3995_v37 = vunpack.c.h.bf16 %v9605_v63  ;;  %v9612_v36 = vpack.c.bf16 %v8794_v61, %v8791_v14  ;;  %v5630_v61 = vld [vmem:[#allocation2 + $0x250] ss:$8 sps:$4 sm:$0xff]  }
 0x7fb   :  { %v5105_v57 = vpop.f32.mrf.mxu1 }
 0x7fc   :  { %v8799_v27 = vmul.f32 %v5104_v19, %v3986_v4  ;;  %v3996_v4 = vunpack.c.l.bf16 %v9606_v33 }
 0x7fd   :  { %v5106_v48 = vpop.f32.mrf.mxu1 }
 0x7fe   :  { %v5107_v46 = vadd.f32 %v5106_v48, %v5105_v57  ;;  %v3997_v48 = vunpack.c.h.bf16 %v9606_v33  ;;  %v5649_v33 = vld [vmem:[#allocation2 + $0x2c0] ss:$8 sps:$4 sm:$0xff]  }
 0x7ff   :  { %v5108_v31 = vpop.f32.mrf.mxu1 }
 0x800   :  { %v8802_v8 = vmul.f32 %v5107_v46, %v3987_v54  ;;  %v3994_v46 = vunpack.c.l.bf16 %v9605_v63  ;;  %v5645_v63 = vld [vmem:[#allocation2 + $0x2a0] ss:$8 sps:$4 sm:$0xff]  }
 0x801   :  { %v5109_v25 = vpop.f32.mrf.mxu1 }
 0x802   :  { %v9610_v5 = vpack.c.bf16 %v8802_v8, %v8799_v27  ;;  %v5631_v27 = vld [vmem:[#allocation2 + $0x264] ss:$8 sps:$4 sm:$0xff]   ;;  %v5634_v8 = vld [vmem:[#allocation2 + $0x274] ss:$8 sps:$4 sm:$0xff]  }
 0x803   :  { %v5111_v0 = vpop.f32.mrf.mxu1 }
 0x805   :  { %v5112_v9 = vpop.f32.mrf.mxu1 }
 0x807   :  { %v5114_v59 = vpop.f32.mrf.mxu1 }
 0x809   :  { %v5115_v2 = vpop.f32.mrf.mxu1 }
 0x80b   :  { %v5117_v23 = vpop.f32.mrf.mxu1 }
 0x80d   :  { %v5118_v62 = vpop.f32.mrf.mxu1 }
 0x80f   :  { %v5120_v35 = vpop.f32.mrf.mxu1 }
 0x811   :  { %v5121_v29 = vpop.f32.mrf.mxu1 }
 0x812   :  { %v5122_v50 = vadd.f32 %v5121_v29, %v5120_v35  ;;  %v5113_v35 = vadd.f32 %v5112_v9, %v5111_v0  ;;  %v5637_v9 = vld [vmem:[#allocation2 + $0x284] ss:$8 sps:$4 sm:$0xff]  }
 0x813   :  { %v5123_v20 = vpop.f32.mrf.mxu1 }
 0x815   :  { %v5124_v41 = vpop.f32.mrf.mxu1 }
 0x816   :  { %v5125_v54 = vadd.f32 %v5124_v41, %v5123_v20  ;;  %v9608_v20 = vld [vmem:[#allocation8_spill] sm:$0xff] }
 0x817   :  { %v5126_v49 = vpop.f32.mrf.mxu1  ;;  %v3991_v41 = vunpack.c.h.bf16 %v9608_v20  ;;  %v3990_v29 = vunpack.c.l.bf16 %v9608_v20 }
 0x819   :  { %v5127_v44 = vpop.f32.mrf.mxu1 }
 0x81a   :  { %v5128_v19 = vadd.f32 %v5127_v44, %v5126_v49  ;;  %v4025_v49 = vmul.f32 %v5125_v54, %v3993_v60  ;;  %v5660_v54 = vld [vmem:[#allocation2 + $0x2f4] ss:$8 sps:$4 sm:$0xff]  }
 0x81b   :  { %v5129_v45 = vpop.f32.mrf.mxu1 }
 0x81d   :  { %v5130_v17 = vpop.f32.mrf.mxu1 }
 0x81e   :  { %v5131_v12 = vadd.f32 %v5130_v17, %v5129_v45  ;;  %v4026_v45 = vmul.f32 %v5128_v19, %v3994_v46  ;;  %v5651_v19 = vld [vmem:[#allocation2 + $0x2c4] ss:$8 sps:$4 sm:$0xff]   ;;  %v5655_v46 = vld [vmem:[#allocation2 + $0x2e0] ss:$8 sps:$4 sm:$0xff]  }
 0x81f   :  { %v5132_v10 = vpop.f32.mrf.mxu1 }
 0x820   :  { %v4027_v22 = vmul.f32 %v5131_v12, %v3995_v37  ;;  %v5648_v37 = vld [vmem:[#allocation2 + $0x2b4] ss:$8 sps:$4 sm:$0xff]  }
 0x821   :  { %v5133_v51 = vpop.f32.mrf.mxu1 }
 0x822   :  { %v5134_v13 = vadd.f32 %v5133_v51, %v5132_v10  ;;  %v5119_v10 = vadd.f32 %v5118_v62, %v5117_v23  ;;  %v3992_v51 = vunpack.c.l.bf16 %v9607_v43  ;;  %v4044_v44 = vpack.c.bf16 %v4027_v22, %v4026_v45  ;;  %v9609_v22 = vld [vmem:[#allocation85_spill] sm:$0xff]  ;;  %v5642_v23 = vld [vmem:[#allocation2 + $0x290] ss:$8 sps:$4 sm:$0xff]  }
 0x823   :  { %v5135_v47 = vpop.f32.mrf.mxu1  ;;  %v5110_v43 = vadd.f32 %v5109_v25, %v5108_v31  ;;  %v3988_v30 = vunpack.c.l.bf16 %v9609_v22  ;;  %v5633_v31 = vld [vmem:[#allocation2 + $0x260] ss:$8 sps:$4 sm:$0xff]   ;;  %v5636_v25 = vld [vmem:[#allocation2 + $0x270] ss:$8 sps:$4 sm:$0xff]   ;;  %v5643_v62 = vld [vmem:[#allocation2 + $0x2a4] ss:$8 sps:$4 sm:$0xff]  }
 0x824   :  { %v4028_v15 = vmul.f32 %v5134_v13, %v3996_v4  ;;  %v4024_v12 = vmul.f32 %v5122_v50, %v3992_v51  ;;  %v4023_v13 = vmul.f32 %v5119_v10, %v3991_v41  ;;  %v5654_v4 = vld [vmem:[#allocation2 + $0x2d4] ss:$8 sps:$4 sm:$0xff]   ;;  %v5658_v45 = vld [vmem:[#allocation2 + $0x2f0] ss:$8 sps:$4 sm:$0xff]  }
 0x825   :  { %v5136_v32 = vpop.f32.mrf.mxu1  ;;  %v4020_v50 = vmul.f32 %v5110_v43, %v3988_v30 }
 0x826   :  { %v5137_v57 = vadd.f32 %v5136_v32, %v5135_v47  ;;  %v5116_v47 = vadd.f32 %v5115_v2, %v5114_v59  ;;  %v5639_v59 = vld [vmem:[#allocation2 + $0x280] ss:$8 sps:$4 sm:$0xff]   ;;  %v5640_v2 = vld [vmem:[#allocation2 + $0x294] ss:$8 sps:$4 sm:$0xff]   ;;  %v5646_v32 = vld [vmem:[#allocation2 + $0x2b0] ss:$8 sps:$4 sm:$0xff]  }
 0x828   :  { %v4029_v39 = vmul.f32 %v5137_v57, %v3997_v48  ;;  %v4022_v60 = vmul.f32 %v5116_v47, %v3990_v29  ;;  %v5652_v57 = vld [vmem:[#allocation2 + $0x2d0] ss:$8 sps:$4 sm:$0xff]   ;;  %v5657_v48 = vld [vmem:[#allocation2 + $0x2e4] ss:$8 sps:$4 sm:$0xff]  }
 0x82a   :  { %v4045_v17 = vpack.c.bf16 %v4029_v39, %v4028_v15  ;;  %v4043_v39 = vpack.c.bf16 %v4025_v49, %v4024_v12  ;;  %v3989_v15 = vunpack.c.h.bf16 %v9609_v22  ;;  %v9616_v49 = vld [vmem:[#allocation53_spill] sm:$0xff] }
 0x82c   :  { %5138 = vmatprep.subr.bf16.mxu0 %v4045_v17  ;;  %v4021_v18 = vmul.f32 %v5113_v35, %v3989_v15  ;;  %v4368_v35 = vunpack.c.h.bf16 %v9616_v49  ;;  %v9617_v15 = vld [vmem:[#allocation6_spill] sm:$0xff] }
 0x82d   :  { %5139 = vmatpush3.bf16.msra.mxu0 %v4037_v56  ;;  %v4042_v56 = vpack.c.bf16 %v4023_v13, %v4022_v60  ;;  %v4369_v60 = vunpack.c.l.bf16 %v9617_v15 }
 0x82e   :  { %5140 = vmatprep.subr.bf16.mxu0 %v4044_v44  ;;  %v4041_v0 = vpack.c.bf16 %v4021_v18, %v4020_v50  ;;  %v4367_v44 = vunpack.c.l.bf16 %v9616_v49 }
 0x831   :  { %5141 = vmatpush3.bf16.msra.mxu0 %v4036_v28  ;;  %v5020_v28 = vpop.f32.mrf.mxu0 }
 0x832   :  { %5142 = vmatprep.subr.bf16.mxu0 %v4043_v39 }
 0x835   :  { %5143 = vmatpush3.bf16.msra.mxu0 %v4035_v11  ;;  %v5622_v11 = vld [vmem:[#allocation2 + $0x234] ss:$8 sps:$4 sm:$0xff]  }
 0x836   :  { %5144 = vmatprep.subr.bf16.mxu0 %v4042_v56 }
 0x839   :  { %5145 = vmatpush3.bf16.msra.mxu0 %v4034_v7  ;;  %v5621_v7 = vld [vmem:[#allocation2 + $0x220] ss:$8 sps:$4 sm:$0xff]  }
 0x83a   :  { %5146 = vmatprep.subr.bf16.mxu0 %v4041_v0  ;;  %v4370_v0 = vunpack.c.h.bf16 %v9617_v15 }
 0x83d   :  { %5147 = vmatpush3.bf16.msra.mxu0 %v4033_v42  ;;  %v9615_v42 = vpack.c.bf16 %v8718_v16, %v8715_v1  ;;  %v5021_v1 = vpop.f32.mrf.mxu0 }
 0x83e   :  { %5148 = vmatprep.subr.bf16.mxu0 %v9610_v5  ;;  %v8849_v16 = vadd.f32 %v5021_v1, %v5020_v28  ;;  %v9619_v1 = vld [vmem:[#allocation83_spill] sm:$0xff] }
 0x83f   :  { %v5023_v34 = vpop.f32.mrf.mxu0 }
 0x840   :  { %v4373_v34 = vunpack.c.l.bf16 %v9619_v1 }
 0x841   :  { %5149 = vmatpush3.bf16.msra.mxu0 %v9611_v24  ;;  %v5024_v14 = vpop.f32.mrf.mxu0 }
 0x842   :  { %5150 = vmatprep.subr.bf16.mxu0 %v9612_v36 }
 0x845   :  { %5151 = vmatpush3.bf16.msra.mxu0 %v9613_v6 }
 0x846   :  { %5152 = vmatprep.subr.bf16.mxu0 %v9614_v40 }
 0x849   :  { %5153 = vmatpush3.bf16.msra.mxu0 %v9615_v42 }
 0x84c   :  { %4239 = vmatmul.mubr.bf16.vlgmr.msra.gmra.mxu0 %v5613_v55  ;;  %v9618_v55 = vld [vmem:[#allocation37_spill] sm:$0xff] }
 0x84d   :  { %4246 = vmatprep.mubr.bf16.mxu0 %v5616_v58  ;;  %v4371_v42 = vunpack.c.l.bf16 %v9618_v55 }
 0x854   :  { %4247 = vmatmul.mubr.bf16.gmra.mxu0 %v5618_v53 }
 0x855   :  { %4254 = vmatprep.mubr.bf16.mxu0 %v5619_v21 }
 0x85c   :  { %4255 = vmatmul.mubr.bf16.gmra.mxu0 %v5621_v7 }
 0x85d   :  { %4262 = vmatprep.mubr.bf16.mxu0 %v5622_v11  ;;  %v4372_v11 = vunpack.c.h.bf16 %v9618_v55 }
 0x864   :  { %4263 = vmatmul.mubr.bf16.gmra.mxu0 %v5624_v38 }
 0x865   :  { %4270 = vmatprep.mubr.bf16.mxu0 %v5625_v3 }
 0x86c   :  { %4271 = vmatmul.mubr.bf16.gmra.mxu0 %v5627_v52 }
 0x86d   :  { %4278 = vmatprep.mubr.bf16.mxu0 %v5628_v26 }
 0x874   :  { %4279 = vmatmul.mubr.bf16.gmra.mxu0 %v5630_v61 }
 0x875   :  { %4286 = vmatprep.mubr.bf16.mxu0 %v5631_v27 }
 0x87c   :  { %4287 = vmatmul.mubr.bf16.gmra.mxu0 %v5633_v31 }
 0x87d   :  { %4294 = vmatprep.mubr.bf16.mxu0 %v5634_v8  ;;  %v4374_v8 = vunpack.c.h.bf16 %v9619_v1 }
 0x884   :  { %4295 = vmatmul.mubr.bf16.gmra.mxu0 %v5636_v25 }
 0x885   :  { %4302 = vmatprep.mubr.bf16.mxu0 %v5637_v9 }
 0x88c   :  { %4303 = vmatmul.mubr.bf16.gmra.mxu0 %v5639_v59 }
 0x88d   :  { %4310 = vmatprep.mubr.bf16.mxu0 %v5640_v2  ;;  %v5663_v2 = vld [vmem:[%s9050_s3 + $0x4] ss:$8 sps:$4 sm:$0xff]  }
 0x88e   :  { %4499 = vmatprep.mubr.bf16.mxu1 %v5663_v2 }
 0x894   :  { %4311 = vmatmul.mubr.bf16.gmra.mxu0 %v5642_v23 }
 0x895   :  { %4318 = vmatprep.mubr.bf16.mxu0 %v5643_v62 }
 0x89c   :  { %4319 = vmatmul.mubr.bf16.gmra.mxu0 %v5645_v63  ;;  %v9620_v63 = vld [vmem:[#allocation28_spill] sm:$0xff] }
 0x89d   :  { %4326 = vmatprep.mubr.bf16.mxu0 %v5648_v37  ;;  %v4375_v37 = vunpack.c.l.bf16 %v9620_v63 }
 0x8a4   :  { %4327 = vmatmul.mubr.bf16.gmra.mxu0 %v5646_v32 }
 0x8a5   :  { %4334 = vmatprep.mubr.bf16.mxu0 %v5651_v19 }
 0x8ac   :  { %4335 = vmatmul.mubr.bf16.gmra.mxu0 %v5649_v33 }
 0x8ad   :  { %4342 = vmatprep.mubr.bf16.mxu0 %v5654_v4 }
 0x8b4   :  { %4343 = vmatmul.mubr.bf16.gmra.mxu0 %v5652_v57  ;;  %v4376_v57 = vunpack.c.h.bf16 %v9620_v63 }
 0x8b5   :  { %4350 = vmatprep.mubr.bf16.mxu0 %v5657_v48 }
 0x8bc   :  { %4351 = vmatmul.mubr.bf16.gmra.mxu0 %v5655_v46 }
 0x8bd   :  { %4358 = vmatprep.mubr.bf16.mxu0 %v5660_v54 }
 0x8c4   :  { %4359 = vmatmul.mubr.bf16.gmra.mxu0 %v5658_v45 }
 0x90c   :  { %v5154_v17 = vpop.f32.mrf.mxu0 }
 0x90e   :  { %v5155_v10 = vpop.f32.mrf.mxu0 }
 0x90f   :  { %v5156_v51 = vadd.f32 %v5155_v10, %v5154_v17  ;;  %v9621_v10 = vld [vmem:[#allocation62_spill] sm:$0xff] }
 0x910   :  { %v5157_v47 = vpop.f32.mrf.mxu0 }
 0x911   :  { %v8852_v20 = vmul.f32 %v5156_v51, %v4367_v44  ;;  %v4377_v51 = vunpack.c.l.bf16 %v9621_v10 }
 0x912   :  { %v5158_v41 = vpop.f32.mrf.mxu0 }
 0x913   :  { %v5159_v12 = vadd.f32 %v5158_v41, %v5157_v47 }
 0x914   :  { %v5160_v29 = vpop.f32.mrf.mxu0 }
 0x915   :  { %v8855_v13 = vmul.f32 %v5159_v12, %v4368_v35  ;;  %v4378_v12 = vunpack.c.h.bf16 %v9621_v10 }
 0x916   :  { %v5161_v39 = vpop.f32.mrf.mxu0 }
 0x917   :  { %v5162_v22 = vadd.f32 %v5161_v39, %v5160_v29 }
 0x918   :  { %v5163_v30 = vpop.f32.mrf.mxu0 }
 0x919   :  { %v8860_v18 = vmul.f32 %v5162_v22, %v4369_v60  ;;  %v9622_v60 = vld [vmem:[#allocation51_spill] sm:$0xff] }
 0x91a   :  { %v5164_v56 = vpop.f32.mrf.mxu0 }
 0x91b   :  { %v5165_v50 = vadd.f32 %v5164_v56, %v5163_v30  ;;  %v4379_v30 = vunpack.c.l.bf16 %v9622_v60 }
 0x91c   :  { %v5166_v5 = vpop.f32.mrf.mxu0 }
 0x91d   :  { %v8863_v24 = vmul.f32 %v5165_v50, %v4370_v0 }
 0x91e   :  { %v5167_v36 = vpop.f32.mrf.mxu0 }
 0x91f   :  { %v5168_v40 = vadd.f32 %v5167_v36, %v5166_v5  ;;  %v4380_v36 = vunpack.c.h.bf16 %v9622_v60 }
 0x920   :  { %v5169_v58 = vpop.f32.mrf.mxu0 }
 0x921   :  { %v8868_v53 = vmul.f32 %v5168_v40, %v4371_v42 }
 0x922   :  { %v5170_v21 = vpop.f32.mrf.mxu0 }
 0x923   :  { %v5171_v7 = vadd.f32 %v5170_v21, %v5169_v58 }
 0x924   :  { %v5172_v38 = vpop.f32.mrf.mxu0 }
 0x925   :  { %v8871_v3 = vmul.f32 %v5171_v7, %v4372_v11  ;;  %v9623_v7 = vld [vmem:[#allocation18_spill] sm:$0xff] }
 0x926   :  { %v5173_v52 = vpop.f32.mrf.mxu0  ;;  %v4381_v11 = vunpack.c.l.bf16 %v9623_v7 }
 0x927   :  { %v5174_v26 = vadd.f32 %v5173_v52, %v5172_v38 }
 0x928   :  { %v5175_v14 = vpop.f32.mrf.mxu0 }
 0x929   :  { %v8876_v61 = vmul.f32 %v5174_v26, %v4373_v34  ;;  %v4382_v34 = vunpack.c.h.bf16 %v9623_v7 }
 0x92a   :  { %v5176_v27 = vpop.f32.mrf.mxu0 }
 0x92b   :  { %v5177_v31 = vadd.f32 %v5176_v27, %v5175_v14 }
 0x92c   :  { %v5178_v25 = vpop.f32.mrf.mxu0 }
 0x92d   :  { %v8879_v9 = vmul.f32 %v5177_v31, %v4374_v8 }
 0x92e   :  { %v5179_v59 = vpop.f32.mrf.mxu0 }
 0x92f   :  { %v5180_v62 = vadd.f32 %v5179_v59, %v5178_v25  ;;  %v9624_v59 = vld [vmem:[#allocation39_spill] sm:$0xff] }
 0x930   :  { %v5181_v32 = vpop.f32.mrf.mxu0  ;;  %v4383_v2 = vunpack.c.l.bf16 %v9624_v59 }
 0x931   :  { %v8887_v19 = vmul.f32 %v5180_v62, %v4375_v37 }
 0x932   :  { %v5182_v33 = vpop.f32.mrf.mxu0 }
 0x933   :  { %v5183_v4 = vadd.f32 %v5182_v33, %v5181_v32  ;;  %v4384_v33 = vunpack.c.h.bf16 %v9624_v59 }
 0x934   :  { %v5184_v48 = vpop.f32.mrf.mxu0 }
 0x935   :  { %v8890_v46 = vmul.f32 %v5183_v4, %v4376_v57 }
 0x936   :  { %v5185_v54 = vpop.f32.mrf.mxu0 }
 0x937   :  { %v4435_v45 = vpack.c.bf16 %v8890_v46, %v8887_v19  ;;  %v5186_v17 = vadd.f32 %v5185_v54, %v5184_v48  ;;  %v9636_v19 = vpack.c.bf16 %v8863_v24, %v8860_v18  ;;  %v5664_v18 = vld [vmem:[%s9050_s3 + $0x10] ss:$8 sps:$4 sm:$0xff]  }
 0x938   :  { %v5187_v49 = vpop.f32.mrf.mxu0 }
 0x939   :  { %v8895_v44 = vmul.f32 %v5186_v17, %v4377_v51  ;;  %v9625_v17 = vld [vmem:[#allocation58_spill] sm:$0xff] }
 0x93a   :  { %v5188_v47 = vpop.f32.mrf.mxu0  ;;  %v4385_v10 = vunpack.c.l.bf16 %v9625_v17 }
 0x93b   :  { %v5189_v41 = vadd.f32 %v5188_v47, %v5187_v49 }
 0x93c   :  { %v5190_v35 = vpop.f32.mrf.mxu0 }
 0x93d   :  { %v8898_v29 = vmul.f32 %v5189_v41, %v4378_v12 }
 0x93e   :  { %v5191_v39 = vpop.f32.mrf.mxu0 }
 0x93f   :  { %v4436_v22 = vpack.c.bf16 %v8898_v29, %v8895_v44  ;;  %v5192_v15 = vadd.f32 %v5191_v39, %v5190_v35  ;;  %v4386_v35 = vunpack.c.h.bf16 %v9625_v17  ;;  %v9634_v44 = vpack.c.bf16 %v8871_v3, %v8868_v53  ;;  %v5666_v3 = vld [vmem:[%s9050_s3 + $0x14] ss:$8 sps:$4 sm:$0xff]  }
 0x940   :  { %v5193_v56 = vpop.f32.mrf.mxu0  ;;  %v9638_v53 = vpack.c.bf16 %v8855_v13, %v8852_v20  ;;  %v9639_v13 = vld [vmem:[#allocation123_spill] sm:$0xff] }
 0x941   :  { %v8903_v50 = vmul.f32 %v5192_v15, %v4379_v30 }
 0x942   :  { %v5194_v0 = vpop.f32.mrf.mxu0 }
 0x943   :  { %v5195_v5 = vadd.f32 %v5194_v0, %v5193_v56  ;;  %v9626_v56 = vld [vmem:[#allocation104_spill] sm:$0xff] }
 0x944   :  { %v5196_v40 = vpop.f32.mrf.mxu0  ;;  %v4387_v0 = vunpack.c.l.bf16 %v9626_v56  ;;  %v4388_v7 = vunpack.c.h.bf16 %v9626_v56 }
 0x945   :  { %v8906_v55 = vmul.f32 %v5195_v5, %v4380_v36 }
 0x946   :  { %v5197_v42 = vpop.f32.mrf.mxu0 }
 0x947   :  { %v4437_v58 = vpack.c.bf16 %v8906_v55, %v8903_v50  ;;  %v5198_v21 = vadd.f32 %v5197_v42, %v5196_v40  ;;  %v9632_v50 = vpack.c.bf16 %v8879_v9, %v8876_v61  ;;  %v5661_v9 = vld [vmem:[%s9050_s3] ss:$8 sps:$4 sm:$0xff]  }
 0x948   :  { %v5199_v38 = vpop.f32.mrf.mxu0 }
 0x949   :  { %v8911_v52 = vmul.f32 %v5198_v21, %v4381_v11 }
 0x94a   :  { %v5200_v26 = vpop.f32.mrf.mxu0 }
 0x94b   :  { %v5201_v1 = vadd.f32 %v5200_v26, %v5199_v38 }
 0x94c   :  { %v5202_v14 = vpop.f32.mrf.mxu0 }
 0x94d   :  { %v8914_v27 = vmul.f32 %v5201_v1, %v4382_v34  ;;  %v9629_v1 = vld [vmem:[#allocation12_spill] sm:$0xff] }
 0x94e   :  { %v5203_v31 = vpop.f32.mrf.mxu0  ;;  %v4394_v23 = vunpack.c.h.bf16 %v9629_v1 }
 0x94f   :  { %v4438_v8 = vpack.c.bf16 %v8914_v27, %v8911_v52  ;;  %v5204_v25 = vadd.f32 %v5203_v31, %v5202_v14 }
 0x950   :  { %v5205_v62 = vpop.f32.mrf.mxu0 }
 0x951   :  { %v8919_v63 = vmul.f32 %v5204_v25, %v4383_v2 }
 0x952   :  { %v5206_v37 = vpop.f32.mrf.mxu0 }
 0x953   :  { %v5207_v32 = vadd.f32 %v5206_v37, %v5205_v62 }
 0x954   :  { %v5208_v4 = vpop.f32.mrf.mxu0 }
 0x955   :  { %v8922_v57 = vmul.f32 %v5207_v32, %v4384_v33 }
 0x956   :  { %v5209_v48 = vpop.f32.mrf.mxu0 }
 0x957   :  { %v5210_v54 = vadd.f32 %v5209_v48, %v5208_v4  ;;  %v9637_v61 = vpack.c.bf16 %v8922_v57, %v8919_v63  ;;  %v5787_v63 = vmov 1966171168  }
 0x958   :  { %v5211_v49 = vpop.f32.mrf.mxu0  ;;  %v4550_v57 = vunpack.c.l.s4 %v5787_v63 }
 0x959   :  { %v8927_v47 = vmul.f32 %v5210_v54, %v4385_v10 }
 0x95a   :  { %v5212_v41 = vpop.f32.mrf.mxu0 }
 0x95b   :  { %v5213_v12 = vadd.f32 %v5212_v41, %v5211_v49 }
 0x95c   :  { %v5214_v39 = vpop.f32.mrf.mxu0 }
 0x95d   :  { %v8930_v15 = vmul.f32 %v5213_v12, %v4386_v35 }
 0x95e   :  { %v5215_v60 = vpop.f32.mrf.mxu0 }
 0x95f   :  { %v5216_v30 = vadd.f32 %v5215_v60, %v5214_v39  ;;  %v9627_v39 = vld [vmem:[#allocation130_spill] sm:$0xff]  ;;  %v9635_v29 = vpack.c.bf16 %v8930_v15, %v8927_v47 }
 0x960   :  { %v5217_v36 = vpop.f32.mrf.mxu0  ;;  %v4397_v60 = vunpack.c.l.bf16 %v9627_v39 }
 0x961   :  { %v8935_v40 = vmul.f32 %v5216_v30, %v4387_v0  ;;  %v9628_v0 = vld [vmem:[#allocation15_spill] sm:$0xff] }
 0x962   :  { %v5218_v42 = vpop.f32.mrf.mxu0 }
 0x963   :  { %v5219_v21 = vadd.f32 %v5218_v42, %v5217_v36  ;;  %v4396_v36 = vunpack.c.h.bf16 %v9628_v0 }
 0x964   :  { %v5220_v11 = vpop.f32.mrf.mxu0 }
 0x965   :  { %v8938_v38 = vmul.f32 %v5219_v21, %v4388_v7  ;;  %v4398_v21 = vunpack.c.h.bf16 %v9627_v39  ;;  %v4395_v7 = vunpack.c.l.bf16 %v9628_v0 }
 0x966   :  { %v5221_v26 = vpop.f32.mrf.mxu0 }
 0x967   :  { %v9633_v55 = vpack.c.bf16 %v8938_v38, %v8935_v40 }
 0x968   :  { %v5223_v34 = vpop.f32.mrf.mxu0 }
 0x96a   :  { %v5224_v14 = vpop.f32.mrf.mxu0 }
 0x96c   :  { %v5226_v31 = vpop.f32.mrf.mxu0 }
 0x96e   :  { %v5227_v25 = vpop.f32.mrf.mxu0 }
 0x970   :  { %v5229_v59 = vpop.f32.mrf.mxu0 }
 0x972   :  { %v5230_v2 = vpop.f32.mrf.mxu0 }
 0x974   :  { %v5232_v62 = vpop.f32.mrf.mxu0 }
 0x976   :  { %v5233_v37 = vpop.f32.mrf.mxu0 }
 0x977   :  { %v5234_v28 = vadd.f32 %v5233_v37, %v5232_v62  ;;  %v5225_v62 = vadd.f32 %v5224_v14, %v5223_v34 }
 0x978   :  { %v5235_v32 = vpop.f32.mrf.mxu0 }
 0x97a   :  { %v5236_v33 = vpop.f32.mrf.mxu0 }
 0x97b   :  { %v5237_v43 = vadd.f32 %v5236_v33, %v5235_v32  ;;  %v9630_v32 = vld [vmem:[#allocation68_spill] sm:$0xff] }
 0x97c   :  { %v5238_v4 = vpop.f32.mrf.mxu0  ;;  %v4392_v33 = vunpack.c.h.bf16 %v9630_v32  ;;  %v4391_v37 = vunpack.c.l.bf16 %v9630_v32 }
 0x97e   :  { %v5239_v48 = vpop.f32.mrf.mxu0 }
 0x97f   :  { %v5240_v56 = vadd.f32 %v5239_v48, %v5238_v4  ;;  %v4426_v4 = vmul.f32 %v5237_v43, %v4394_v23  ;;  %v5222_v43 = vadd.f32 %v5221_v26, %v5220_v11  ;;  %v9631_v23 = vld [vmem:[#allocation119_spill] sm:$0xff]  ;;  %v4551_v26 = vunpack.c.0.s8 %v4550_v57 }
 0x980   :  { %v5241_v54 = vpop.f32.mrf.mxu0  ;;  %v4389_v52 = vunpack.c.l.bf16 %v9631_v23 }
 0x982   :  { %v5242_v17 = vpop.f32.mrf.mxu0 }
 0x983   :  { %v5243_v12 = vadd.f32 %v5242_v17, %v5241_v54  ;;  %v4427_v54 = vmul.f32 %v5240_v56, %v4395_v7 }
 0x984   :  { %v5244_v10 = vpop.f32.mrf.mxu0 }
 0x985   :  { %v4428_v51 = vmul.f32 %v5243_v12, %v4396_v36 }
 0x986   :  { %v5245_v49 = vpop.f32.mrf.mxu0 }
 0x987   :  { %v5246_v35 = vadd.f32 %v5245_v49, %v5244_v10  ;;  %v5231_v10 = vadd.f32 %v5230_v2, %v5229_v59  ;;  %v4393_v49 = vunpack.c.l.bf16 %v9629_v1  ;;  %v4445_v48 = vpack.c.bf16 %v4428_v51, %v4427_v54  ;;  %v3384_v59 = vpop.permute.xlu0 %3383 }
 0x988   :  { %v5247_v41 = vpop.f32.mrf.mxu0  ;;  %v4390_v51 = vunpack.c.h.bf16 %v9631_v23  ;;  %v3432_v0 = vadd.f32 %v8849_v16, %v3384_v59 }
 0x989   :  { %v4429_v6 = vmul.f32 %v5246_v35, %v4397_v60  ;;  %v4425_v12 = vmul.f32 %v5234_v28, %v4393_v49  ;;  %v4424_v35 = vmul.f32 %v5231_v10, %v4392_v33  ;;  %v4421_v28 = vmul.f32 %v5222_v43, %v4389_v52  ;;  %v9640_v60 = vld [vmem:[#allocation114_spill] sm:$0xff] }
 0x98a   :  { %v5248_v30 = vpop.f32.mrf.mxu0  ;;  %v4422_v27 = vmul.f32 %v5225_v62, %v4390_v51  ;;  %vm4625_vm0 = vcmp.eq.s32.totalorder %v9640_v60, 5  ;;  %vm4624_vm1 = vcmp.eq.s32.totalorder %v9640_v60, 4  ;;  %vm4623_vm2 = vcmp.lt.s32.totalorder %v9640_v60, 4 }
 0x98b   :  { %v5249_v42 = vadd.f32 %v5248_v30, %v5247_v41  ;;  %v5228_v41 = vadd.f32 %v5227_v25, %v5226_v31  ;;  %v4554_v30 = vsub.s32 %v4551_v26, %v9640_v60 }
 0x98c   :  { %v4442_v1 = vpack.c.bf16 %v4422_v27, %v4421_v28 }
 0x98d   :  { %v4430_v5 = vmul.f32 %v5249_v42, %v4398_v21  ;;  %v4555_v54 = vrot.slane %v3432_v0, %v4554_v30 }
 0x98f   :  { %v4446_v17 = vpack.c.bf16 %v4430_v5, %v4429_v6  ;;  %v4444_v6 = vpack.c.bf16 %v4426_v4, %v4425_v12  ;;  %v4423_v5 = vmul.f32 %v5228_v41, %v4391_v37  ;;  %v4563_v41 = vrot.slane %v4555_v54, %v4554_v30 }
 0x991   :  { %5250 = vmatprep.subr.bf16.mxu1 %v4446_v17 }
 0x992   :  { %5251 = vmatpush3.bf16.msra.mxu1 %v4438_v8  ;;  %v4443_v8 = vpack.c.bf16 %v4424_v35, %v4423_v5  ;;  %v9641_v35 = vld [vmem:[#allocation116_spill] sm:$0xff] }
 0x993   :  { %5252 = vmatprep.subr.bf16.mxu1 %v4445_v48  ;;  %v4556_v48 = vcombine.high %v4555_v54, %v4555_v54 }
 0x995   :  { %v4570_v37 = vrot.slane %v4556_v48, %v4554_v30 }
 0x996   :  { %5253 = vmatpush3.bf16.msra.mxu1 %v4437_v58 }
 0x997   :  { %5254 = vmatprep.subr.bf16.mxu1 %v4444_v6  ;;  %v4576_v6 = vrot.slane %v4563_v41, %v9641_v35 }
 0x99a   :  { %5255 = vmatpush3.bf16.msra.mxu1 %v4436_v22 }
 0x99b   :  { %5256 = vmatprep.subr.bf16.mxu1 %v4443_v8 }
 0x99e   :  { %5257 = vmatpush3.bf16.msra.mxu1 %v4435_v45 }
 0x99f   :  { %5258 = vmatprep.subr.bf16.mxu1 %v4442_v1 }
 0x9a2   :  { %5259 = vmatpush3.bf16.msra.mxu1 %v9632_v50  ;;  %v4571_v50 = vcombine.high %v4563_v41, %v4563_v41 }
 0x9a3   :  { %5260 = vmatprep.subr.bf16.mxu1 %v9633_v55  ;;  %v4580_v55 = vrot.slane %v4570_v37, %v9641_v35 }
 0x9a6   :  { %5261 = vmatpush3.bf16.msra.mxu1 %v9634_v44 }
 0x9a7   :  { %5262 = vmatprep.subr.bf16.mxu1 %v9635_v29 }
 0x9aa   :  { %5263 = vmatpush3.bf16.msra.mxu1 %v9636_v19 }
 0x9ab   :  { %5264 = vmatprep.subr.bf16.mxu1 %v9637_v61 }
 0x9ae   :  { %5265 = vmatpush3.bf16.msra.mxu1 %v9638_v53 }
 0x9b1   :  { %4500 = vmatmul.mubr.bf16.vlgmr.msra.gmra.mxu1 %v5661_v9 }
 0x9b2   :  { %4507 = vmatprep.mubr.bf16.mxu1 %v5666_v3 }
 0x9b9   :  { %4508 = vmatmul.mubr.bf16.gmra.mxu1 %v5664_v18 }
 0xa71   :  { %v5266_v24 = vpop.f32.mrf.mxu1 }
 0xa73   :  { %v5267_v46 = vpop.f32.mrf.mxu1 }
 0xa74   :  { %v5268_v45 = vadd.f32 %v5267_v46, %v5266_v24  ;;  %v4572_v46 = vcombine.high %v4570_v37, %v4570_v37 }
 0xa75   :  { %v5269_v22 = vpop.f32.mrf.mxu1 }
 0xa76   :  { %v4516_v58 = vadd.f32 1e-06, %v5268_v45 }
 0xa77   :  { %v5270_v20 = vpop.f32.mrf.mxu1 }
 0xa78   :  { %v4523_v47 = vrot.slane %v4516_v58, %v9639_v13  ;;  %v4593_v15 = vand.u32 2147483647, %v4516_v58  ;;  %v5271_v40 = vadd.f32 %v5270_v20, %v5269_v22 }
 0xa79   :  { %v5272_v11 = vpop.f32.mrf.mxu1 }
 0xa7a   :  { %5667 = vrcp.f32 %v4523_v47  ;;  %v4517_v38 = vadd.f32 1e-06, %v5271_v40 }
 0xa7b   :  { %5669 = vlog2.f32 %v4593_v15  ;;  %v5273_v34 = vpop.f32.mrf.mxu1 }
 0xa7c   :  { %v4527_v14 = vrot.slane %v4517_v38, %v9639_v13  ;;  %v4594_v31 = vand.u32 2147483647, %v4517_v38  ;;  %v5274_v25 = vadd.f32 %v5273_v34, %v5272_v11 }
 0xa7d   :  { %v5275_v2 = vpop.f32.mrf.mxu1 }
 0xa7e   :  { %5671 = vrcp.f32 %v4527_v14  ;;  %v4518_v39 = vadd.f32 1e-06, %v5274_v25 }
 0xa7f   :  { %5673 = vlog2.f32 %v4594_v31  ;;  %v5276_v56 = vpop.f32.mrf.mxu1 }
 0xa80   :  { %v4531_v36 = vrot.slane %v4518_v39, %v9639_v13  ;;  %v4595_v42 = vand.u32 2147483647, %v4518_v39  ;;  %v5277_v21 = vadd.f32 %v5276_v56, %v5275_v2 }
 0xa82   :  { %5675 = vrcp.f32 %v4531_v36  ;;  %v4519_v7 = vadd.f32 1e-06, %v5277_v21 }
 0xa83   :  { %5677 = vlog2.f32 %v4595_v42 }
 0xa84   :  { %v4535_v17 = vrot.slane %v4519_v7, %v9639_v13  ;;  %v4596_v10 = vand.u32 2147483647, %v4519_v7 }
 0xa86   :  { %5679 = vrcp.f32 %v4535_v17 }
 0xa87   :  { %v5668_v49 = vpop.eup %5667  ;;  %5681 = vlog2.f32 %v4596_v10 }
 0xa88   :  { %v5670_v4 = vpop.eup %5669  ;;  %v4537_v32 = vmul.f32 %v5668_v49, %v5268_v45  ;;  %v4584_v45 = vrot.slane %v4571_v50, %v9641_v35 }
 0xa89   :  { %v4598_v33 = vmul.f32 0.6931472, %v5670_v4 }
 0xa8a   :  { %v4544_v43 = vsub.f32 0.0, %v4537_v32 }
 0xa8b   :  { %v5672_v16 = vpop.eup %5671  ;;  %v4608_v12 = vrot.slane %v4598_v33, %v9639_v13 }
 0xa8c   :  { %v5674_v62 = vpop.eup %5673  ;;  %v4539_v51 = vmul.f32 %v5672_v16, %v5271_v40  ;;  %v4588_v40 = vrot.slane %v4572_v46, %v9641_v35 }
 0xa8d   :  { %v4626_v23 = vsel %vm4625_vm0, %v4608_v12, 0.0  ;;  %v4600_v5 = vmul.f32 0.6931472, %v5674_v62 }
 0xa8e   :  { %v4630_v52 = vsel %vm4624_vm1, %v4576_v6, %v4626_v23  ;;  %v4545_v44 = vsub.f32 0.0, %v4539_v51 }
 0xa8f   :  { %v5676_v27 = vpop.eup %5675  ;;  %v4634_v8 = vsel %vm4623_vm2, %v4544_v43, %v4630_v52  ;;  %v4612_v28 = vrot.slane %v4600_v5, %v9639_v13 }
 0xa90   :  { %v5678_v1 = vpop.eup %5677  ;;  %4638 = vst [vmem:[%s9054_s7] sm:$0xff] %v4634_v8  ;;  %v4541_v19 = vmul.f32 %v5676_v27, %v5274_v25 }
 0xa91   :  { %v4627_v29 = vsel %vm4625_vm0, %v4612_v28, 0.0  ;;  %v4602_v61 = vmul.f32 0.6931472, %v5678_v1 }
 0xa92   :  { %v4631_v9 = vsel %vm4624_vm1, %v4580_v55, %v4627_v29  ;;  %v4546_v22 = vsub.f32 0.0, %v4541_v19 }
 0xa93   :  { %v5680_v53 = vpop.eup %5679  ;;  %v4635_v3 = vsel %vm4623_vm2, %v4545_v44, %v4631_v9  ;;  %v4616_v18 = vrot.slane %v4602_v61, %v9639_v13 }
 0xa94   :  { %v5682_v24 = vpop.eup %5681  ;;  %4639 = vst [vmem:[%s9054_s7 + $0x8] sm:$0xff] %v4635_v3  ;;  %v4543_v63 = vmul.f32 %v5680_v53, %v5277_v21 }
 0xa95   :  { %v4628_v58 = vsel %vm4625_vm0, %v4616_v18, 0.0  ;;  %v4604_v57 = vmul.f32 0.6931472, %v5682_v24 }
 0xa96   :  { %v4632_v20 = vsel %vm4624_vm1, %v4584_v45, %v4628_v58  ;;  %v4547_v11 = vsub.f32 0.0, %v4543_v63 }
 0xa97   :  { %v4636_v47 = vsel %vm4623_vm2, %v4546_v22, %v4632_v20  ;;  %v4620_v15 = vrot.slane %v4604_v57, %v9639_v13 }
 0xa98   :  { %4640 = vst [vmem:[%s9054_s7 + $0x10] sm:$0xff] %v4636_v47 }
 0xa99   :  { %v4629_v38 = vsel %vm4625_vm0, %v4620_v15, 0.0 }
 0xa9a   :  { %v4633_v26 = vsel %vm4624_vm1, %v4588_v40, %v4629_v38 }
 0xa9b   :  { %v4637_v34 = vsel %vm4623_vm2, %v4547_v11, %v4633_v26 }
 0xa9c   :  { %4641 = vst [vmem:[%s9054_s7 + $0x18] sm:$0xff] %v4637_v34 }
 0xa9d   :  { %4646 = vsyncpa [#allocation3], 1 }

</bundles_post_ra>
